<compile_context>
chip_gen: v7x
topology: tpu7x:2x2x1
jax: 0.10.0
libtpu: 0.0.40
codegen_flags: <defaults>
</compile_context>

<pallas_src>
import functools

import jax
import jax.numpy as jnp
from jax.experimental import pallas as pl
from jax.experimental.pallas import tpu as pltpu

KH, KW = 5, 20   # conv kernel size from the reference module
LANE = 128       # TPU lane width; all column blocks are padded to this


# ---------------------------------------------------------------------------
# Host-side weight preprocessing
# ---------------------------------------------------------------------------
def _conv_toeplitz(w, w_in, lane=LANE):
    """(KH, KW, Cin, Cout) conv weight ('same' pad) -> (KH*lane, 2*lane) matrix.
    Row index  = kh*lane + (w*cin + c)      (lane-padded input column layout)
    Col index  = p*lane  + (wo*cout + co)   (parity-p half of the width max-pool)
    """
    k_h, k_w, cin, cout = w.shape
    wo = (w_in - 2) // 2 + 1                     # width after MaxPool2d((1,2), stride 2)
    assert w_in * cin <= lane and wo * cout <= lane
    pad_left = (k_w - 1) // 2                    # PyTorch 'same': 9 left / 10 right for KW=20
    # conv output width for parity p, pooled col wo' is 2*wo' + p  (parity-major order)
    conv_w = (2 * jnp.arange(wo)[None, :] + jnp.arange(2)[:, None]).reshape(-1)   # (2*wo,)
    kw_idx = (jnp.arange(w_in) + pad_left)[:, None] - conv_w[None, :]             # (w_in, 2*wo)
    valid = (kw_idx >= 0) & (kw_idx < k_w)
    g = w[:, jnp.clip(kw_idx, 0, k_w - 1), :, :]            # (KH, w_in, 2*wo, cin, cout)
    g = jnp.where(valid[None, :, :, None, None], g, 0.0)
    g = jnp.transpose(g, (0, 1, 3, 2, 4)).reshape(k_h, w_in * cin, 2, wo * cout)
    t = jnp.zeros((k_h, lane, 2, lane), jnp.float32)
    t = t.at[:, :w_in * cin, :, :wo * cout].set(g)
    return t.reshape(k_h * lane, 2 * lane), wo


def _bias_row(bvec, wo, lane=LANE):
    """Conv bias tiled over pooled width, zero-padded to a full 128-lane row."""
    bvec = bvec.reshape(1, -1)
    row = jnp.zeros((1, lane), jnp.float32)
    return row.at[:, :wo * bvec.shape[1]].set(jnp.tile(bvec, (1, wo)))


# ---------------------------------------------------------------------------
# Fused whole-network kernel
# ---------------------------------------------------------------------------
def _hcg_kernel(x_ref,
                t1_ref, b1_ref, t2_ref, b2_ref, t3_ref, b3_ref, t4_ref, b4_ref,
                g0_wih, g0_whh, g0_bih, g0_bhh,
                g1_wih, g1_whh, g1_bih, g1_bhh,
                w1d1_ref, b1d1_ref, fc2w_ref, fc2b_ref,
                d2w_ref, d2b_ref, d3w_ref, d3b_ref,
                pred_ref, dom_ref,
                pad_scr,
                *, B, C, conv_cfg, hidden, fc1_out, xblk, sblk):
    f32, bf16 = jnp.float32, jnp.bfloat16

    def rows(ref, start, count, stride):
        if stride == 1:
            return ref[pl.ds(start, count), :]
        return ref[pl.ds(start, count, stride=stride), :]

    def conv_matmul(src_ref, blk, hs, stride, t_ref, bias_ref):
        # im2row: the KH taps sit side-by-side along K in 128-lane-aligned blocks;
        # the B batch elements are stacked along M -> ONE MXU matmul per layer.
        lhs = jnp.concatenate(
            [jnp.concatenate(
                [rows(src_ref, b * blk + kh, hs, stride).astype(bf16) for kh in range(KH)],
                axis=1)
             for b in range(B)], axis=0)                               # (B*hs, KH*LANE) bf16
        acc = jnp.dot(lhs, t_ref[...], preferred_element_type=f32)     # (B*hs, 2*LANE) f32
        # width MaxPool2d(., 2): the two parity halves are aligned 128-lane blocks
        return jnp.maximum(acc[:, :LANE], acc[:, LANE:]) + bias_ref[...]

    # ---- conv1 + pool1: taps read straight from the host-row-padded input ----
    # (MaxPool2d((1,2), stride=2) has kernel height 1 -> row SUBSAMPLING is exact,
    #  so only surviving conv rows are ever computed.)
    _, hs, stride = conv_cfg[0]
    act = conv_matmul(x_ref, xblk, hs, stride, t1_ref, b1_ref)         # (B*ho1, LANE)

    # hoisted: the 2 top 'same'-pad rows of each scratch block are zeroed once
    for b in range(B):
        pad_scr[b * sblk:b * sblk + 2, :] = jnp.zeros((2, LANE), f32)

    prev_h = -1
    for (t_ref, bias_ref), (h_in, hs, stride) in zip(
            ((t2_ref, b2_ref), (t3_ref, b3_ref), (t4_ref, b4_ref)), conv_cfg[1:]):
        for b in range(B):
            if h_in != prev_h:   # bottom pad rows are already zero when the height repeats
                pad_scr[b * sblk + 2 + h_in:b * sblk + 4 + h_in, :] = jnp.zeros((2, LANE), f32)
            pad_scr[b * sblk + 2:b * sblk + 2 + h_in, :] = act[b * h_in:(b + 1) * h_in, :]
        prev_h = h_in
        act = conv_matmul(pad_scr, sblk, hs, stride, t_ref, bias_ref)

    # ---- 2-layer GRU: seq axis = original batch B, "batch" = conv channels ----
    gru_in = conv_cfg[-1][1]
    # hidden[:, :, :, 0]: keep width index 0 (columns [0:C]) and transpose to (C, gru_in)
    x_cat = jnp.concatenate(
        [act[b * gru_in:(b + 1) * gru_in, :C].T for b in range(B)], axis=0)   # (B*C, gru_in)

    def gru_layer(x_in, wih, whh, bih, bhh, last_row_only):
        # hoisted input projection: one matmul over all (seq, channel) rows
        gi_all = jnp.dot(x_in.astype(bf16), wih[...], preferred_element_type=f32) + bih[...]
        h = jnp.zeros((C, hidden), f32)
        outs = []
        for t in range(B):
            gi = gi_all[t * C:(t + 1) * C]
            gh = jnp.dot(h.astype(bf16), whh[...], preferred_element_type=f32) + bhh[...]
            r = jax.nn.sigmoid(gi[:, :hidden] + gh[:, :hidden])
            z = jax.nn.sigmoid(gi[:, hidden:2 * hidden] + gh[:, hidden:2 * hidden])
            n = jnp.tanh(gi[:, 2 * hidden:] + r * gh[:, 2 * hidden:])
            h = (1.0 - z) * n + z * h
            # gru_out[:, -1, :] only needs channel C-1 -> collect it directly
            outs.append(h[C - 1:C, :] if last_row_only else h)
        return jnp.concatenate(outs, axis=0)

    y = gru_layer(x_cat, g0_wih, g0_whh, g0_bih, g0_bhh, last_row_only=False)   # (B*C, H)
    feat = gru_layer(y, g1_wih, g1_whh, g1_bih, g1_bhh, last_row_only=True)     # (B, H)

    # ---- head: fc1 and discriminator-linear-1 share the left operand ----
    h1d1 = jnp.dot(feat.astype(bf16), w1d1_ref[...], preferred_element_type=f32) + b1d1_ref[...]
    h1 = jnp.maximum(h1d1[:, :fc1_out], 0.0)                          # ReLU
    pred_ref[...] = (jnp.dot(h1.astype(bf16), fc2w_ref[...], preferred_element_type=f32)
                     + fc2b_ref[...])

    def lrelu(v):
        return jnp.where(v >= 0.0, v, 0.01 * v)                       # LeakyReLU(0.01)

    # discriminator (GradientReverseLayer == identity in forward, BN folded into weights)
    d = lrelu(h1d1[:, fc1_out:])
    d = lrelu(jnp.dot(d.astype(bf16), d2w_ref[...], preferred_element_type=f32) + d2b_ref[...])
    d = lrelu(jnp.dot(d.astype(bf16), d3w_ref[...], preferred_element_type=f32) + d3b_ref[...])
    d = d - jnp.max(d, axis=1, keepdims=True)                         # Softmax(dim=1)
    e = jnp.exp(d)
    dom_ref[...] = e / jnp.sum(e, axis=1, keepdims=True)


# ---------------------------------------------------------------------------
# Full forward (host-side weight reshaping + one pallas_call)
# ---------------------------------------------------------------------------
def hcg_forward(params, X, mask=None):
    del mask  # unused by the reference forward
    bf16 = jnp.bfloat16
    # X: (b, l, n, d) -> keep feature channel 0 (X[:, :, :, [0]] then 'b l n d -> b d l n')
    x0 = X[:, :, :, 0].astype(jnp.float32)                   # (B, L, N), Cin = 1
    B, L, W0 = x0.shape
    C = params["conv1_w"].shape[-1]
    hidden = params["gru0_whh"].shape[0]
    fc1_out = params["fc1_w"].shape[1]
    out_len = params["fc2_w"].shape[1]

    # conv weights -> lane-padded width-Toeplitz matrices (bf16) + bias rows (f32)
    t1, wo1 = _conv_toeplitz(params["conv1_w"], W0)
    t2, wo2 = _conv_toeplitz(params["conv2_w"], wo1)
    t3, wo3 = _conv_toeplitz(params["conv3_w"], wo2)
    t4, wo4 = _conv_toeplitz(params["conv4_w"], wo3)
    b1 = _bias_row(params["conv1_b"], wo1)
    b2 = _bias_row(params["conv2_b"], wo2)
    b3 = _bias_row(params["conv3_b"], wo3)
    b4 = _bias_row(params["conv4_b"], wo4)

    # heights: MaxPool2d((1,2), stride=2) subsamples rows (kernel height 1, floor formula);
    # layers 3/4 use stride (1,2) so the height is unchanged.
    ho1 = (L - 1) // 2 + 1
    ho2 = (ho1 - 1) // 2 + 1
    ho3, ho4 = ho2, ho2
    conv_cfg = ((L, ho1, 2), (ho1, ho2, 2), (ho2, ho3, 1), (ho3, ho4, 1))
    assert ho4 == params["gru0_wih"].shape[0], "GRU input_size must equal conv output height"

    # input: lane-pad to 128, add the 2-row top/bottom 'same' pad, flatten batch blocks
    xblk = L + 4
    x_p = jnp.zeros((B, xblk, LANE), jnp.float32).at[:, 2:2 + L, :W0].set(x0)
    x_p = x_p.reshape(B * xblk, LANE)
    sblk = ((ho1 + 4 + 7) // 8) * 8                          # scratch block rows per batch

    # fc1 and disc-linear-1 share the feat operand -> fuse into one weight matrix
    w1d1 = jnp.concatenate([params["fc1_w"], params["d1_w"]], axis=1).astype(bf16)
    b1d1 = jnp.concatenate([params["fc1_b"], params["d1_b"]], axis=1)

    kernel = functools.partial(_hcg_kernel, B=B, C=C, conv_cfg=conv_cfg, hidden=hidden,
                               fc1_out=fc1_out, xblk=xblk, sblk=sblk)
    return pl.pallas_call(
        kernel,
        out_shape=(jax.ShapeDtypeStruct((B, out_len), jnp.float32),
                   jax.ShapeDtypeStruct((B, 2), jnp.float32)),
        scratch_shapes=[pltpu.VMEM((B * sblk, LANE), jnp.float32)],
    )(x_p,
      t1.astype(bf16), b1, t2.astype(bf16), b2, t3.astype(bf16), b3, t4.astype(bf16), b4,
      params["gru0_wih"].astype(bf16), params["gru0_whh"].astype(bf16),
      params["gru0_bih"], params["gru0_bhh"],
      params["gru1_wih"].astype(bf16), params["gru1_whh"].astype(bf16),
      params["gru1_bih"], params["gru1_bhh"],
      w1d1, b1d1, params["fc2_w"].astype(bf16), params["fc2_b"],
      params["d2_w"].astype(bf16), params["d2_b"],
      params["d3_w"].astype(bf16), params["d3_b"])


# ---------------------------------------------------------------------------
# Deterministic parameter init (synthetic; shapes from HCG.__init__)
# ---------------------------------------------------------------------------
def init_params(key, conv_channels=8, hidden_size=32, out_len=16, gru_in=32):
    keys = iter(jax.random.split(key, 32))

    def unif(k, shape, fan_in):
        bound = 1.0 / (fan_in ** 0.5)
        return jax.random.uniform(k, shape, jnp.float32, -bound, bound)

    p = {}
    # conv1 in_channels = 1 (the forward keeps only feature channel 0)
    p["conv1_w"] = unif(next(keys), (KH, KW, 1, conv_channels), 1 * KH * KW)
    p["conv1_b"] = unif(next(keys), (1, conv_channels), 1 * KH * KW)
    for i in (2, 3, 4):
        p[f"conv{i}_w"] = unif(next(keys), (KH, KW, conv_channels, conv_channels),
                               conv_channels * KH * KW)
        p[f"conv{i}_b"] = unif(next(keys), (1, conv_channels), conv_channels * KH * KW)

    def gru_params(k, in_dim, hid):
        k1, k2, k3, k4 = jax.random.split(k, 4)
        # gates concatenated r|z|n along the last axis (PyTorch order)
        return {"wih": unif(k1, (in_dim, 3 * hid), hid),
                "whh": unif(k2, (hid, 3 * hid), hid),
                "bih": unif(k3, (1, 3 * hid), hid),
                "bhh": unif(k4, (1, 3 * hid), hid)}

    for name, (kk, in_dim) in (("gru0", (next(keys), gru_in)),
                               ("gru1", (next(keys), hidden_size))):
        for pname, v in gru_params(kk, in_dim, hidden_size).items():
            p[f"{name}_{pname}"] = v

    p["fc1_w"] = unif(next(keys), (hidden_size, 512), hidden_size)
    p["fc1_b"] = unif(next(keys), (1, 512), hidden_size)
    p["fc2_w"] = unif(next(keys), (512, out_len), 512)
    p["fc2_b"] = unif(next(keys), (1, out_len), 512)

    # Discriminator linears with eval-mode BatchNorm1d folded in:
    # gamma=1, beta=0, running_mean=0, running_var=1 -> scale = 1/sqrt(1+eps), shift = 0
    bn_scale = 1.0 / ((1.0 + 1e-5) ** 0.5)

    def disc_linear(k, i, o):
        kw_, kb_ = jax.random.split(k)
        return unif(kw_, (i, o), i) * bn_scale, unif(kb_, (1, o), i) * bn_scale

    p["d1_w"], p["d1_b"] = disc_linear(next(keys), hidden_size, 128)
    p["d2_w"], p["d2_b"] = disc_linear(next(keys), 128, 64)
    p["d3_w"], p["d3_b"] = disc_linear(next(keys), 64, 2)
    return p


if __name__ == "__main__":
    key = jax.random.PRNGKey(0)
    kx, kp = jax.random.split(key)

    # X: (b, l, n, d).  GRU input_size=32 is hard-coded in the module, which forces
    # l = 128 (two stride-2 row pools -> 128/4 = 32 features fed to the GRU).
    B, L, N, D = 2, 128, 16, 3
    CONV_CH, HIDDEN, OUT_LEN = 8, 32, 16

    X = jax.random.normal(kx, (B, L, N, D), jnp.float32)
    mask = jnp.ones((B, L), jnp.float32)          # unused, as in the reference forward
    params = init_params(kp, conv_channels=CONV_CH, hidden_size=HIDDEN, out_len=OUT_LEN)

    fwd = jax.jit(hcg_forward)
    predict, domain = fwd(params, X, mask)
    jax.block_until_ready((predict, domain))

    assert predict.shape == (B, OUT_LEN), predict.shape
    assert domain.shape == (B, 2), domain.shape
    assert bool(jnp.all(jnp.isfinite(predict))) and bool(jnp.all(jnp.isfinite(domain)))
    print("KERNEL_OK")
</pallas_src>

<mosaic_0001>
module attributes {stable_mosaic.version = 11 : i64} {
  func.func @_hcg_kernel(%arg0: memref<264x128xf32, #tpu.memory_space<vmem>>, %arg1: memref<640x256xbf16, #tpu.memory_space<vmem>>, %arg2: memref<1x128xf32, #tpu.memory_space<vmem>>, %arg3: memref<640x256xbf16, #tpu.memory_space<vmem>>, %arg4: memref<1x128xf32, #tpu.memory_space<vmem>>, %arg5: memref<640x256xbf16, #tpu.memory_space<vmem>>, %arg6: memref<1x128xf32, #tpu.memory_space<vmem>>, %arg7: memref<640x256xbf16, #tpu.memory_space<vmem>>, %arg8: memref<1x128xf32, #tpu.memory_space<vmem>>, %arg9: memref<32x96xbf16, #tpu.memory_space<vmem>>, %arg10: memref<32x96xbf16, #tpu.memory_space<vmem>>, %arg11: memref<1x96xf32, #tpu.memory_space<vmem>>, %arg12: memref<1x96xf32, #tpu.memory_space<vmem>>, %arg13: memref<32x96xbf16, #tpu.memory_space<vmem>>, %arg14: memref<32x96xbf16, #tpu.memory_space<vmem>>, %arg15: memref<1x96xf32, #tpu.memory_space<vmem>>, %arg16: memref<1x96xf32, #tpu.memory_space<vmem>>, %arg17: memref<32x640xbf16, #tpu.memory_space<vmem>>, %arg18: memref<1x640xf32, #tpu.memory_space<vmem>>, %arg19: memref<512x16xbf16, #tpu.memory_space<vmem>>, %arg20: memref<1x16xf32, #tpu.memory_space<vmem>>, %arg21: memref<128x64xbf16, #tpu.memory_space<vmem>>, %arg22: memref<1x64xf32, #tpu.memory_space<vmem>>, %arg23: memref<64x2xbf16, #tpu.memory_space<vmem>>, %arg24: memref<1x2xf32, #tpu.memory_space<vmem>>, %arg25: memref<2x16xf32, #tpu.memory_space<vmem>>, %arg26: memref<2x2xf32, #tpu.memory_space<vmem>>, %arg27: memref<144x128xf32, #tpu.memory_space<vmem>>) attributes {dimension_semantics = [], scalar_prefetch = 0 : i64, scratch_operands = 1 : i64, tpu.core_type = #tpu.core_type<tc>} {
    %c0 = arith.constant 0 : index
    %c0_0 = arith.constant 0 : index
    %0 = tpu.strided_load %arg0[%c0, %c0_0] {strides = array<i32: 2, 1>} : memref<264x128xf32, #tpu.memory_space<vmem>>, vector<64x128xf32>
    %1 = arith.truncf %0 : vector<64x128xf32> to vector<64x128xbf16>
    %c1 = arith.constant 1 : index
    %c0_1 = arith.constant 0 : index
    %2 = tpu.strided_load %arg0[%c1, %c0_1] {strides = array<i32: 2, 1>} : memref<264x128xf32, #tpu.memory_space<vmem>>, vector<64x128xf32>
    %3 = arith.truncf %2 : vector<64x128xf32> to vector<64x128xbf16>
    %c2 = arith.constant 2 : index
    %c0_2 = arith.constant 0 : index
    %4 = tpu.strided_load %arg0[%c2, %c0_2] {strides = array<i32: 2, 1>} : memref<264x128xf32, #tpu.memory_space<vmem>>, vector<64x128xf32>
    %5 = arith.truncf %4 : vector<64x128xf32> to vector<64x128xbf16>
    %c3 = arith.constant 3 : index
    %c0_3 = arith.constant 0 : index
    %6 = tpu.strided_load %arg0[%c3, %c0_3] {strides = array<i32: 2, 1>} : memref<264x128xf32, #tpu.memory_space<vmem>>, vector<64x128xf32>
    %7 = arith.truncf %6 : vector<64x128xf32> to vector<64x128xbf16>
    %c4 = arith.constant 4 : index
    %c0_4 = arith.constant 0 : index
    %8 = tpu.strided_load %arg0[%c4, %c0_4] {strides = array<i32: 2, 1>} : memref<264x128xf32, #tpu.memory_space<vmem>>, vector<64x128xf32>
    %9 = arith.truncf %8 : vector<64x128xf32> to vector<64x128xbf16>
    %10 = tpu.concatenate %1, %3, %5, %7, %9 in 1 : vector<64x128xbf16>, vector<64x128xbf16>, vector<64x128xbf16>, vector<64x128xbf16>, vector<64x128xbf16> -> vector<64x640xbf16>
    %c132 = arith.constant 132 : index
    %c0_5 = arith.constant 0 : index
    %11 = tpu.strided_load %arg0[%c132, %c0_5] {strides = array<i32: 2, 1>} : memref<264x128xf32, #tpu.memory_space<vmem>>, vector<64x128xf32>
    %12 = arith.truncf %11 : vector<64x128xf32> to vector<64x128xbf16>
    %c133 = arith.constant 133 : index
    %c0_6 = arith.constant 0 : index
    %13 = tpu.strided_load %arg0[%c133, %c0_6] {strides = array<i32: 2, 1>} : memref<264x128xf32, #tpu.memory_space<vmem>>, vector<64x128xf32>
    %14 = arith.truncf %13 : vector<64x128xf32> to vector<64x128xbf16>
    %c134 = arith.constant 134 : index
    %c0_7 = arith.constant 0 : index
    %15 = tpu.strided_load %arg0[%c134, %c0_7] {strides = array<i32: 2, 1>} : memref<264x128xf32, #tpu.memory_space<vmem>>, vector<64x128xf32>
    %16 = arith.truncf %15 : vector<64x128xf32> to vector<64x128xbf16>
    %c135 = arith.constant 135 : index
    %c0_8 = arith.constant 0 : index
    %17 = tpu.strided_load %arg0[%c135, %c0_8] {strides = array<i32: 2, 1>} : memref<264x128xf32, #tpu.memory_space<vmem>>, vector<64x128xf32>
    %18 = arith.truncf %17 : vector<64x128xf32> to vector<64x128xbf16>
    %c136 = arith.constant 136 : index
    %c0_9 = arith.constant 0 : index
    %19 = tpu.strided_load %arg0[%c136, %c0_9] {strides = array<i32: 2, 1>} : memref<264x128xf32, #tpu.memory_space<vmem>>, vector<64x128xf32>
    %20 = arith.truncf %19 : vector<64x128xf32> to vector<64x128xbf16>
    %21 = tpu.concatenate %12, %14, %16, %18, %20 in 1 : vector<64x128xbf16>, vector<64x128xbf16>, vector<64x128xbf16>, vector<64x128xbf16>, vector<64x128xbf16> -> vector<64x640xbf16>
    %22 = tpu.concatenate %10, %21 in 0 : vector<64x640xbf16>, vector<64x640xbf16> -> vector<128x640xbf16>
    %c0_10 = arith.constant 0 : index
    %c0_11 = arith.constant 0 : index
    %23 = vector.load %arg1[%c0_10, %c0_11] : memref<640x256xbf16, #tpu.memory_space<vmem>>, vector<640x256xbf16>
    %cst = arith.constant dense<0.000000e+00> : vector<128x256xf32>
    %24 = tpu.matmul %22, %23, %cst {dimension_numbers = #tpu.dot_dimension_numbers<[1], [0], [0], [1], [0, 0, 1, 1], [], []>} : vector<128x640xbf16>, vector<640x256xbf16>, vector<128x256xf32> -> vector<128x256xf32>
    %25 = vector.extract_strided_slice %24 {offsets = [0, 0], sizes = [128, 128], strides = [1, 1]} : vector<128x256xf32> to vector<128x128xf32>
    %26 = vector.extract_strided_slice %24 {offsets = [0, 128], sizes = [128, 128], strides = [1, 1]} : vector<128x256xf32> to vector<128x128xf32>
    %27 = arith.maximumf %25, %26 : vector<128x128xf32>
    %c0_12 = arith.constant 0 : index
    %c0_13 = arith.constant 0 : index
    %28 = vector.load %arg2[%c0_12, %c0_13] : memref<1x128xf32, #tpu.memory_space<vmem>>, vector<1x128xf32>
    %29 = vector.broadcast %28 : vector<1x128xf32> to vector<128x128xf32>
    %30 = arith.addf %27, %29 : vector<128x128xf32>
    %cst_14 = arith.constant 0.000000e+00 : f32
    %31 = vector.broadcast %cst_14 : f32 to vector<2x128xf32>
    %c0_15 = arith.constant 0 : index
    %c0_16 = arith.constant 0 : index
    %32 = vector.load %arg27[%c0_15, %c0_16] : memref<144x128xf32, #tpu.memory_space<vmem>>, vector<2x128xf32>
    tpu.vector_store %arg27[%c0_15, %c0_16], %31 {strides = array<i32>} : memref<144x128xf32, #tpu.memory_space<vmem>>, vector<2x128xf32>,
    %cst_17 = arith.constant 0.000000e+00 : f32
    %33 = vector.broadcast %cst_17 : f32 to vector<2x128xf32>
    %c72 = arith.constant 72 : index
    %c0_18 = arith.constant 0 : index
    %34 = vector.load %arg27[%c72, %c0_18] : memref<144x128xf32, #tpu.memory_space<vmem>>, vector<2x128xf32>
    tpu.vector_store %arg27[%c72, %c0_18], %33 {strides = array<i32>} : memref<144x128xf32, #tpu.memory_space<vmem>>, vector<2x128xf32>,
    %cst_19 = arith.constant 0.000000e+00 : f32
    %35 = vector.broadcast %cst_19 : f32 to vector<2x128xf32>
    %c66 = arith.constant 66 : index
    %c0_20 = arith.constant 0 : index
    %36 = vector.load %arg27[%c66, %c0_20] : memref<144x128xf32, #tpu.memory_space<vmem>>, vector<2x128xf32>
    tpu.vector_store %arg27[%c66, %c0_20], %35 {strides = array<i32>} : memref<144x128xf32, #tpu.memory_space<vmem>>, vector<2x128xf32>,
    %37 = vector.extract_strided_slice %30 {offsets = [0, 0], sizes = [64, 128], strides = [1, 1]} : vector<128x128xf32> to vector<64x128xf32>
    %c2_21 = arith.constant 2 : index
    %c0_22 = arith.constant 0 : index
    %38 = vector.load %arg27[%c2_21, %c0_22] : memref<144x128xf32, #tpu.memory_space<vmem>>, vector<64x128xf32>
    tpu.vector_store %arg27[%c2_21, %c0_22], %37 {strides = array<i32>} : memref<144x128xf32, #tpu.memory_space<vmem>>, vector<64x128xf32>,
    %cst_23 = arith.constant 0.000000e+00 : f32
    %39 = vector.broadcast %cst_23 : f32 to vector<2x128xf32>
    %c138 = arith.constant 138 : index
    %c0_24 = arith.constant 0 : index
    %40 = vector.load %arg27[%c138, %c0_24] : memref<144x128xf32, #tpu.memory_space<vmem>>, vector<2x128xf32>
    tpu.vector_store %arg27[%c138, %c0_24], %39 {strides = array<i32>} : memref<144x128xf32, #tpu.memory_space<vmem>>, vector<2x128xf32>,
    %41 = vector.extract_strided_slice %30 {offsets = [64, 0], sizes = [64, 128], strides = [1, 1]} : vector<128x128xf32> to vector<64x128xf32>
    %c74 = arith.constant 74 : index
    %c0_25 = arith.constant 0 : index
    %42 = vector.load %arg27[%c74, %c0_25] : memref<144x128xf32, #tpu.memory_space<vmem>>, vector<64x128xf32>
    tpu.vector_store %arg27[%c74, %c0_25], %41 {strides = array<i32>} : memref<144x128xf32, #tpu.memory_space<vmem>>, vector<64x128xf32>,
    %c0_26 = arith.constant 0 : index
    %c0_27 = arith.constant 0 : index
    %43 = tpu.strided_load %arg27[%c0_26, %c0_27] {strides = array<i32: 2, 1>} : memref<144x128xf32, #tpu.memory_space<vmem>>, vector<32x128xf32>
    %44 = arith.truncf %43 : vector<32x128xf32> to vector<32x128xbf16>
    %c1_28 = arith.constant 1 : index
    %c0_29 = arith.constant 0 : index
    %45 = tpu.strided_load %arg27[%c1_28, %c0_29] {strides = array<i32: 2, 1>} : memref<144x128xf32, #tpu.memory_space<vmem>>, vector<32x128xf32>
    %46 = arith.truncf %45 : vector<32x128xf32> to vector<32x128xbf16>
    %c2_30 = arith.constant 2 : index
    %c0_31 = arith.constant 0 : index
    %47 = tpu.strided_load %arg27[%c2_30, %c0_31] {strides = array<i32: 2, 1>} : memref<144x128xf32, #tpu.memory_space<vmem>>, vector<32x128xf32>
    %48 = arith.truncf %47 : vector<32x128xf32> to vector<32x128xbf16>
    %c3_32 = arith.constant 3 : index
    %c0_33 = arith.constant 0 : index
    %49 = tpu.strided_load %arg27[%c3_32, %c0_33] {strides = array<i32: 2, 1>} : memref<144x128xf32, #tpu.memory_space<vmem>>, vector<32x128xf32>
    %50 = arith.truncf %49 : vector<32x128xf32> to vector<32x128xbf16>
    %c4_34 = arith.constant 4 : index
    %c0_35 = arith.constant 0 : index
    %51 = tpu.strided_load %arg27[%c4_34, %c0_35] {strides = array<i32: 2, 1>} : memref<144x128xf32, #tpu.memory_space<vmem>>, vector<32x128xf32>
    %52 = arith.truncf %51 : vector<32x128xf32> to vector<32x128xbf16>
    %53 = tpu.concatenate %44, %46, %48, %50, %52 in 1 : vector<32x128xbf16>, vector<32x128xbf16>, vector<32x128xbf16>, vector<32x128xbf16>, vector<32x128xbf16> -> vector<32x640xbf16>
    %c72_36 = arith.constant 72 : index
    %c0_37 = arith.constant 0 : index
    %54 = tpu.strided_load %arg27[%c72_36, %c0_37] {strides = array<i32: 2, 1>} : memref<144x128xf32, #tpu.memory_space<vmem>>, vector<32x128xf32>
    %55 = arith.truncf %54 : vector<32x128xf32> to vector<32x128xbf16>
    %c73 = arith.constant 73 : index
    %c0_38 = arith.constant 0 : index
    %56 = tpu.strided_load %arg27[%c73, %c0_38] {strides = array<i32: 2, 1>} : memref<144x128xf32, #tpu.memory_space<vmem>>, vector<32x128xf32>
    %57 = arith.truncf %56 : vector<32x128xf32> to vector<32x128xbf16>
    %c74_39 = arith.constant 74 : index
    %c0_40 = arith.constant 0 : index
    %58 = tpu.strided_load %arg27[%c74_39, %c0_40] {strides = array<i32: 2, 1>} : memref<144x128xf32, #tpu.memory_space<vmem>>, vector<32x128xf32>
    %59 = arith.truncf %58 : vector<32x128xf32> to vector<32x128xbf16>
    %c75 = arith.constant 75 : index
    %c0_41 = arith.constant 0 : index
    %60 = tpu.strided_load %arg27[%c75, %c0_41] {strides = array<i32: 2, 1>} : memref<144x128xf32, #tpu.memory_space<vmem>>, vector<32x128xf32>
    %61 = arith.truncf %60 : vector<32x128xf32> to vector<32x128xbf16>
    %c76 = arith.constant 76 : index
    %c0_42 = arith.constant 0 : index
    %62 = tpu.strided_load %arg27[%c76, %c0_42] {strides = array<i32: 2, 1>} : memref<144x128xf32, #tpu.memory_space<vmem>>, vector<32x128xf32>
    %63 = arith.truncf %62 : vector<32x128xf32> to vector<32x128xbf16>
    %64 = tpu.concatenate %55, %57, %59, %61, %63 in 1 : vector<32x128xbf16>, vector<32x128xbf16>, vector<32x128xbf16>, vector<32x128xbf16>, vector<32x128xbf16> -> vector<32x640xbf16>
    %65 = tpu.concatenate %53, %64 in 0 : vector<32x640xbf16>, vector<32x640xbf16> -> vector<64x640xbf16>
    %c0_43 = arith.constant 0 : index
    %c0_44 = arith.constant 0 : index
    %66 = vector.load %arg3[%c0_43, %c0_44] : memref<640x256xbf16, #tpu.memory_space<vmem>>, vector<640x256xbf16>
    %cst_45 = arith.constant dense<0.000000e+00> : vector<64x256xf32>
    %67 = tpu.matmul %65, %66, %cst_45 {dimension_numbers = #tpu.dot_dimension_numbers<[1], [0], [0], [1], [0, 0, 1, 1], [], []>} : vector<64x640xbf16>, vector<640x256xbf16>, vector<64x256xf32> -> vector<64x256xf32>
    %68 = vector.extract_strided_slice %67 {offsets = [0, 0], sizes = [64, 128], strides = [1, 1]} : vector<64x256xf32> to vector<64x128xf32>
    %69 = vector.extract_strided_slice %67 {offsets = [0, 128], sizes = [64, 128], strides = [1, 1]} : vector<64x256xf32> to vector<64x128xf32>
    %70 = arith.maximumf %68, %69 : vector<64x128xf32>
    %c0_46 = arith.constant 0 : index
    %c0_47 = arith.constant 0 : index
    %71 = vector.load %arg4[%c0_46, %c0_47] : memref<1x128xf32, #tpu.memory_space<vmem>>, vector<1x128xf32>
    %72 = vector.broadcast %71 : vector<1x128xf32> to vector<64x128xf32>
    %73 = arith.addf %70, %72 : vector<64x128xf32>
    %cst_48 = arith.constant 0.000000e+00 : f32
    %74 = vector.broadcast %cst_48 : f32 to vector<2x128xf32>
    %c34 = arith.constant 34 : index
    %c0_49 = arith.constant 0 : index
    %75 = vector.load %arg27[%c34, %c0_49] : memref<144x128xf32, #tpu.memory_space<vmem>>, vector<2x128xf32>
    tpu.vector_store %arg27[%c34, %c0_49], %74 {strides = array<i32>} : memref<144x128xf32, #tpu.memory_space<vmem>>, vector<2x128xf32>,
    %76 = vector.extract_strided_slice %73 {offsets = [0, 0], sizes = [32, 128], strides = [1, 1]} : vector<64x128xf32> to vector<32x128xf32>
    %c2_50 = arith.constant 2 : index
    %c0_51 = arith.constant 0 : index
    %77 = vector.load %arg27[%c2_50, %c0_51] : memref<144x128xf32, #tpu.memory_space<vmem>>, vector<32x128xf32>
    tpu.vector_store %arg27[%c2_50, %c0_51], %76 {strides = array<i32>} : memref<144x128xf32, #tpu.memory_space<vmem>>, vector<32x128xf32>,
    %cst_52 = arith.constant 0.000000e+00 : f32
    %78 = vector.broadcast %cst_52 : f32 to vector<2x128xf32>
    %c106 = arith.constant 106 : index
    %c0_53 = arith.constant 0 : index
    %79 = vector.load %arg27[%c106, %c0_53] : memref<144x128xf32, #tpu.memory_space<vmem>>, vector<2x128xf32>
    tpu.vector_store %arg27[%c106, %c0_53], %78 {strides = array<i32>} : memref<144x128xf32, #tpu.memory_space<vmem>>, vector<2x128xf32>,
    %80 = vector.extract_strided_slice %73 {offsets = [32, 0], sizes = [32, 128], strides = [1, 1]} : vector<64x128xf32> to vector<32x128xf32>
    %c74_54 = arith.constant 74 : index
    %c0_55 = arith.constant 0 : index
    %81 = vector.load %arg27[%c74_54, %c0_55] : memref<144x128xf32, #tpu.memory_space<vmem>>, vector<32x128xf32>
    tpu.vector_store %arg27[%c74_54, %c0_55], %80 {strides = array<i32>} : memref<144x128xf32, #tpu.memory_space<vmem>>, vector<32x128xf32>,
    %c0_56 = arith.constant 0 : index
    %c0_57 = arith.constant 0 : index
    %82 = vector.load %arg27[%c0_56, %c0_57] : memref<144x128xf32, #tpu.memory_space<vmem>>, vector<32x128xf32>
    %83 = arith.truncf %82 : vector<32x128xf32> to vector<32x128xbf16>
    %c1_58 = arith.constant 1 : index
    %c0_59 = arith.constant 0 : index
    %84 = vector.load %arg27[%c1_58, %c0_59] : memref<144x128xf32, #tpu.memory_space<vmem>>, vector<32x128xf32>
    %85 = arith.truncf %84 : vector<32x128xf32> to vector<32x128xbf16>
    %c2_60 = arith.constant 2 : index
    %c0_61 = arith.constant 0 : index
    %86 = vector.load %arg27[%c2_60, %c0_61] : memref<144x128xf32, #tpu.memory_space<vmem>>, vector<32x128xf32>
    %87 = arith.truncf %86 : vector<32x128xf32> to vector<32x128xbf16>
    %c3_62 = arith.constant 3 : index
    %c0_63 = arith.constant 0 : index
    %88 = vector.load %arg27[%c3_62, %c0_63] : memref<144x128xf32, #tpu.memory_space<vmem>>, vector<32x128xf32>
    %89 = arith.truncf %88 : vector<32x128xf32> to vector<32x128xbf16>
    %c4_64 = arith.constant 4 : index
    %c0_65 = arith.constant 0 : index
    %90 = vector.load %arg27[%c4_64, %c0_65] : memref<144x128xf32, #tpu.memory_space<vmem>>, vector<32x128xf32>
    %91 = arith.truncf %90 : vector<32x128xf32> to vector<32x128xbf16>
    %92 = tpu.concatenate %83, %85, %87, %89, %91 in 1 : vector<32x128xbf16>, vector<32x128xbf16>, vector<32x128xbf16>, vector<32x128xbf16>, vector<32x128xbf16> -> vector<32x640xbf16>
    %c72_66 = arith.constant 72 : index
    %c0_67 = arith.constant 0 : index
    %93 = vector.load %arg27[%c72_66, %c0_67] : memref<144x128xf32, #tpu.memory_space<vmem>>, vector<32x128xf32>
    %94 = arith.truncf %93 : vector<32x128xf32> to vector<32x128xbf16>
    %c73_68 = arith.constant 73 : index
    %c0_69 = arith.constant 0 : index
    %95 = vector.load %arg27[%c73_68, %c0_69] : memref<144x128xf32, #tpu.memory_space<vmem>>, vector<32x128xf32>
    %96 = arith.truncf %95 : vector<32x128xf32> to vector<32x128xbf16>
    %c74_70 = arith.constant 74 : index
    %c0_71 = arith.constant 0 : index
    %97 = vector.load %arg27[%c74_70, %c0_71] : memref<144x128xf32, #tpu.memory_space<vmem>>, vector<32x128xf32>
    %98 = arith.truncf %97 : vector<32x128xf32> to vector<32x128xbf16>
    %c75_72 = arith.constant 75 : index
    %c0_73 = arith.constant 0 : index
    %99 = vector.load %arg27[%c75_72, %c0_73] : memref<144x128xf32, #tpu.memory_space<vmem>>, vector<32x128xf32>
    %100 = arith.truncf %99 : vector<32x128xf32> to vector<32x128xbf16>
    %c76_74 = arith.constant 76 : index
    %c0_75 = arith.constant 0 : index
    %101 = vector.load %arg27[%c76_74, %c0_75] : memref<144x128xf32, #tpu.memory_space<vmem>>, vector<32x128xf32>
    %102 = arith.truncf %101 : vector<32x128xf32> to vector<32x128xbf16>
    %103 = tpu.concatenate %94, %96, %98, %100, %102 in 1 : vector<32x128xbf16>, vector<32x128xbf16>, vector<32x128xbf16>, vector<32x128xbf16>, vector<32x128xbf16> -> vector<32x640xbf16>
    %104 = tpu.concatenate %92, %103 in 0 : vector<32x640xbf16>, vector<32x640xbf16> -> vector<64x640xbf16>
    %c0_76 = arith.constant 0 : index
    %c0_77 = arith.constant 0 : index
    %105 = vector.load %arg5[%c0_76, %c0_77] : memref<640x256xbf16, #tpu.memory_space<vmem>>, vector<640x256xbf16>
    %cst_78 = arith.constant dense<0.000000e+00> : vector<64x256xf32>
    %106 = tpu.matmul %104, %105, %cst_78 {dimension_numbers = #tpu.dot_dimension_numbers<[1], [0], [0], [1], [0, 0, 1, 1], [], []>} : vector<64x640xbf16>, vector<640x256xbf16>, vector<64x256xf32> -> vector<64x256xf32>
    %107 = vector.extract_strided_slice %106 {offsets = [0, 0], sizes = [64, 128], strides = [1, 1]} : vector<64x256xf32> to vector<64x128xf32>
    %108 = vector.extract_strided_slice %106 {offsets = [0, 128], sizes = [64, 128], strides = [1, 1]} : vector<64x256xf32> to vector<64x128xf32>
    %109 = arith.maximumf %107, %108 : vector<64x128xf32>
    %c0_79 = arith.constant 0 : index
    %c0_80 = arith.constant 0 : index
    %110 = vector.load %arg6[%c0_79, %c0_80] : memref<1x128xf32, #tpu.memory_space<vmem>>, vector<1x128xf32>
    %111 = vector.broadcast %110 : vector<1x128xf32> to vector<64x128xf32>
    %112 = arith.addf %109, %111 : vector<64x128xf32>
    %113 = vector.extract_strided_slice %112 {offsets = [0, 0], sizes = [32, 128], strides = [1, 1]} : vector<64x128xf32> to vector<32x128xf32>
    %c2_81 = arith.constant 2 : index
    %c0_82 = arith.constant 0 : index
    %114 = vector.load %arg27[%c2_81, %c0_82] : memref<144x128xf32, #tpu.memory_space<vmem>>, vector<32x128xf32>
    tpu.vector_store %arg27[%c2_81, %c0_82], %113 {strides = array<i32>} : memref<144x128xf32, #tpu.memory_space<vmem>>, vector<32x128xf32>,
    %115 = vector.extract_strided_slice %112 {offsets = [32, 0], sizes = [32, 128], strides = [1, 1]} : vector<64x128xf32> to vector<32x128xf32>
    %c74_83 = arith.constant 74 : index
    %c0_84 = arith.constant 0 : index
    %116 = vector.load %arg27[%c74_83, %c0_84] : memref<144x128xf32, #tpu.memory_space<vmem>>, vector<32x128xf32>
    tpu.vector_store %arg27[%c74_83, %c0_84], %115 {strides = array<i32>} : memref<144x128xf32, #tpu.memory_space<vmem>>, vector<32x128xf32>,
    %c0_85 = arith.constant 0 : index
    %c0_86 = arith.constant 0 : index
    %117 = vector.load %arg27[%c0_85, %c0_86] : memref<144x128xf32, #tpu.memory_space<vmem>>, vector<32x128xf32>
    %118 = arith.truncf %117 : vector<32x128xf32> to vector<32x128xbf16>
    %c1_87 = arith.constant 1 : index
    %c0_88 = arith.constant 0 : index
    %119 = vector.load %arg27[%c1_87, %c0_88] : memref<144x128xf32, #tpu.memory_space<vmem>>, vector<32x128xf32>
    %120 = arith.truncf %119 : vector<32x128xf32> to vector<32x128xbf16>
    %c2_89 = arith.constant 2 : index
    %c0_90 = arith.constant 0 : index
    %121 = vector.load %arg27[%c2_89, %c0_90] : memref<144x128xf32, #tpu.memory_space<vmem>>, vector<32x128xf32>
    %122 = arith.truncf %121 : vector<32x128xf32> to vector<32x128xbf16>
    %c3_91 = arith.constant 3 : index
    %c0_92 = arith.constant 0 : index
    %123 = vector.load %arg27[%c3_91, %c0_92] : memref<144x128xf32, #tpu.memory_space<vmem>>, vector<32x128xf32>
    %124 = arith.truncf %123 : vector<32x128xf32> to vector<32x128xbf16>
    %c4_93 = arith.constant 4 : index
    %c0_94 = arith.constant 0 : index
    %125 = vector.load %arg27[%c4_93, %c0_94] : memref<144x128xf32, #tpu.memory_space<vmem>>, vector<32x128xf32>
    %126 = arith.truncf %125 : vector<32x128xf32> to vector<32x128xbf16>
    %127 = tpu.concatenate %118, %120, %122, %124, %126 in 1 : vector<32x128xbf16>, vector<32x128xbf16>, vector<32x128xbf16>, vector<32x128xbf16>, vector<32x128xbf16> -> vector<32x640xbf16>
    %c72_95 = arith.constant 72 : index
    %c0_96 = arith.constant 0 : index
    %128 = vector.load %arg27[%c72_95, %c0_96] : memref<144x128xf32, #tpu.memory_space<vmem>>, vector<32x128xf32>
    %129 = arith.truncf %128 : vector<32x128xf32> to vector<32x128xbf16>
    %c73_97 = arith.constant 73 : index
    %c0_98 = arith.constant 0 : index
    %130 = vector.load %arg27[%c73_97, %c0_98] : memref<144x128xf32, #tpu.memory_space<vmem>>, vector<32x128xf32>
    %131 = arith.truncf %130 : vector<32x128xf32> to vector<32x128xbf16>
    %c74_99 = arith.constant 74 : index
    %c0_100 = arith.constant 0 : index
    %132 = vector.load %arg27[%c74_99, %c0_100] : memref<144x128xf32, #tpu.memory_space<vmem>>, vector<32x128xf32>
    %133 = arith.truncf %132 : vector<32x128xf32> to vector<32x128xbf16>
    %c75_101 = arith.constant 75 : index
    %c0_102 = arith.constant 0 : index
    %134 = vector.load %arg27[%c75_101, %c0_102] : memref<144x128xf32, #tpu.memory_space<vmem>>, vector<32x128xf32>
    %135 = arith.truncf %134 : vector<32x128xf32> to vector<32x128xbf16>
    %c76_103 = arith.constant 76 : index
    %c0_104 = arith.constant 0 : index
    %136 = vector.load %arg27[%c76_103, %c0_104] : memref<144x128xf32, #tpu.memory_space<vmem>>, vector<32x128xf32>
    %137 = arith.truncf %136 : vector<32x128xf32> to vector<32x128xbf16>
    %138 = tpu.concatenate %129, %131, %133, %135, %137 in 1 : vector<32x128xbf16>, vector<32x128xbf16>, vector<32x128xbf16>, vector<32x128xbf16>, vector<32x128xbf16> -> vector<32x640xbf16>
    %139 = tpu.concatenate %127, %138 in 0 : vector<32x640xbf16>, vector<32x640xbf16> -> vector<64x640xbf16>
    %c0_105 = arith.constant 0 : index
    %c0_106 = arith.constant 0 : index
    %140 = vector.load %arg7[%c0_105, %c0_106] : memref<640x256xbf16, #tpu.memory_space<vmem>>, vector<640x256xbf16>
    %cst_107 = arith.constant dense<0.000000e+00> : vector<64x256xf32>
    %141 = tpu.matmul %139, %140, %cst_107 {dimension_numbers = #tpu.dot_dimension_numbers<[1], [0], [0], [1], [0, 0, 1, 1], [], []>} : vector<64x640xbf16>, vector<640x256xbf16>, vector<64x256xf32> -> vector<64x256xf32>
    %142 = vector.extract_strided_slice %141 {offsets = [0, 0], sizes = [64, 128], strides = [1, 1]} : vector<64x256xf32> to vector<64x128xf32>
    %143 = vector.extract_strided_slice %141 {offsets = [0, 128], sizes = [64, 128], strides = [1, 1]} : vector<64x256xf32> to vector<64x128xf32>
    %144 = arith.maximumf %142, %143 : vector<64x128xf32>
    %c0_108 = arith.constant 0 : index
    %c0_109 = arith.constant 0 : index
    %145 = vector.load %arg8[%c0_108, %c0_109] : memref<1x128xf32, #tpu.memory_space<vmem>>, vector<1x128xf32>
    %146 = vector.broadcast %145 : vector<1x128xf32> to vector<64x128xf32>
    %147 = arith.addf %144, %146 : vector<64x128xf32>
    %148 = vector.extract_strided_slice %147 {offsets = [0, 0], sizes = [32, 8], strides = [1, 1]} : vector<64x128xf32> to vector<32x8xf32>
    %149 = tpu.transpose %148, [1, 0] : vector<32x8xf32> -> vector<8x32xf32>
    %150 = vector.extract_strided_slice %147 {offsets = [32, 0], sizes = [32, 8], strides = [1, 1]} : vector<64x128xf32> to vector<32x8xf32>
    %151 = tpu.transpose %150, [1, 0] : vector<32x8xf32> -> vector<8x32xf32>
    %152 = tpu.concatenate %149, %151 in 0 : vector<8x32xf32>, vector<8x32xf32> -> vector<16x32xf32>
    %153 = arith.truncf %152 : vector<16x32xf32> to vector<16x32xbf16>
    %c0_110 = arith.constant 0 : index
    %c0_111 = arith.constant 0 : index
    %154 = vector.load %arg9[%c0_110, %c0_111] : memref<32x96xbf16, #tpu.memory_space<vmem>>, vector<32x96xbf16>
    %cst_112 = arith.constant dense<0.000000e+00> : vector<16x96xf32>
    %155 = tpu.matmul %153, %154, %cst_112 {dimension_numbers = #tpu.dot_dimension_numbers<[1], [0], [0], [1], [0, 0, 1, 1], [], []>} : vector<16x32xbf16>, vector<32x96xbf16>, vector<16x96xf32> -> vector<16x96xf32>
    %c0_113 = arith.constant 0 : index
    %c0_114 = arith.constant 0 : index
    %156 = vector.load %arg11[%c0_113, %c0_114] : memref<1x96xf32, #tpu.memory_space<vmem>>, vector<1x96xf32>
    %157 = vector.broadcast %156 : vector<1x96xf32> to vector<16x96xf32>
    %158 = arith.addf %155, %157 : vector<16x96xf32>
    %cst_115 = arith.constant 0.000000e+00 : f32
    %159 = vector.broadcast %cst_115 : f32 to vector<8x32xf32>
    %160 = vector.extract_strided_slice %158 {offsets = [0, 0], sizes = [8, 96], strides = [1, 1]} : vector<16x96xf32> to vector<8x96xf32>
    %161 = arith.truncf %159 : vector<8x32xf32> to vector<8x32xbf16>
    %c0_116 = arith.constant 0 : index
    %c0_117 = arith.constant 0 : index
    %162 = vector.load %arg10[%c0_116, %c0_117] : memref<32x96xbf16, #tpu.memory_space<vmem>>, vector<32x96xbf16>
    %cst_118 = arith.constant dense<0.000000e+00> : vector<8x96xf32>
    %163 = tpu.matmul %161, %162, %cst_118 {dimension_numbers = #tpu.dot_dimension_numbers<[1], [0], [0], [1], [0, 0, 1, 1], [], []>} : vector<8x32xbf16>, vector<32x96xbf16>, vector<8x96xf32> -> vector<8x96xf32>
    %c0_119 = arith.constant 0 : index
    %c0_120 = arith.constant 0 : index
    %164 = vector.load %arg12[%c0_119, %c0_120] : memref<1x96xf32, #tpu.memory_space<vmem>>, vector<1x96xf32>
    %165 = vector.broadcast %164 : vector<1x96xf32> to vector<8x96xf32>
    %166 = arith.addf %163, %165 : vector<8x96xf32>
    %167 = vector.extract_strided_slice %160 {offsets = [0, 0], sizes = [8, 32], strides = [1, 1]} : vector<8x96xf32> to vector<8x32xf32>
    %168 = vector.extract_strided_slice %166 {offsets = [0, 0], sizes = [8, 32], strides = [1, 1]} : vector<8x96xf32> to vector<8x32xf32>
    %169 = arith.addf %167, %168 : vector<8x32xf32>
    %170 = arith.negf %169 : vector<8x32xf32>
    %171 = math.exp %170 : vector<8x32xf32>
    %cst_121 = arith.constant 1.000000e+00 : f32
    %172 = vector.broadcast %cst_121 : f32 to vector<8x32xf32>
    %173 = arith.addf %172, %171 : vector<8x32xf32>
    %174 = arith.divf %172, %173 : vector<8x32xf32>
    %175 = vector.extract_strided_slice %160 {offsets = [0, 32], sizes = [8, 32], strides = [1, 1]} : vector<8x96xf32> to vector<8x32xf32>
    %176 = vector.extract_strided_slice %166 {offsets = [0, 32], sizes = [8, 32], strides = [1, 1]} : vector<8x96xf32> to vector<8x32xf32>
    %177 = arith.addf %175, %176 : vector<8x32xf32>
    %178 = arith.negf %177 : vector<8x32xf32>
    %179 = math.exp %178 : vector<8x32xf32>
    %cst_122 = arith.constant 1.000000e+00 : f32
    %180 = vector.broadcast %cst_122 : f32 to vector<8x32xf32>
    %181 = arith.addf %180, %179 : vector<8x32xf32>
    %182 = arith.divf %180, %181 : vector<8x32xf32>
    %183 = vector.extract_strided_slice %160 {offsets = [0, 64], sizes = [8, 32], strides = [1, 1]} : vector<8x96xf32> to vector<8x32xf32>
    %184 = vector.extract_strided_slice %166 {offsets = [0, 64], sizes = [8, 32], strides = [1, 1]} : vector<8x96xf32> to vector<8x32xf32>
    %185 = arith.mulf %174, %184 : vector<8x32xf32>
    %186 = arith.addf %183, %185 : vector<8x32xf32>
    %187 = math.tanh %186 : vector<8x32xf32>
    %cst_123 = arith.constant 1.000000e+00 : f32
    %188 = vector.broadcast %cst_123 : f32 to vector<8x32xf32>
    %189 = arith.subf %188, %182 : vector<8x32xf32>
    %190 = arith.mulf %189, %187 : vector<8x32xf32>
    %191 = arith.mulf %182, %159 : vector<8x32xf32>
    %192 = arith.addf %190, %191 : vector<8x32xf32>
    %193 = vector.extract_strided_slice %158 {offsets = [8, 0], sizes = [8, 96], strides = [1, 1]} : vector<16x96xf32> to vector<8x96xf32>
    %194 = arith.truncf %192 : vector<8x32xf32> to vector<8x32xbf16>
    %c0_124 = arith.constant 0 : index
    %c0_125 = arith.constant 0 : index
    %195 = vector.load %arg10[%c0_124, %c0_125] : memref<32x96xbf16, #tpu.memory_space<vmem>>, vector<32x96xbf16>
    %cst_126 = arith.constant dense<0.000000e+00> : vector<8x96xf32>
    %196 = tpu.matmul %194, %195, %cst_126 {dimension_numbers = #tpu.dot_dimension_numbers<[1], [0], [0], [1], [0, 0, 1, 1], [], []>} : vector<8x32xbf16>, vector<32x96xbf16>, vector<8x96xf32> -> vector<8x96xf32>
    %c0_127 = arith.constant 0 : index
    %c0_128 = arith.constant 0 : index
    %197 = vector.load %arg12[%c0_127, %c0_128] : memref<1x96xf32, #tpu.memory_space<vmem>>, vector<1x96xf32>
    %198 = vector.broadcast %197 : vector<1x96xf32> to vector<8x96xf32>
    %199 = arith.addf %196, %198 : vector<8x96xf32>
    %200 = vector.extract_strided_slice %193 {offsets = [0, 0], sizes = [8, 32], strides = [1, 1]} : vector<8x96xf32> to vector<8x32xf32>
    %201 = vector.extract_strided_slice %199 {offsets = [0, 0], sizes = [8, 32], strides = [1, 1]} : vector<8x96xf32> to vector<8x32xf32>
    %202 = arith.addf %200, %201 : vector<8x32xf32>
    %203 = arith.negf %202 : vector<8x32xf32>
    %204 = math.exp %203 : vector<8x32xf32>
    %cst_129 = arith.constant 1.000000e+00 : f32
    %205 = vector.broadcast %cst_129 : f32 to vector<8x32xf32>
    %206 = arith.addf %205, %204 : vector<8x32xf32>
    %207 = arith.divf %205, %206 : vector<8x32xf32>
    %208 = vector.extract_strided_slice %193 {offsets = [0, 32], sizes = [8, 32], strides = [1, 1]} : vector<8x96xf32> to vector<8x32xf32>
    %209 = vector.extract_strided_slice %199 {offsets = [0, 32], sizes = [8, 32], strides = [1, 1]} : vector<8x96xf32> to vector<8x32xf32>
    %210 = arith.addf %208, %209 : vector<8x32xf32>
    %211 = arith.negf %210 : vector<8x32xf32>
    %212 = math.exp %211 : vector<8x32xf32>
    %cst_130 = arith.constant 1.000000e+00 : f32
    %213 = vector.broadcast %cst_130 : f32 to vector<8x32xf32>
    %214 = arith.addf %213, %212 : vector<8x32xf32>
    %215 = arith.divf %213, %214 : vector<8x32xf32>
    %216 = vector.extract_strided_slice %193 {offsets = [0, 64], sizes = [8, 32], strides = [1, 1]} : vector<8x96xf32> to vector<8x32xf32>
    %217 = vector.extract_strided_slice %199 {offsets = [0, 64], sizes = [8, 32], strides = [1, 1]} : vector<8x96xf32> to vector<8x32xf32>
    %218 = arith.mulf %207, %217 : vector<8x32xf32>
    %219 = arith.addf %216, %218 : vector<8x32xf32>
    %220 = math.tanh %219 : vector<8x32xf32>
    %cst_131 = arith.constant 1.000000e+00 : f32
    %221 = vector.broadcast %cst_131 : f32 to vector<8x32xf32>
    %222 = arith.subf %221, %215 : vector<8x32xf32>
    %223 = arith.mulf %222, %220 : vector<8x32xf32>
    %224 = arith.mulf %215, %192 : vector<8x32xf32>
    %225 = arith.addf %223, %224 : vector<8x32xf32>
    %226 = tpu.concatenate %192, %225 in 0 : vector<8x32xf32>, vector<8x32xf32> -> vector<16x32xf32>
    %227 = arith.truncf %226 : vector<16x32xf32> to vector<16x32xbf16>
    %c0_132 = arith.constant 0 : index
    %c0_133 = arith.constant 0 : index
    %228 = vector.load %arg13[%c0_132, %c0_133] : memref<32x96xbf16, #tpu.memory_space<vmem>>, vector<32x96xbf16>
    %cst_134 = arith.constant dense<0.000000e+00> : vector<16x96xf32>
    %229 = tpu.matmul %227, %228, %cst_134 {dimension_numbers = #tpu.dot_dimension_numbers<[1], [0], [0], [1], [0, 0, 1, 1], [], []>} : vector<16x32xbf16>, vector<32x96xbf16>, vector<16x96xf32> -> vector<16x96xf32>
    %c0_135 = arith.constant 0 : index
    %c0_136 = arith.constant 0 : index
    %230 = vector.load %arg15[%c0_135, %c0_136] : memref<1x96xf32, #tpu.memory_space<vmem>>, vector<1x96xf32>
    %231 = vector.broadcast %230 : vector<1x96xf32> to vector<16x96xf32>
    %232 = arith.addf %229, %231 : vector<16x96xf32>
    %cst_137 = arith.constant 0.000000e+00 : f32
    %233 = vector.broadcast %cst_137 : f32 to vector<8x32xf32>
    %234 = vector.extract_strided_slice %232 {offsets = [0, 0], sizes = [8, 96], strides = [1, 1]} : vector<16x96xf32> to vector<8x96xf32>
    %235 = arith.truncf %233 : vector<8x32xf32> to vector<8x32xbf16>
    %c0_138 = arith.constant 0 : index
    %c0_139 = arith.constant 0 : index
    %236 = vector.load %arg14[%c0_138, %c0_139] : memref<32x96xbf16, #tpu.memory_space<vmem>>, vector<32x96xbf16>
    %cst_140 = arith.constant dense<0.000000e+00> : vector<8x96xf32>
    %237 = tpu.matmul %235, %236, %cst_140 {dimension_numbers = #tpu.dot_dimension_numbers<[1], [0], [0], [1], [0, 0, 1, 1], [], []>} : vector<8x32xbf16>, vector<32x96xbf16>, vector<8x96xf32> -> vector<8x96xf32>
    %c0_141 = arith.constant 0 : index
    %c0_142 = arith.constant 0 : index
    %238 = vector.load %arg16[%c0_141, %c0_142] : memref<1x96xf32, #tpu.memory_space<vmem>>, vector<1x96xf32>
    %239 = vector.broadcast %238 : vector<1x96xf32> to vector<8x96xf32>
    %240 = arith.addf %237, %239 : vector<8x96xf32>
    %241 = vector.extract_strided_slice %234 {offsets = [0, 0], sizes = [8, 32], strides = [1, 1]} : vector<8x96xf32> to vector<8x32xf32>
    %242 = vector.extract_strided_slice %240 {offsets = [0, 0], sizes = [8, 32], strides = [1, 1]} : vector<8x96xf32> to vector<8x32xf32>
    %243 = arith.addf %241, %242 : vector<8x32xf32>
    %244 = arith.negf %243 : vector<8x32xf32>
    %245 = math.exp %244 : vector<8x32xf32>
    %cst_143 = arith.constant 1.000000e+00 : f32
    %246 = vector.broadcast %cst_143 : f32 to vector<8x32xf32>
    %247 = arith.addf %246, %245 : vector<8x32xf32>
    %248 = arith.divf %246, %247 : vector<8x32xf32>
    %249 = vector.extract_strided_slice %234 {offsets = [0, 32], sizes = [8, 32], strides = [1, 1]} : vector<8x96xf32> to vector<8x32xf32>
    %250 = vector.extract_strided_slice %240 {offsets = [0, 32], sizes = [8, 32], strides = [1, 1]} : vector<8x96xf32> to vector<8x32xf32>
    %251 = arith.addf %249, %250 : vector<8x32xf32>
    %252 = arith.negf %251 : vector<8x32xf32>
    %253 = math.exp %252 : vector<8x32xf32>
    %cst_144 = arith.constant 1.000000e+00 : f32
    %254 = vector.broadcast %cst_144 : f32 to vector<8x32xf32>
    %255 = arith.addf %254, %253 : vector<8x32xf32>
    %256 = arith.divf %254, %255 : vector<8x32xf32>
    %257 = vector.extract_strided_slice %234 {offsets = [0, 64], sizes = [8, 32], strides = [1, 1]} : vector<8x96xf32> to vector<8x32xf32>
    %258 = vector.extract_strided_slice %240 {offsets = [0, 64], sizes = [8, 32], strides = [1, 1]} : vector<8x96xf32> to vector<8x32xf32>
    %259 = arith.mulf %248, %258 : vector<8x32xf32>
    %260 = arith.addf %257, %259 : vector<8x32xf32>
    %261 = math.tanh %260 : vector<8x32xf32>
    %cst_145 = arith.constant 1.000000e+00 : f32
    %262 = vector.broadcast %cst_145 : f32 to vector<8x32xf32>
    %263 = arith.subf %262, %256 : vector<8x32xf32>
    %264 = arith.mulf %263, %261 : vector<8x32xf32>
    %265 = arith.mulf %256, %233 : vector<8x32xf32>
    %266 = arith.addf %264, %265 : vector<8x32xf32>
    %267 = vector.extract_strided_slice %266 {offsets = [7, 0], sizes = [1, 32], strides = [1, 1]} : vector<8x32xf32> to vector<1x32xf32>
    %268 = vector.extract_strided_slice %232 {offsets = [8, 0], sizes = [8, 96], strides = [1, 1]} : vector<16x96xf32> to vector<8x96xf32>
    %269 = arith.truncf %266 : vector<8x32xf32> to vector<8x32xbf16>
    %c0_146 = arith.constant 0 : index
    %c0_147 = arith.constant 0 : index
    %270 = vector.load %arg14[%c0_146, %c0_147] : memref<32x96xbf16, #tpu.memory_space<vmem>>, vector<32x96xbf16>
    %cst_148 = arith.constant dense<0.000000e+00> : vector<8x96xf32>
    %271 = tpu.matmul %269, %270, %cst_148 {dimension_numbers = #tpu.dot_dimension_numbers<[1], [0], [0], [1], [0, 0, 1, 1], [], []>} : vector<8x32xbf16>, vector<32x96xbf16>, vector<8x96xf32> -> vector<8x96xf32>
    %c0_149 = arith.constant 0 : index
    %c0_150 = arith.constant 0 : index
    %272 = vector.load %arg16[%c0_149, %c0_150] : memref<1x96xf32, #tpu.memory_space<vmem>>, vector<1x96xf32>
    %273 = vector.broadcast %272 : vector<1x96xf32> to vector<8x96xf32>
    %274 = arith.addf %271, %273 : vector<8x96xf32>
    %275 = vector.extract_strided_slice %268 {offsets = [0, 0], sizes = [8, 32], strides = [1, 1]} : vector<8x96xf32> to vector<8x32xf32>
    %276 = vector.extract_strided_slice %274 {offsets = [0, 0], sizes = [8, 32], strides = [1, 1]} : vector<8x96xf32> to vector<8x32xf32>
    %277 = arith.addf %275, %276 : vector<8x32xf32>
    %278 = arith.negf %277 : vector<8x32xf32>
    %279 = math.exp %278 : vector<8x32xf32>
    %cst_151 = arith.constant 1.000000e+00 : f32
    %280 = vector.broadcast %cst_151 : f32 to vector<8x32xf32>
    %281 = arith.addf %280, %279 : vector<8x32xf32>
    %282 = arith.divf %280, %281 : vector<8x32xf32>
    %283 = vector.extract_strided_slice %268 {offsets = [0, 32], sizes = [8, 32], strides = [1, 1]} : vector<8x96xf32> to vector<8x32xf32>
    %284 = vector.extract_strided_slice %274 {offsets = [0, 32], sizes = [8, 32], strides = [1, 1]} : vector<8x96xf32> to vector<8x32xf32>
    %285 = arith.addf %283, %284 : vector<8x32xf32>
    %286 = arith.negf %285 : vector<8x32xf32>
    %287 = math.exp %286 : vector<8x32xf32>
    %cst_152 = arith.constant 1.000000e+00 : f32
    %288 = vector.broadcast %cst_152 : f32 to vector<8x32xf32>
    %289 = arith.addf %288, %287 : vector<8x32xf32>
    %290 = arith.divf %288, %289 : vector<8x32xf32>
    %291 = vector.extract_strided_slice %268 {offsets = [0, 64], sizes = [8, 32], strides = [1, 1]} : vector<8x96xf32> to vector<8x32xf32>
    %292 = vector.extract_strided_slice %274 {offsets = [0, 64], sizes = [8, 32], strides = [1, 1]} : vector<8x96xf32> to vector<8x32xf32>
    %293 = arith.mulf %282, %292 : vector<8x32xf32>
    %294 = arith.addf %291, %293 : vector<8x32xf32>
    %295 = math.tanh %294 : vector<8x32xf32>
    %cst_153 = arith.constant 1.000000e+00 : f32
    %296 = vector.broadcast %cst_153 : f32 to vector<8x32xf32>
    %297 = arith.subf %296, %290 : vector<8x32xf32>
    %298 = arith.mulf %297, %295 : vector<8x32xf32>
    %299 = arith.mulf %290, %266 : vector<8x32xf32>
    %300 = arith.addf %298, %299 : vector<8x32xf32>
    %301 = vector.extract_strided_slice %300 {offsets = [7, 0], sizes = [1, 32], strides = [1, 1]} : vector<8x32xf32> to vector<1x32xf32>
    %302 = tpu.concatenate %267, %301 in 0 : vector<1x32xf32>, vector<1x32xf32> -> vector<2x32xf32>
    %303 = arith.truncf %302 : vector<2x32xf32> to vector<2x32xbf16>
    %c0_154 = arith.constant 0 : index
    %c0_155 = arith.constant 0 : index
    %304 = vector.load %arg17[%c0_154, %c0_155] : memref<32x640xbf16, #tpu.memory_space<vmem>>, vector<32x640xbf16>
    %cst_156 = arith.constant dense<0.000000e+00> : vector<2x640xf32>
    %305 = tpu.matmul %303, %304, %cst_156 {dimension_numbers = #tpu.dot_dimension_numbers<[1], [0], [0], [1], [0, 0, 1, 1], [], []>} : vector<2x32xbf16>, vector<32x640xbf16>, vector<2x640xf32> -> vector<2x640xf32>
    %c0_157 = arith.constant 0 : index
    %c0_158 = arith.constant 0 : index
    %306 = vector.load %arg18[%c0_157, %c0_158] : memref<1x640xf32, #tpu.memory_space<vmem>>, vector<1x640xf32>
    %307 = vector.broadcast %306 : vector<1x640xf32> to vector<2x640xf32>
    %308 = arith.addf %305, %307 : vector<2x640xf32>
    %309 = vector.extract_strided_slice %308 {offsets = [0, 0], sizes = [2, 512], strides = [1, 1]} : vector<2x640xf32> to vector<2x512xf32>
    %cst_159 = arith.constant 0.000000e+00 : f32
    %310 = vector.broadcast %cst_159 : f32 to vector<2x512xf32>
    %311 = arith.maximumf %309, %310 : vector<2x512xf32>
    %312 = arith.truncf %311 : vector<2x512xf32> to vector<2x512xbf16>
    %c0_160 = arith.constant 0 : index
    %c0_161 = arith.constant 0 : index
    %313 = vector.load %arg19[%c0_160, %c0_161] : memref<512x16xbf16, #tpu.memory_space<vmem>>, vector<512x16xbf16>
    %cst_162 = arith.constant dense<0.000000e+00> : vector<2x16xf32>
    %314 = tpu.matmul %312, %313, %cst_162 {dimension_numbers = #tpu.dot_dimension_numbers<[1], [0], [0], [1], [0, 0, 1, 1], [], []>} : vector<2x512xbf16>, vector<512x16xbf16>, vector<2x16xf32> -> vector<2x16xf32>
    %c0_163 = arith.constant 0 : index
    %c0_164 = arith.constant 0 : index
    %315 = vector.load %arg20[%c0_163, %c0_164] : memref<1x16xf32, #tpu.memory_space<vmem>>, vector<1x16xf32>
    %316 = vector.broadcast %315 : vector<1x16xf32> to vector<2x16xf32>
    %317 = arith.addf %314, %316 : vector<2x16xf32>
    %c0_165 = arith.constant 0 : index
    %c0_166 = arith.constant 0 : index
    %318 = vector.load %arg25[%c0_165, %c0_166] : memref<2x16xf32, #tpu.memory_space<vmem>>, vector<2x16xf32>
    tpu.vector_store %arg25[%c0_165, %c0_166], %317 {strides = array<i32>} : memref<2x16xf32, #tpu.memory_space<vmem>>, vector<2x16xf32>,
    %319 = vector.extract_strided_slice %308 {offsets = [0, 512], sizes = [2, 128], strides = [1, 1]} : vector<2x640xf32> to vector<2x128xf32>
    %cst_167 = arith.constant 0.000000e+00 : f32
    %320 = vector.broadcast %cst_167 : f32 to vector<2x128xf32>
    %321 = arith.cmpf oge, %319, %320 : vector<2x128xf32>
    %cst_168 = arith.constant 0.00999999977 : f32
    %322 = vector.broadcast %cst_168 : f32 to vector<2x128xf32>
    %323 = arith.mulf %322, %319 : vector<2x128xf32>
    %324 = arith.select %321, %319, %323 : vector<2x128xi1>, vector<2x128xf32>
    %325 = arith.truncf %324 : vector<2x128xf32> to vector<2x128xbf16>
    %c0_169 = arith.constant 0 : index
    %c0_170 = arith.constant 0 : index
    %326 = vector.load %arg21[%c0_169, %c0_170] : memref<128x64xbf16, #tpu.memory_space<vmem>>, vector<128x64xbf16>
    %cst_171 = arith.constant dense<0.000000e+00> : vector<2x64xf32>
    %327 = tpu.matmul %325, %326, %cst_171 {dimension_numbers = #tpu.dot_dimension_numbers<[1], [0], [0], [1], [0, 0, 1, 1], [], []>} : vector<2x128xbf16>, vector<128x64xbf16>, vector<2x64xf32> -> vector<2x64xf32>
    %c0_172 = arith.constant 0 : index
    %c0_173 = arith.constant 0 : index
    %328 = vector.load %arg22[%c0_172, %c0_173] : memref<1x64xf32, #tpu.memory_space<vmem>>, vector<1x64xf32>
    %329 = vector.broadcast %328 : vector<1x64xf32> to vector<2x64xf32>
    %330 = arith.addf %327, %329 : vector<2x64xf32>
    %cst_174 = arith.constant 0.000000e+00 : f32
    %331 = vector.broadcast %cst_174 : f32 to vector<2x64xf32>
    %332 = arith.cmpf oge, %330, %331 : vector<2x64xf32>
    %cst_175 = arith.constant 0.00999999977 : f32
    %333 = vector.broadcast %cst_175 : f32 to vector<2x64xf32>
    %334 = arith.mulf %333, %330 : vector<2x64xf32>
    %335 = arith.select %332, %330, %334 : vector<2x64xi1>, vector<2x64xf32>
    %336 = arith.truncf %335 : vector<2x64xf32> to vector<2x64xbf16>
    %c0_176 = arith.constant 0 : index
    %c0_177 = arith.constant 0 : index
    %337 = vector.load %arg23[%c0_176, %c0_177] : memref<64x2xbf16, #tpu.memory_space<vmem>>, vector<64x2xbf16>
    %cst_178 = arith.constant dense<0.000000e+00> : vector<2x2xf32>
    %338 = tpu.matmul %336, %337, %cst_178 {dimension_numbers = #tpu.dot_dimension_numbers<[1], [0], [0], [1], [0, 0, 1, 1], [], []>} : vector<2x64xbf16>, vector<64x2xbf16>, vector<2x2xf32> -> vector<2x2xf32>
    %c0_179 = arith.constant 0 : index
    %c0_180 = arith.constant 0 : index
    %339 = vector.load %arg24[%c0_179, %c0_180] : memref<1x2xf32, #tpu.memory_space<vmem>>, vector<1x2xf32>
    %340 = vector.broadcast %339 : vector<1x2xf32> to vector<2x2xf32>
    %341 = arith.addf %338, %340 : vector<2x2xf32>
    %cst_181 = arith.constant 0.000000e+00 : f32
    %342 = vector.broadcast %cst_181 : f32 to vector<2x2xf32>
    %343 = arith.cmpf oge, %341, %342 : vector<2x2xf32>
    %cst_182 = arith.constant 0.00999999977 : f32
    %344 = vector.broadcast %cst_182 : f32 to vector<2x2xf32>
    %345 = arith.mulf %344, %341 : vector<2x2xf32>
    %346 = arith.select %343, %341, %345 : vector<2x2xi1>, vector<2x2xf32>
    %cst_183 = arith.constant dense<0xFF800000> : vector<2xf32>
    %347 = vector.multi_reduction <maximumf>, %346, %cst_183 [1] : vector<2x2xf32> to vector<2xf32>
    %348 = vector.shape_cast %347 : vector<2xf32> to vector<2x1xf32>
    %349 = vector.broadcast %348 : vector<2x1xf32> to vector<2x2xf32>
    %350 = arith.subf %346, %349 : vector<2x2xf32>
    %351 = math.exp %350 : vector<2x2xf32>
    %cst_184 = arith.constant dense<0.000000e+00> : vector<2xf32>
    %352 = vector.multi_reduction <add>, %351, %cst_184 [1] : vector<2x2xf32> to vector<2xf32>
    %353 = vector.shape_cast %352 : vector<2xf32> to vector<2x1xf32>
    %354 = vector.broadcast %353 : vector<2x1xf32> to vector<2x2xf32>
    %355 = arith.divf %351, %354 : vector<2x2xf32>
    %c0_185 = arith.constant 0 : index
    %c0_186 = arith.constant 0 : index
    %356 = vector.load %arg26[%c0_185, %c0_186] : memref<2x2xf32, #tpu.memory_space<vmem>>, vector<2x2xf32>
    tpu.vector_store %arg26[%c0_185, %c0_186], %355 {strides = array<i32>} : memref<2x2xf32, #tpu.memory_space<vmem>>, vector<2x2xf32>,
    return
  }
}

</mosaic_0001>

<bundles_post_ra>
// kernel: hcg_forward.1
= control target key start
LH: loop header
LB: loop body
LE: loop exit
PB: predicated region body
PF: predicated region fallthrough
CT: control target
= control target key end

     0   :  { %s8208_s0 = inlined_call_operand.vmem [shape: f32[264,128], index: 0, kind: input, shape index: {}]   ;;  %s8209_s1 = inlined_call_operand.vmem [shape: bf16[640,256], index: 1, kind: input, shape index: {}]   ;;  %s8210_s2 = inlined_call_operand.vmem [shape: f32[1,128], index: 2, kind: input, shape index: {}]   ;;  %s8211_s3 = inlined_call_operand.vmem [shape: bf16[640,256], index: 3, kind: input, shape index: {}]   ;;  %s8212_s4 = inlined_call_operand.vmem [shape: f32[1,128], index: 4, kind: input, shape index: {}]   ;;  %s8213_s5 = inlined_call_operand.vmem [shape: bf16[640,256], index: 5, kind: input, shape index: {}]   ;;  %s8214_s6 = inlined_call_operand.vmem [shape: f32[1,128], index: 6, kind: input, shape index: {}]   ;;  %s8215_s7 = inlined_call_operand.vmem [shape: bf16[640,256], index: 7, kind: input, shape index: {}]   ;;  %s8216_s8 = inlined_call_operand.vmem [shape: f32[1,128], index: 8, kind: input, shape index: {}]   ;;  %s8217_s9 = inlined_call_operand.vmem [shape: bf16[32,96], index: 9, kind: input, shape index: {}]   ;;  %s8218_s10 = inlined_call_operand.vmem [shape: bf16[32,96], index: 10, kind: input, shape index: {}]   ;;  %s8219_s11 = inlined_call_operand.vmem [shape: f32[1,96], index: 11, kind: input, shape index: {}]   ;;  %s8220_s12 = inlined_call_operand.vmem [shape: f32[1,96], index: 12, kind: input, shape index: {}]   ;;  %s8221_s13 = inlined_call_operand.vmem [shape: bf16[32,96], index: 13, kind: input, shape index: {}]   ;;  %s8222_s14 = inlined_call_operand.vmem [shape: bf16[32,96], index: 14, kind: input, shape index: {}]   ;;  %s8223_s15 = inlined_call_operand.vmem [shape: f32[1,96], index: 15, kind: input, shape index: {}]   ;;  %s8224_s16 = inlined_call_operand.vmem [shape: f32[1,96], index: 16, kind: input, shape index: {}]   ;;  %s8225_s17 = inlined_call_operand.vmem [shape: bf16[32,640], index: 17, kind: input, shape index: {}]   ;;  %s8226_s18 = inlined_call_operand.vmem [shape: f32[1,640], index: 18, kind: input, shape index: {}]   ;;  %s8227_s19 = inlined_call_operand.vmem [shape: bf16[512,16], index: 19, kind: input, shape index: {}]   ;;  %s8228_s20 = inlined_call_operand.vmem [shape: f32[1,16], index: 20, kind: input, shape index: {}]   ;;  %s8229_s21 = inlined_call_operand.vmem [shape: bf16[128,64], index: 21, kind: input, shape index: {}]   ;;  %s8230_s22 = inlined_call_operand.vmem [shape: f32[1,64], index: 22, kind: input, shape index: {}]   ;;  %s8231_s23 = inlined_call_operand.vmem [shape: bf16[64,2], index: 23, kind: input, shape index: {}]   ;;  %s8232_s24 = inlined_call_operand.vmem [shape: f32[1,2], index: 24, kind: input, shape index: {}]   ;;  %s8233_s25 = inlined_call_operand.hbm [shape: f32[2,16], index: 25, kind: output, shape index: {0}]   ;;  %s8234_s26 = inlined_call_operand.hbm [shape: f32[2,2], index: 26, kind: output, shape index: {1}]  }
   0x1   :  { %8242 = sst [smem:[#allocation9_spill]] %s8208_s0 }
   0x2   :  { %8243 = sst [smem:[#allocation10_spill]] %s8209_s1 }
   0x3   :  { %8244 = sst [smem:[#allocation11_spill]] %s8210_s2 }
   0x4   :  { %8245 = sst [smem:[#allocation12_spill]] %s8211_s3 }
   0x5   :  { %8246 = sst [smem:[#allocation13_spill]] %s8212_s4 }
   0x6   :  { %8247 = sst [smem:[#allocation14_spill]] %s8213_s5 }
   0x7   :  { %8248 = sst [smem:[#allocation15_spill]] %s8214_s6 }
   0x8   :  { %8249 = sst [smem:[#allocation16_spill]] %s8215_s7 }
   0x9   :  { %8250 = sst [smem:[#allocation17_spill]] %s8216_s8 }
   0xa   :  { %8251 = sst [smem:[#allocation18_spill]] %s8217_s9 }
   0xb   :  { %8252 = sst [smem:[#allocation19_spill]] %s8218_s10 }
   0xc   :  { %32 = vsyncpa [#allocation4], 0  ;;  %s8253_s7 = sld [smem:[#allocation10_spill]]  ;;  %s8254_s27 = sld [smem:[#allocation9_spill]] }
   0xd   :  { %s8255_s1 = sld [smem:[#allocation12_spill]] }
  0x12   :  { %v5754_v0 = vld [vmem:[%s8253_s7 + $0x4] ss:$8 sps:$4 sm:$0xff]   ;;  %v5756_v1 = vld [vmem:[%s8253_s7] ss:$8 sps:$4 sm:$0xff]   ;;  %v5757_v2 = vld [vmem:[%s8253_s7 + $0x14] ss:$8 sps:$4 sm:$0xff]  }
  0x13   :  { %764 = vmatprep.subr.bf16.mxu0 %v5754_v0  ;;  %v5759_v3 = vld [vmem:[%s8253_s7 + $0x10] ss:$8 sps:$4 sm:$0xff]   ;;  %v5760_v4 = vld [vmem:[%s8253_s7 + $0x24] ss:$8 sps:$4 sm:$0xff]   ;;  %v5762_v5 = vld [vmem:[%s8253_s7 + $0x20] ss:$8 sps:$4 sm:$0xff]  }
  0x14   :  { %765 = vmatpush1.bf16.msra.mxu0 %v5756_v1  ;;  %v5763_v6 = vld [vmem:[%s8253_s7 + $0x34] ss:$8 sps:$4 sm:$0xff]   ;;  %v5765_v7 = vld [vmem:[%s8253_s7 + $0x30] ss:$8 sps:$4 sm:$0xff]   ;;  %v5766_v8 = vld [vmem:[%s8253_s7 + $0x44] ss:$8 sps:$4 sm:$0xff]  }
  0x15   :  { %766 = vmatprep.subr.bf16.mxu0 %v5757_v2  ;;  %v5768_v9 = vld [vmem:[%s8253_s7 + $0x40] ss:$8 sps:$4 sm:$0xff]   ;;  %v5769_v10 = vld [vmem:[%s8253_s7 + $0x54] ss:$8 sps:$4 sm:$0xff]   ;;  %v5771_v11 = vld [vmem:[%s8253_s7 + $0x50] ss:$8 sps:$4 sm:$0xff]  }
  0x16   :  { %v5772_v12 = vld [vmem:[%s8253_s7 + $0x64] ss:$8 sps:$4 sm:$0xff]   ;;  %v4931_v14 = vld [vmem:[%s8254_s27 + $0x11] ss:$2 sm:$0xff]  ;;  %v5774_v16 = vld [vmem:[%s8253_s7 + $0x60] ss:$8 sps:$4 sm:$0xff]  }
  0x17   :  { %v4930_v13 = vld [vmem:[%s8254_s27 + $0x1] ss:$2 sm:$0xff]  ;;  %v5775_v17 = vld [vmem:[%s8253_s7 + $0x74] ss:$8 sps:$4 sm:$0xff]   ;;  %v5777_v18 = vld [vmem:[%s8253_s7 + $0x70] ss:$8 sps:$4 sm:$0xff]  }
  0x18   :  { %767 = vmatpush1.bf16.msra.mxu0 %v5759_v3  ;;  %v120_v15 = vpack.c.bf16 %v4931_v14, %v4930_v13  ;;  %v5778_v19 = vld [vmem:[%s8253_s7 + $0x84] ss:$8 sps:$4 sm:$0xff]   ;;  %v5780_v20 = vld [vmem:[%s8253_s7 + $0x80] ss:$8 sps:$4 sm:$0xff]   ;;  %v5781_v21 = vld [vmem:[%s8253_s7 + $0x94] ss:$8 sps:$4 sm:$0xff]  }
  0x19   :  { %768 = vmatprep.subr.bf16.mxu0 %v5760_v4  ;;  %v5783_v22 = vld [vmem:[%s8253_s7 + $0x90] ss:$8 sps:$4 sm:$0xff]   ;;  %v5784_v23 = vld [vmem:[%s8253_s7 + $0xa4] ss:$8 sps:$4 sm:$0xff]   ;;  %v5786_v24 = vld [vmem:[%s8253_s7 + $0xa0] ss:$8 sps:$4 sm:$0xff]  }
  0x1a   :  { %796 = vmatprep.mubr.bf16.mxu0 %v120_v15  ;;  %v5787_v25 = vld [vmem:[%s8253_s7 + $0xb4] ss:$8 sps:$4 sm:$0xff]   ;;  %v5789_v26 = vld [vmem:[%s8253_s7 + $0xb0] ss:$8 sps:$4 sm:$0xff]   ;;  %v5790_v27 = vld [vmem:[%s8253_s7 + $0xc4] ss:$8 sps:$4 sm:$0xff]  }
  0x1b   :  { %v5792_v28 = vld [vmem:[%s8253_s7 + $0xc0] ss:$8 sps:$4 sm:$0xff]   ;;  %v5793_v29 = vld [vmem:[%s8253_s7 + $0xd4] ss:$8 sps:$4 sm:$0xff]   ;;  %v5795_v30 = vld [vmem:[%s8253_s7 + $0xd0] ss:$8 sps:$4 sm:$0xff]  }
  0x1c   :  { %769 = vmatpush1.bf16.msra.mxu0 %v5762_v5  ;;  %v5796_v31 = vld [vmem:[%s8253_s7 + $0xe4] ss:$8 sps:$4 sm:$0xff]   ;;  %v5798_v32 = vld [vmem:[%s8253_s7 + $0xe0] ss:$8 sps:$4 sm:$0xff]   ;;  %v5799_v33 = vld [vmem:[%s8253_s7 + $0xf4] ss:$8 sps:$4 sm:$0xff]  }
  0x1d   :  { %770 = vmatprep.subr.bf16.mxu0 %v5763_v6  ;;  %v5801_v34 = vld [vmem:[%s8253_s7 + $0xf0] ss:$8 sps:$4 sm:$0xff]   ;;  %v85_v35 = vld [vmem:[%s8254_s27] ss:$2 sm:$0xff]  ;;  %v4932_v38 = vld [vmem:[%s8254_s27 + $0x21] ss:$2 sm:$0xff] }
  0x1e   :  { %v4923_v36 = vld [vmem:[%s8254_s27 + $0x10] ss:$2 sm:$0xff]  ;;  %v5804_v37 = vld [vmem:[%s8253_s7 + $0x104] ss:$8 sps:$4 sm:$0xff]   ;;  %v4933_v39 = vld [vmem:[%s8254_s27 + $0x31] ss:$2 sm:$0xff] }
  0x1f   :  { %v100_v40 = vpack.c.bf16 %v4923_v36, %v85_v35  ;;  %v5802_v41 = vld [vmem:[%s8253_s7 + $0x100] ss:$8 sps:$4 sm:$0xff]   ;;  %v121_v42 = vpack.c.bf16 %v4933_v39, %v4932_v38  ;;  %v5807_v43 = vld [vmem:[%s8253_s7 + $0x114] ss:$8 sps:$4 sm:$0xff]   ;;  %v5805_v44 = vld [vmem:[%s8253_s7 + $0x110] ss:$8 sps:$4 sm:$0xff]  }
  0x20   :  { %771 = vmatpush1.bf16.msra.mxu0 %v5765_v7  ;;  %v4924_v45 = vld [vmem:[%s8254_s27 + $0x20] ss:$2 sm:$0xff]  ;;  %v4925_v46 = vld [vmem:[%s8254_s27 + $0x30] ss:$2 sm:$0xff]  ;;  %v4934_v48 = vld [vmem:[%s8254_s27 + $0x41] ss:$2 sm:$0xff] }
  0x21   :  { %772 = vmatprep.subr.bf16.mxu0 %v5766_v8  ;;  %v5810_v47 = vld [vmem:[%s8253_s7 + $0x124] ss:$8 sps:$4 sm:$0xff]   ;;  %v4935_v49 = vld [vmem:[%s8254_s27 + $0x51] ss:$2 sm:$0xff]  ;;  %v101_v50 = vpack.c.bf16 %v4925_v46, %v4924_v45  ;;  %v5808_v51 = vld [vmem:[%s8253_s7 + $0x120] ss:$8 sps:$4 sm:$0xff]  }
  0x22   :  { %v122_v52 = vpack.c.bf16 %v4935_v49, %v4934_v48  ;;  %v5813_v53 = vld [vmem:[%s8253_s7 + $0x134] ss:$8 sps:$4 sm:$0xff]   ;;  %v5811_v54 = vld [vmem:[%s8253_s7 + $0x130] ss:$8 sps:$4 sm:$0xff]   ;;  %v4926_v55 = vld [vmem:[%s8254_s27 + $0x40] ss:$2 sm:$0xff] }
  0x23   :  { %v4927_v56 = vld [vmem:[%s8254_s27 + $0x50] ss:$2 sm:$0xff]  ;;  %v5816_v57 = vld [vmem:[%s8253_s7 + $0x144] ss:$8 sps:$4 sm:$0xff]   ;;  %v4937_v59 = vld [vmem:[%s8254_s27 + $0x71] ss:$2 sm:$0xff] }
  0x24   :  { %773 = vmatpush1.bf16.msra.mxu0 %v5768_v9  ;;  %v4936_v58 = vld [vmem:[%s8254_s27 + $0x61] ss:$2 sm:$0xff]  ;;  %v102_v61 = vpack.c.bf16 %v4927_v56, %v4926_v55  ;;  %v5819_v62 = vld [vmem:[%s8253_s7 + $0x154] ss:$8 sps:$4 sm:$0xff]   ;;  %v5817_v0 = vld [vmem:[%s8253_s7 + $0x150] ss:$8 sps:$4 sm:$0xff]  }
  0x25   :  { %774 = vmatprep.subr.bf16.mxu0 %v5769_v10  ;;  %v5814_v60 = vld [vmem:[%s8253_s7 + $0x140] ss:$8 sps:$4 sm:$0xff]   ;;  %v123_v63 = vpack.c.bf16 %v4937_v59, %v4936_v58  ;;  %v4929_v2 = vld [vmem:[%s8254_s27 + $0x70] ss:$2 sm:$0xff]  ;;  %v5822_v3 = vld [vmem:[%s8253_s7 + $0x164] ss:$8 sps:$4 sm:$0xff]  }
  0x26   :  { %v4928_v1 = vld [vmem:[%s8254_s27 + $0x60] ss:$2 sm:$0xff]  ;;  %v4970_v4 = vld [vmem:[%s8254_s27 + $0x85] ss:$2 sm:$0xff]  ;;  %v4971_v5 = vld [vmem:[%s8254_s27 + $0x95] ss:$2 sm:$0xff] }
  0x27   :  { %v5820_v6 = vld [vmem:[%s8253_s7 + $0x160] ss:$8 sps:$4 sm:$0xff]   ;;  %v103_v7 = vpack.c.bf16 %v4929_v2, %v4928_v1  ;;  %v5825_v8 = vld [vmem:[%s8253_s7 + $0x174] ss:$8 sps:$4 sm:$0xff]   ;;  %v220_v9 = vpack.c.bf16 %v4971_v5, %v4970_v4  ;;  %v5823_v10 = vld [vmem:[%s8253_s7 + $0x170] ss:$8 sps:$4 sm:$0xff]  }
  0x28   :  { %775 = vmatpush1.bf16.msra.mxu0 %v5771_v11  ;;  %v4962_v11 = vld [vmem:[%s8254_s27 + $0x84] ss:$2 sm:$0xff]  ;;  %v4972_v14 = vld [vmem:[%s8254_s27 + $0xa5] ss:$2 sm:$0xff]  ;;  %v4973_v15 = vld [vmem:[%s8254_s27 + $0xb5] ss:$2 sm:$0xff] }
  0x29   :  { %776 = vmatprep.subr.bf16.mxu0 %v5772_v12  ;;  %v4963_v12 = vld [vmem:[%s8254_s27 + $0x94] ss:$2 sm:$0xff]  ;;  %v5828_v13 = vld [vmem:[%s8253_s7 + $0x184] ss:$8 sps:$4 sm:$0xff]   ;;  %v4977_v35 = vld [vmem:[%s8254_s27 + $0xf5] ss:$2 sm:$0xff] }
  0x2a   :  { %v5838_v36 = vld [vmem:[%s8253_s7 + $0x1c0] ss:$8 sps:$4 sm:$0xff]   ;;  %v5843_v38 = vld [vmem:[%s8253_s7 + $0x1d4] ss:$8 sps:$4 sm:$0xff]   ;;  %v5852_v56 = vld [vmem:[%s8253_s7 + $0x204] ss:$8 sps:$4 sm:$0xff]  }
  0x2b   :  { %v4947_v45 = vld [vmem:[%s8254_s27 + $0x13] ss:$2 sm:$0xff]  ;;  %v4939_v55 = vld [vmem:[%s8254_s27 + $0x12] ss:$2 sm:$0xff] }
  0x2c   :  { %777 = vmatpush1.bf16.msra.mxu0 %v5774_v16  ;;  %v5826_v16 = vld [vmem:[%s8253_s7 + $0x180] ss:$8 sps:$4 sm:$0xff]   ;;  %v5849_v48 = vld [vmem:[%s8253_s7 + $0x1f4] ss:$8 sps:$4 sm:$0xff]   ;;  %v5879_v59 = vld [vmem:[%s8255_s1 + $0x10] ss:$8 sps:$4 sm:$0xff]  }
  0x2d   :  { %778 = vmatprep.subr.bf16.mxu0 %v5775_v17  ;;  %v200_v17 = vpack.c.bf16 %v4963_v12, %v4962_v11  ;;  %v5844_v46 = vld [vmem:[%s8253_s7 + $0x1e0] ss:$8 sps:$4 sm:$0xff]   ;;  %v5883_v2 = vld [vmem:[%s8255_s1 + $0x34] ss:$8 sps:$4 sm:$0xff]   ;;  %v5853_v5 = vld [vmem:[%s8253_s7 + $0x210] ss:$8 sps:$4 sm:$0xff]  }
  0x2e   :  { %v4949_v58 = vld [vmem:[%s8254_s27 + $0x33] ss:$2 sm:$0xff]  ;;  %v4941_v4 = vld [vmem:[%s8254_s27 + $0x32] ss:$2 sm:$0xff] }
  0x2f   :  { %v5882_v1 = vld [vmem:[%s8255_s1 + $0x20] ss:$8 sps:$4 sm:$0xff]  }
  0x30   :  { %779 = vmatpush1.bf16.msra.mxu0 %v5777_v18  ;;  %v5831_v18 = vld [vmem:[%s8253_s7 + $0x194] ss:$8 sps:$4 sm:$0xff]   ;;  %v5856_v11 = vld [vmem:[%s8253_s7 + $0x220] ss:$8 sps:$4 sm:$0xff]  }
  0x31   :  { %780 = vmatprep.subr.bf16.mxu0 %v5778_v19  ;;  %v221_v19 = vpack.c.bf16 %v4973_v15, %v4972_v14  ;;  %v5888_v15 = vld [vmem:[%s8255_s1 + $0x40] ss:$8 sps:$4 sm:$0xff]  }
  0x34   :  { %781 = vmatpush1.bf16.msra.mxu0 %v5780_v20  ;;  %v5829_v20 = vld [vmem:[%s8253_s7 + $0x190] ss:$8 sps:$4 sm:$0xff]  }
  0x35   :  { %782 = vmatprep.subr.bf16.mxu0 %v5781_v21  ;;  %v4964_v21 = vld [vmem:[%s8254_s27 + $0xa4] ss:$2 sm:$0xff] }
  0x38   :  { %783 = vmatpush1.bf16.msra.mxu0 %v5783_v22  ;;  %v4965_v22 = vld [vmem:[%s8254_s27 + $0xb4] ss:$2 sm:$0xff] }
  0x39   :  { %784 = vmatprep.subr.bf16.mxu0 %v5784_v23  ;;  %v5834_v23 = vld [vmem:[%s8253_s7 + $0x1a4] ss:$8 sps:$4 sm:$0xff]  }
  0x3c   :  { %785 = vmatpush1.bf16.msra.mxu0 %v5786_v24  ;;  %v4974_v24 = vld [vmem:[%s8254_s27 + $0xc5] ss:$2 sm:$0xff] }
  0x3d   :  { %786 = vmatprep.subr.bf16.mxu0 %v5787_v25  ;;  %v4975_v25 = vld [vmem:[%s8254_s27 + $0xd5] ss:$2 sm:$0xff] }
  0x40   :  { %787 = vmatpush1.bf16.msra.mxu0 %v5789_v26  ;;  %v5832_v26 = vld [vmem:[%s8253_s7 + $0x1a0] ss:$8 sps:$4 sm:$0xff]  }
  0x41   :  { %788 = vmatprep.subr.bf16.mxu0 %v5790_v27  ;;  %v201_v27 = vpack.c.bf16 %v4965_v22, %v4964_v21  ;;  %v4953_v21 = vld [vmem:[%s8254_s27 + $0x73] ss:$2 sm:$0xff]  ;;  %v5864_v22 = vld [vmem:[%s8253_s7 + $0x244] ss:$8 sps:$4 sm:$0xff]  }
  0x44   :  { %789 = vmatpush1.bf16.msra.mxu0 %v5792_v28  ;;  %v5837_v28 = vld [vmem:[%s8253_s7 + $0x1b4] ss:$8 sps:$4 sm:$0xff]  }
  0x45   :  { %790 = vmatprep.subr.bf16.mxu0 %v5793_v29  ;;  %v222_v29 = vpack.c.bf16 %v4975_v25, %v4974_v24  ;;  %v5892_v24 = vld [vmem:[%s8255_s1 + $0x64] ss:$8 sps:$4 sm:$0xff]   ;;  %v5862_v25 = vld [vmem:[%s8253_s7 + $0x240] ss:$8 sps:$4 sm:$0xff]  }
  0x48   :  { %791 = vmatpush1.bf16.msra.mxu0 %v5795_v30  ;;  %v5835_v30 = vld [vmem:[%s8253_s7 + $0x1b0] ss:$8 sps:$4 sm:$0xff]  }
  0x49   :  { %792 = vmatprep.subr.bf16.mxu0 %v5796_v31  ;;  %v4966_v31 = vld [vmem:[%s8254_s27 + $0xc4] ss:$2 sm:$0xff] }
  0x4c   :  { %793 = vmatpush1.bf16.msra.mxu0 %v5798_v32  ;;  %v4967_v32 = vld [vmem:[%s8254_s27 + $0xd4] ss:$2 sm:$0xff] }
  0x4d   :  { %794 = vmatprep.subr.bf16.mxu0 %v5799_v33  ;;  %v5840_v33 = vld [vmem:[%s8253_s7 + $0x1c4] ss:$8 sps:$4 sm:$0xff]  }
  0x50   :  { %795 = vmatpush1.bf16.msra.mxu0 %v5801_v34  ;;  %v4976_v34 = vld [vmem:[%s8254_s27 + $0xe5] ss:$2 sm:$0xff] }
  0x51   :  { %877 = vmatprep.subr.bf16.mxu0 %v5804_v37  ;;  %v202_v37 = vpack.c.bf16 %v4967_v32, %v4966_v31  ;;  %v223_v39 = vpack.c.bf16 %v4977_v35, %v4976_v34  ;;  %v4944_v31 = vld [vmem:[%s8254_s27 + $0x62] ss:$2 sm:$0xff]  ;;  %v4945_v32 = vld [vmem:[%s8254_s27 + $0x72] ss:$2 sm:$0xff]  ;;  %v4986_v34 = vld [vmem:[%s8254_s27 + $0x87] ss:$2 sm:$0xff] }
  0x52   :  { %v4987_v35 = vld [vmem:[%s8254_s27 + $0x97] ss:$2 sm:$0xff] }
  0x53   :  { %797 = vmatmul.mubr.bf16.vlgmr.msra.gmra.mrb[0].mxu0 %v100_v40  ;;  %v5841_v40 = vld [vmem:[%s8253_s7 + $0x1d0] ss:$8 sps:$4 sm:$0xff]  }
  0x54   :  { %878 = vmatpush1.bf16.msra.mxu0 %v5802_v41  ;;  %806 = vmatprep.mubr.bf16.mxu0 %v121_v42  ;;  %v4968_v41 = vld [vmem:[%s8254_s27 + $0xe4] ss:$2 sm:$0xff]  ;;  %v4969_v42 = vld [vmem:[%s8254_s27 + $0xf4] ss:$2 sm:$0xff] }
  0x55   :  { %879 = vmatprep.subr.bf16.mxu0 %v5807_v43  ;;  %v5846_v43 = vld [vmem:[%s8253_s7 + $0x1e4] ss:$8 sps:$4 sm:$0xff]  }
  0x58   :  { %880 = vmatpush1.bf16.msra.mxu0 %v5805_v44  ;;  %v4946_v44 = vld [vmem:[%s8254_s27 + $0x3] ss:$2 sm:$0xff] }
  0x59   :  { %881 = vmatprep.subr.bf16.mxu0 %v5810_v47  ;;  %v203_v47 = vpack.c.bf16 %v4969_v42, %v4968_v41  ;;  %v160_v49 = vpack.c.bf16 %v4947_v45, %v4946_v44  ;;  %v5873_v41 = vld [vmem:[%s8253_s7 + $0x274] ss:$8 sps:$4 sm:$0xff]   ;;  %v260_v42 = vpack.c.bf16 %v4987_v35, %v4986_v34 }
  0x5a   :  { %v5901_v44 = vld [vmem:[%s8255_s1 + $0x94] ss:$8 sps:$4 sm:$0xff]  }
  0x5b   :  { %807 = vmatmul.mubr.bf16.gmra.mrb[4].mxu0 %v101_v50  ;;  %v5874_v50 = vld [vmem:[%s8255_s1 + $0x4] ss:$8 sps:$4 sm:$0xff]  }
  0x5c   :  { %882 = vmatpush1.bf16.msra.mxu0 %v5808_v51  ;;  %816 = vmatprep.mubr.bf16.mxu0 %v122_v52  ;;  %v5876_v51 = vld [vmem:[%s8255_s1] ss:$8 sps:$4 sm:$0xff]   ;;  %v5877_v52 = vld [vmem:[%s8255_s1 + $0x14] ss:$8 sps:$4 sm:$0xff]  }
  0x5d   :  { %883 = vmatprep.subr.bf16.mxu0 %v5813_v53  ;;  %v5847_v53 = vld [vmem:[%s8253_s7 + $0x1f0] ss:$8 sps:$4 sm:$0xff]   ;;  %1741 = vmatprep.subr.bf16.mxu1 %v5874_v50 }
  0x5e   :  { %1742 = vmatpush1.bf16.msra.mxu1 %v5876_v51  ;;  %v4978_v45 = vld [vmem:[%s8254_s27 + $0x86] ss:$2 sm:$0xff] }
  0x5f   :  { %1743 = vmatprep.subr.bf16.mxu1 %v5877_v52  ;;  %v5903_v50 = vld [vmem:[%s8255_s1 + $0x90] ss:$8 sps:$4 sm:$0xff]  }
  0x60   :  { %884 = vmatpush1.bf16.msra.mxu0 %v5811_v54  ;;  %v4938_v54 = vld [vmem:[%s8254_s27 + $0x2] ss:$2 sm:$0xff] }
  0x61   :  { %885 = vmatprep.subr.bf16.mxu0 %v5816_v57  ;;  %v4948_v57 = vld [vmem:[%s8254_s27 + $0x23] ss:$2 sm:$0xff] }
  0x62   :  { %1744 = vmatpush1.bf16.msra.mxu1 %v5879_v59  ;;  %v4982_v59 = vld [vmem:[%s8254_s27 + $0xc6] ss:$2 sm:$0xff] }
  0x63   :  { %817 = vmatmul.mubr.bf16.gmra.mrb[8].mxu0 %v102_v61  ;;  %v5880_v61 = vld [vmem:[%s8255_s1 + $0x24] ss:$8 sps:$4 sm:$0xff]  }
  0x64   :  { %886 = vmatpush1.bf16.msra.mxu0 %v5814_v60  ;;  %826 = vmatprep.mubr.bf16.mxu0 %v123_v63  ;;  %v140_v60 = vpack.c.bf16 %v4939_v55, %v4938_v54  ;;  %v161_v63 = vpack.c.bf16 %v4949_v58, %v4948_v57  ;;  %v4981_v54 = vld [vmem:[%s8254_s27 + $0xb6] ss:$2 sm:$0xff]  ;;  %v4990_v55 = vld [vmem:[%s8254_s27 + $0xc7] ss:$2 sm:$0xff] }
  0x65   :  { %887 = vmatprep.subr.bf16.mxu0 %v5819_v62  ;;  %v5850_v62 = vld [vmem:[%s8253_s7 + $0x200] ss:$8 sps:$4 sm:$0xff]   ;;  %1745 = vmatprep.subr.bf16.mxu1 %v5880_v61 }
  0x66   :  { %1746 = vmatpush1.bf16.msra.mxu1 %v5882_v1  ;;  %v4992_v61 = vld [vmem:[%s8254_s27 + $0xe7] ss:$2 sm:$0xff]  ;;  %v4984_v1 = vld [vmem:[%s8254_s27 + $0xe6] ss:$2 sm:$0xff] }
  0x67   :  { %1747 = vmatprep.subr.bf16.mxu1 %v5883_v2  ;;  %v4985_v2 = vld [vmem:[%s8254_s27 + $0xf6] ss:$2 sm:$0xff] }
  0x68   :  { %888 = vmatpush1.bf16.msra.mxu0 %v5817_v0  ;;  %v5855_v0 = vld [vmem:[%s8253_s7 + $0x214] ss:$8 sps:$4 sm:$0xff]  }
  0x69   :  { %889 = vmatprep.subr.bf16.mxu0 %v5822_v3  ;;  %v4940_v3 = vld [vmem:[%s8254_s27 + $0x22] ss:$2 sm:$0xff] }
  0x6a   :  { %v141_v12 = vpack.c.bf16 %v4941_v4, %v4940_v3  ;;  %v243_v3 = vpack.c.bf16 %v4985_v2, %v4984_v1  ;;  %v4954_v4 = vld [vmem:[%s8254_s27 + $0x4] ss:$2 sm:$0xff] }
  0x6b   :  { %827 = vmatmul.mubr.bf16.gmra.mrb[12].mxu0 %v103_v7  ;;  %v4951_v7 = vld [vmem:[%s8254_s27 + $0x53] ss:$2 sm:$0xff] }
  0x6c   :  { %890 = vmatpush1.bf16.msra.mxu0 %v5820_v6  ;;  %836 = vmatprep.mubr.bf16.mxu0 %v220_v9  ;;  %v4950_v6 = vld [vmem:[%s8254_s27 + $0x43] ss:$2 sm:$0xff] }
  0x6d   :  { %891 = vmatprep.subr.bf16.mxu0 %v5825_v8  ;;  %v5858_v8 = vld [vmem:[%s8253_s7 + $0x224] ss:$8 sps:$4 sm:$0xff]   ;;  %v5885_v9 = vld [vmem:[%s8255_s1 + $0x30] ss:$8 sps:$4 sm:$0xff]   ;;  %v162_v14 = vpack.c.bf16 %v4951_v7, %v4950_v6  ;;  %v6376_v6 = vmov 0  }
  0x6e   :  { %1748 = vmatpush1.bf16.msra.mxu1 %v5885_v9  ;;  %v4957_v9 = vld [vmem:[%s8254_s27 + $0x34] ss:$2 sm:$0xff] }
  0x70   :  { %892 = vmatpush1.bf16.msra.mxu0 %v5823_v10  ;;  %v5886_v10 = vld [vmem:[%s8255_s1 + $0x44] ss:$8 sps:$4 sm:$0xff]  }
  0x71   :  { %893 = vmatprep.subr.bf16.mxu0 %v5828_v13  ;;  %v5861_v13 = vld [vmem:[%s8253_s7 + $0x234] ss:$8 sps:$4 sm:$0xff]   ;;  %1749 = vmatprep.subr.bf16.mxu1 %v5886_v10 }
  0x72   :  { %1750 = vmatpush1.bf16.msra.mxu1 %v5888_v15 }
  0x73   :  { %837 = vmatmul.mubr.bf16.gmra.mrb[16].mxu0 %v200_v17  ;;  %v4942_v17 = vld [vmem:[%s8254_s27 + $0x42] ss:$2 sm:$0xff] }
  0x74   :  { %894 = vmatpush1.bf16.msra.mxu0 %v5826_v16  ;;  %846 = vmatprep.mubr.bf16.mxu0 %v221_v19  ;;  %v5889_v16 = vld [vmem:[%s8255_s1 + $0x54] ss:$8 sps:$4 sm:$0xff]   ;;  %v5859_v19 = vld [vmem:[%s8253_s7 + $0x230] ss:$8 sps:$4 sm:$0xff]  }
  0x75   :  { %895 = vmatprep.subr.bf16.mxu0 %v5831_v18  ;;  %v4943_v18 = vld [vmem:[%s8254_s27 + $0x52] ss:$2 sm:$0xff]  ;;  %1751 = vmatprep.subr.bf16.mxu1 %v5889_v16 }
  0x78   :  { %896 = vmatpush1.bf16.msra.mxu0 %v5829_v20  ;;  %v4952_v20 = vld [vmem:[%s8254_s27 + $0x63] ss:$2 sm:$0xff] }
  0x79   :  { %897 = vmatprep.subr.bf16.mxu0 %v5834_v23  ;;  %v5891_v23 = vld [vmem:[%s8255_s1 + $0x50] ss:$8 sps:$4 sm:$0xff]  }
  0x7a   :  { %1752 = vmatpush1.bf16.msra.mxu1 %v5891_v23 }
  0x7b   :  { %847 = vmatmul.mubr.bf16.gmra.mrb[20].mxu0 %v201_v27  ;;  %v5867_v27 = vld [vmem:[%s8253_s7 + $0x254] ss:$8 sps:$4 sm:$0xff]   ;;  %1753 = vmatprep.subr.bf16.mxu1 %v5892_v24 }
  0x7c   :  { %898 = vmatpush1.bf16.msra.mxu0 %v5832_v26  ;;  %856 = vmatprep.mubr.bf16.mxu0 %v222_v29  ;;  %v142_v26 = vpack.c.bf16 %v4943_v18, %v4942_v17  ;;  %v5894_v29 = vld [vmem:[%s8255_s1 + $0x60] ss:$8 sps:$4 sm:$0xff]  }
  0x7d   :  { %899 = vmatprep.subr.bf16.mxu0 %v5837_v28  ;;  %v163_v28 = vpack.c.bf16 %v4953_v21, %v4952_v20 }
  0x7e   :  { %1754 = vmatpush1.bf16.msra.mxu1 %v5894_v29 }
  0x80   :  { %900 = vmatpush1.bf16.msra.mxu0 %v5835_v30  ;;  %v5895_v30 = vld [vmem:[%s8255_s1 + $0x74] ss:$8 sps:$4 sm:$0xff]  }
  0x81   :  { %901 = vmatprep.subr.bf16.mxu0 %v5840_v33  ;;  %v5865_v33 = vld [vmem:[%s8253_s7 + $0x250] ss:$8 sps:$4 sm:$0xff]   ;;  %1755 = vmatprep.subr.bf16.mxu1 %v5895_v30 }
  0x83   :  { %857 = vmatmul.mubr.bf16.gmra.mrb[24].mxu0 %v202_v37  ;;  %v5897_v37 = vld [vmem:[%s8255_s1 + $0x70] ss:$8 sps:$4 sm:$0xff]  }
  0x84   :  { %902 = vmatpush1.bf16.msra.mxu0 %v5838_v36  ;;  %866 = vmatprep.mubr.bf16.mxu0 %v223_v39  ;;  %v5870_v36 = vld [vmem:[%s8253_s7 + $0x264] ss:$8 sps:$4 sm:$0xff]   ;;  %v5868_v39 = vld [vmem:[%s8253_s7 + $0x260] ss:$8 sps:$4 sm:$0xff]  }
  0x85   :  { %903 = vmatprep.subr.bf16.mxu0 %v5843_v38  ;;  %v5898_v38 = vld [vmem:[%s8255_s1 + $0x84] ss:$8 sps:$4 sm:$0xff]   ;;  %1756 = vmatpush1.bf16.msra.mxu1 %v5897_v37 }
  0x86   :  { %1757 = vmatprep.subr.bf16.mxu1 %v5898_v38 }
  0x88   :  { %904 = vmatpush1.bf16.msra.mxu0 %v5841_v40  ;;  %v143_v40 = vpack.c.bf16 %v4945_v32, %v4944_v31 }
  0x89   :  { %905 = vmatprep.subr.bf16.mxu0 %v5846_v43  ;;  %v5900_v43 = vld [vmem:[%s8255_s1 + $0x80] ss:$8 sps:$4 sm:$0xff]  }
  0x8a   :  { %1758 = vmatpush1.bf16.msra.mxu1 %v5900_v43 }
  0x8b   :  { %867 = vmatmul.mubr.bf16.gmra.mrb[28].mxu0 %v203_v47  ;;  %v5871_v47 = vld [vmem:[%s8253_s7 + $0x270] ss:$8 sps:$4 sm:$0xff]   ;;  %1759 = vmatprep.subr.bf16.mxu1 %v5901_v44 }
  0x8c   :  { %906 = vmatpush1.bf16.msra.mxu0 %v5844_v46  ;;  %909 = vmatprep.mubr.bf16.mxu0 %v160_v49  ;;  %v4979_v46 = vld [vmem:[%s8254_s27 + $0x96] ss:$2 sm:$0xff]  ;;  %v4989_v49 = vld [vmem:[%s8254_s27 + $0xb7] ss:$2 sm:$0xff] }
  0x8d   :  { %907 = vmatprep.subr.bf16.mxu0 %v5849_v48  ;;  %v4988_v48 = vld [vmem:[%s8254_s27 + $0xa7] ss:$2 sm:$0xff]  ;;  %v240_v51 = vpack.c.bf16 %v4979_v46, %v4978_v45 }
  0x8e   :  { %v261_v52 = vpack.c.bf16 %v4989_v49, %v4988_v48  ;;  %1760 = vmatpush1.bf16.msra.mxu1 %v5903_v50 }
  0x90   :  { %908 = vmatpush1.bf16.msra.mxu0 %v5847_v53  ;;  %v4980_v53 = vld [vmem:[%s8254_s27 + $0xa6] ss:$2 sm:$0xff] }
  0x91   :  { %990 = vmatprep.subr.bf16.mxu0 %v5852_v56  ;;  %v4991_v56 = vld [vmem:[%s8254_s27 + $0xd7] ss:$2 sm:$0xff]  ;;  %v241_v57 = vpack.c.bf16 %v4981_v54, %v4980_v53 }
  0x92   :  { %v262_v58 = vpack.c.bf16 %v4991_v56, %v4990_v55 }
  0x93   :  { %910 = vmatmul.mubr.bf16.vlgmr.msra.gmra.mrb[0].mxu0 %v140_v60  ;;  %v4983_v60 = vld [vmem:[%s8254_s27 + $0xd6] ss:$2 sm:$0xff] }
  0x94   :  { %991 = vmatpush1.bf16.msra.mxu0 %v5850_v62  ;;  %919 = vmatprep.mubr.bf16.mxu0 %v161_v63  ;;  %v4993_v62 = vld [vmem:[%s8254_s27 + $0xf7] ss:$2 sm:$0xff]  ;;  %v242_v63 = vpack.c.bf16 %v4983_v60, %v4982_v59 }
  0x95   :  { %992 = vmatprep.subr.bf16.mxu0 %v5855_v0  ;;  %v263_v0 = vpack.c.bf16 %v4993_v62, %v4992_v61 }
  0x98   :  { %993 = vmatpush1.bf16.msra.mxu0 %v5853_v5  ;;  %v4955_v5 = vld [vmem:[%s8254_s27 + $0x14] ss:$2 sm:$0xff] }
  0x99   :  { %994 = vmatprep.subr.bf16.mxu0 %v5858_v8  ;;  %v180_v7 = vpack.c.bf16 %v4955_v5, %v4954_v4  ;;  %v4956_v8 = vld [vmem:[%s8254_s27 + $0x24] ss:$2 sm:$0xff] }
  0x9a   :  { %v181_v10 = vpack.c.bf16 %v4957_v9, %v4956_v8 }
  0x9b   :  { %920 = vmatmul.mubr.bf16.gmra.mrb[4].mxu0 %v141_v12  ;;  %v4959_v12 = vld [vmem:[%s8254_s27 + $0x54] ss:$2 sm:$0xff] }
  0x9c   :  { %929 = vmatprep.mubr.bf16.mxu0 %v162_v14  ;;  %995 = vmatpush1.bf16.msra.mxu0 %v5856_v11  ;;  %v4958_v11 = vld [vmem:[%s8254_s27 + $0x44] ss:$2 sm:$0xff] }
  0x9d   :  { %996 = vmatprep.subr.bf16.mxu0 %v5861_v13 }
  0xa0   :  { %997 = vmatpush1.bf16.msra.mxu0 %v5859_v19 }
  0xa1   :  { %998 = vmatprep.subr.bf16.mxu0 %v5864_v22 }
  0xa3   :  { %930 = vmatmul.mubr.bf16.gmra.mrb[8].mxu0 %v142_v26 }
  0xa4   :  { %939 = vmatprep.mubr.bf16.mxu0 %v163_v28  ;;  %999 = vmatpush1.bf16.msra.mxu0 %v5862_v25 }
  0xa5   :  { %1000 = vmatprep.subr.bf16.mxu0 %v5867_v27 }
  0xa8   :  { %1001 = vmatpush1.bf16.msra.mxu0 %v5865_v33 }
  0xa9   :  { %1002 = vmatprep.subr.bf16.mxu0 %v5870_v36 }
  0xab   :  { %940 = vmatmul.mubr.bf16.gmra.mrb[12].mxu0 %v143_v40 }
  0xac   :  { %949 = vmatprep.mubr.bf16.mxu0 %v260_v42  ;;  %1003 = vmatpush1.bf16.msra.mxu0 %v5868_v39 }
  0xad   :  { %1004 = vmatprep.subr.bf16.mxu0 %v5873_v41 }
  0xb0   :  { %1005 = vmatpush1.bf16.msra.mxu0 %v5871_v47 }
  0xb3   :  { %950 = vmatmul.mubr.bf16.gmra.mrb[16].mxu0 %v240_v51 }
  0xb4   :  { %959 = vmatprep.mubr.bf16.mxu0 %v261_v52 }
  0xbb   :  { %960 = vmatmul.mubr.bf16.gmra.mrb[20].mxu0 %v241_v57 }
  0xbc   :  { %969 = vmatprep.mubr.bf16.mxu0 %v262_v58 }
  0xc3   :  { %970 = vmatmul.mubr.bf16.gmra.mrb[24].mxu0 %v242_v63 }
  0xc4   :  { %979 = vmatprep.mubr.bf16.mxu0 %v263_v0 }
  0xcb   :  { %980 = vmatmul.mubr.bf16.gmra.mrb[28].mxu0 %v243_v3 }
  0xcc   :  { %1022 = vmatprep.mubr.bf16.mxu0 %v6376_v6 }
  0xd3   :  { %1023 = vmatmul.mubr.bf16.vlgmr.msra.gmra.mrb[0].mxu0 %v180_v7 }
  0xd4   :  { %1032 = vmatprep.mubr.bf16.mxu0 %v6376_v6 }
  0xdb   :  { %1033 = vmatmul.mubr.bf16.gmra.mrb[4].mxu0 %v181_v10 }
  0xdc   :  { %1042 = vmatprep.mubr.bf16.mxu0 %v6376_v6 }
  0xdd   :  { %33 = vsyncpa [#allocation6], 0  ;;  %v182_v13 = vpack.c.bf16 %v4959_v12, %v4958_v11  ;;  %v4960_v14 = vld [vmem:[%s8254_s27 + $0x64] ss:$2 sm:$0xff]  ;;  %v4961_v15 = vld [vmem:[%s8254_s27 + $0x74] ss:$2 sm:$0xff] }
  0xde   :  { %v183_v16 = vpack.c.bf16 %v4961_v15, %v4960_v14  ;;  %v4994_v17 = vld [vmem:[%s8254_s27 + $0x88] ss:$2 sm:$0xff]  ;;  %v4995_v18 = vld [vmem:[%s8254_s27 + $0x98] ss:$2 sm:$0xff]  ;;  %v6377_v34 = vmov 0.0   ;;  %s8256_s7 = sld [smem:[#allocation11_spill]] }
  0xdf   :  { %v280_v19 = vpack.c.bf16 %v4995_v18, %v4994_v17  ;;  %v4996_v20 = vld [vmem:[%s8254_s27 + $0xa8] ss:$2 sm:$0xff]  ;;  %v4997_v21 = vld [vmem:[%s8254_s27 + $0xb8] ss:$2 sm:$0xff]  ;;  %1142 = vst [vmem:[#allocation2] sm:$0x3] %v6377_v34 }
  0xe0   :  { %v281_v22 = vpack.c.bf16 %v4997_v21, %v4996_v20  ;;  %v4998_v23 = vld [vmem:[%s8254_s27 + $0xc8] ss:$2 sm:$0xff]  ;;  %v4999_v24 = vld [vmem:[%s8254_s27 + $0xd8] ss:$2 sm:$0xff]  ;;  %1143 = vst [vmem:[#allocation2 + $0x48] sm:$0x3] %v6377_v34 }
  0xe1   :  { %v282_v25 = vpack.c.bf16 %v4999_v24, %v4998_v23  ;;  %v5000_v26 = vld [vmem:[%s8254_s27 + $0xe8] ss:$2 sm:$0xff]  ;;  %v5001_v27 = vld [vmem:[%s8254_s27 + $0xf8] ss:$2 sm:$0xff]  ;;  %1144 = vst [vmem:[#allocation2 + $0x42] sm:$0x3] %v6377_v34 }
  0xe2   :  { %v283_v28 = vpack.c.bf16 %v5001_v27, %v5000_v26  ;;  %v5904_v29 = vld [vmem:[%s8255_s1 + $0xa4] ss:$8 sps:$4 sm:$0xff]   ;;  %v5906_v30 = vld [vmem:[%s8255_s1 + $0xa0] ss:$8 sps:$4 sm:$0xff]   ;;  %v5907_v31 = vld [vmem:[%s8255_s1 + $0xb4] ss:$8 sps:$4 sm:$0xff]  }
  0xe3   :  { %1043 = vmatmul.mubr.bf16.gmra.mrb[8].mxu0 %v182_v13  ;;  %1761 = vmatprep.subr.bf16.mxu1 %v5904_v29  ;;  %v5909_v32 = vld [vmem:[%s8255_s1 + $0xb0] ss:$8 sps:$4 sm:$0xff]   ;;  %v5910_v33 = vld [vmem:[%s8255_s1 + $0xc4] ss:$8 sps:$4 sm:$0xff]   ;;  %1153 = vst [vmem:[#allocation2 + $0x8a] sm:$0x3] %v6377_v34 }
  0xe4   :  { %1052 = vmatprep.mubr.bf16.mxu0 %v6376_v6  ;;  %1762 = vmatpush1.bf16.msra.mxu1 %v5906_v30  ;;  %v5912_v35 = vld [vmem:[%s8255_s1 + $0xc0] ss:$8 sps:$4 sm:$0xff]   ;;  %v5913_v36 = vld [vmem:[%s8255_s1 + $0xd4] ss:$8 sps:$4 sm:$0xff]   ;;  %v5915_v37 = vld [vmem:[%s8255_s1 + $0xd0] ss:$8 sps:$4 sm:$0xff]  }
  0xe5   :  { %1763 = vmatprep.subr.bf16.mxu1 %v5907_v31  ;;  %v5916_v38 = vld [vmem:[%s8255_s1 + $0xe4] ss:$8 sps:$4 sm:$0xff]   ;;  %v5918_v39 = vld [vmem:[%s8255_s1 + $0xe0] ss:$8 sps:$4 sm:$0xff]   ;;  %v5919_v40 = vld [vmem:[%s8255_s1 + $0xf4] ss:$8 sps:$4 sm:$0xff]  }
  0xe6   :  { %v5921_v41 = vld [vmem:[%s8255_s1 + $0xf0] ss:$8 sps:$4 sm:$0xff]   ;;  %v5924_v42 = vld [vmem:[%s8255_s1 + $0x104] ss:$8 sps:$4 sm:$0xff]   ;;  %v7112_v45 = vld [vmem:[%s8256_s7] ss:$0 sm:$0xff] }
  0xe7   :  { %v5922_v11 = vld [vmem:[%s8255_s1 + $0x100] ss:$8 sps:$4 sm:$0xff]   ;;  %v5927_v14 = vld [vmem:[%s8255_s1 + $0x114] ss:$8 sps:$4 sm:$0xff]   ;;  %v5925_v20 = vld [vmem:[%s8255_s1 + $0x110] ss:$8 sps:$4 sm:$0xff]  }
  0xe8   :  { %1764 = vmatpush1.bf16.msra.mxu1 %v5909_v32  ;;  %v5930_v21 = vld [vmem:[%s8255_s1 + $0x124] ss:$8 sps:$4 sm:$0xff]   ;;  %v5928_v23 = vld [vmem:[%s8255_s1 + $0x120] ss:$8 sps:$4 sm:$0xff]   ;;  %v5933_v31 = vld [vmem:[%s8255_s1 + $0x134] ss:$8 sps:$4 sm:$0xff]  }
  0xe9   :  { %1765 = vmatprep.subr.bf16.mxu1 %v5910_v33  ;;  %s8257_s4 = sld [smem:[#allocation14_spill]]  ;;  %s8258_s6 = sld [smem:[#allocation13_spill]]  ;;  %vm6378_vm0 = vmmov 0   ;;  %vm3653_vm1 = vcmask 261120   ;;  %vm4102_vm2 = vcmask 1040384   ;;  %vm4675_vm4 = vcmask 123904  }
  0xea   :  { %s8259_s8 = sld [smem:[#allocation16_spill]]  ;;  %s8260_s0 = sld [smem:[#allocation15_spill]]  ;;  %vm4835_vm6 = vcmask 523264   ;;  %vm4882_vm8 = vcmask 9216  }
  0xeb   :  { %1053 = vmatmul.mubr.bf16.gmra.mrb[12].mxu0 %v183_v16  ;;  %s8261_s7 = sld [smem:[#allocation18_spill]]  ;;  %s8262_s30 = sld [smem:[#allocation17_spill]] }
  0xec   :  { %1062 = vmatprep.mubr.bf16.mxu0 %v6376_v6  ;;  %1766 = vmatpush1.bf16.msra.mxu1 %v5912_v35  ;;  %s8263_s10 = sld [smem:[#allocation19_spill]] }
  0xed   :  { %1767 = vmatprep.subr.bf16.mxu1 %v5913_v36 }
  0xf0   :  { %1768 = vmatpush1.bf16.msra.mxu1 %v5915_v37 }
  0xf1   :  { %1769 = vmatprep.subr.bf16.mxu1 %v5916_v38  ;;  %v5931_v38 = vld [vmem:[%s8255_s1 + $0x130] ss:$8 sps:$4 sm:$0xff]  }
  0xf3   :  { %1063 = vmatmul.mubr.bf16.gmra.mrb[16].mxu0 %v280_v19 }
  0xf4   :  { %1072 = vmatprep.mubr.bf16.mxu0 %v6376_v6  ;;  %1770 = vmatpush1.bf16.msra.mxu1 %v5918_v39  ;;  %v5936_v39 = vld [vmem:[%s8255_s1 + $0x144] ss:$8 sps:$4 sm:$0xff]  }
  0xf5   :  { %1771 = vmatprep.subr.bf16.mxu1 %v5919_v40 }
  0xf8   :  { %1772 = vmatpush1.bf16.msra.mxu1 %v5921_v41 }
  0xf9   :  { %1814 = vmatprep.subr.bf16.mxu1 %v5924_v42 }
  0xfb   :  { %1073 = vmatmul.mubr.bf16.gmra.mrb[20].mxu0 %v281_v22 }
  0xfc   :  { %1082 = vmatprep.mubr.bf16.mxu0 %v6376_v6 }
 0x103   :  { %1083 = vmatmul.mubr.bf16.gmra.mrb[24].mxu0 %v282_v25 }
 0x104   :  { %1092 = vmatprep.mubr.bf16.mxu0 %v6376_v6 }
 0x10b   :  { %1093 = vmatmul.mubr.bf16.gmra.mrb[28].mxu0 %v283_v28 }
 0x1a6   :  { %v1024_v43 = vpop.f32.mrb[0].mxu0 }
 0x1a7   :  { %v1026_v44 = vpop.f32.mrb[1].mxu0 }
 0x1a8   :  { %v1103_v46 = vmax.f32 %v1024_v43, %v1026_v44  ;;  %v1028_v47 = vpop.f32.mrb[2].mxu0 }
 0x1a9   :  { %v1030_v48 = vpop.f32.mrb[3].mxu0 }
 0x1aa   :  { %v1126_v49 = vadd.f32 %v7112_v45, %v1103_v46  ;;  %v1104_v50 = vmax.f32 %v1028_v47, %v1030_v48  ;;  %v5934_v46 = vld [vmem:[%s8255_s1 + $0x140] ss:$8 sps:$4 sm:$0xff]  }
 0x1ac   :  { %1145 = vst [vmem:[#allocation2 + $0x2] sm:$0xff] %v1126_v49  ;;  %v1127_v51 = vadd.f32 %v7112_v45, %v1104_v50  ;;  %v5939_v49 = vld [vmem:[%s8255_s1 + $0x154] ss:$8 sps:$4 sm:$0xff]  }
 0x1ae   :  { %1146 = vst [vmem:[#allocation2 + $0xa] sm:$0xff] %v1127_v51  ;;  %v1034_v52 = vpop.f32.mrb[4].mxu0 }
 0x1af   :  { %v1036_v53 = vpop.f32.mrb[5].mxu0 }
 0x1b0   :  { %v1105_v54 = vmax.f32 %v1034_v52, %v1036_v53  ;;  %v1038_v55 = vpop.f32.mrb[6].mxu0 }
 0x1b1   :  { %v1040_v56 = vpop.f32.mrb[7].mxu0 }
 0x1b2   :  { %v1128_v57 = vadd.f32 %v7112_v45, %v1105_v54  ;;  %v1106_v58 = vmax.f32 %v1038_v55, %v1040_v56  ;;  %v5937_v55 = vld [vmem:[%s8255_s1 + $0x150] ss:$8 sps:$4 sm:$0xff]   ;;  %v5942_v56 = vld [vmem:[%s8255_s1 + $0x164] ss:$8 sps:$4 sm:$0xff]  }
 0x1b4   :  { %1147 = vst [vmem:[#allocation2 + $0x12] sm:$0xff] %v1128_v57  ;;  %v1129_v59 = vadd.f32 %v7112_v45, %v1106_v58 }
 0x1b5   :  { %v1172_v4 = vld [vmem:[#allocation2 + $0x1] ss:$2 sm:$0xff]  ;;  %v1162_v7 = vld [vmem:[#allocation2] ss:$2 sm:$0xff] }
 0x1b6   :  { %1148 = vst [vmem:[#allocation2 + $0x1a] sm:$0xff] %v1129_v59  ;;  %v1044_v60 = vpop.f32.mrb[8].mxu0  ;;  %v5940_v59 = vld [vmem:[%s8255_s1 + $0x160] ss:$8 sps:$4 sm:$0xff]  }
 0x1b7   :  { %v1046_v61 = vpop.f32.mrb[9].mxu0 }
 0x1b8   :  { %v1107_v62 = vmax.f32 %v1044_v60, %v1046_v61  ;;  %v1048_v63 = vpop.f32.mrb[10].mxu0  ;;  %v5945_v61 = vld [vmem:[%s8255_s1 + $0x174] ss:$8 sps:$4 sm:$0xff]  }
 0x1b9   :  { %v1050_v0 = vpop.f32.mrb[11].mxu0 }
 0x1ba   :  { %v1130_v1 = vadd.f32 %v7112_v45, %v1107_v62  ;;  %v1108_v2 = vmax.f32 %v1048_v63, %v1050_v0 }
 0x1bc   :  { %1149 = vst [vmem:[#allocation2 + $0x22] sm:$0xff] %v1130_v1  ;;  %v1131_v3 = vadd.f32 %v7112_v45, %v1108_v2 }
 0x1bd   :  { %v1174_v5 = vld [vmem:[#allocation2 + $0x11] ss:$2 sm:$0xff]  ;;  %v1164_v8 = vld [vmem:[#allocation2 + $0x10] ss:$2 sm:$0xff] }
 0x1be   :  { %1150 = vst [vmem:[#allocation2 + $0x2a] sm:$0xff] %v1131_v3  ;;  %v1054_v9 = vpop.f32.mrb[12].mxu0  ;;  %v1179_v10 = vpack.c.bf16 %v1174_v5, %v1172_v4  ;;  %v1169_v12 = vpack.c.bf16 %v1164_v8, %v1162_v7  ;;  %v5943_v3 = vld [vmem:[%s8255_s1 + $0x170] ss:$8 sps:$4 sm:$0xff]   ;;  %v5948_v4 = vld [vmem:[%s8255_s1 + $0x184] ss:$8 sps:$4 sm:$0xff]  }
 0x1bf   :  { %v1056_v13 = vpop.f32.mrb[13].mxu0 }
 0x1c0   :  { %v1109_v15 = vmax.f32 %v1054_v9, %v1056_v13  ;;  %v1058_v16 = vpop.f32.mrb[14].mxu0  ;;  %1773 = vmatprep.mubr.bf16.mxu1 %v1179_v10  ;;  %v5946_v13 = vld [vmem:[%s8255_s1 + $0x180] ss:$8 sps:$4 sm:$0xff]  }
 0x1c1   :  { %v1060_v17 = vpop.f32.mrb[15].mxu0  ;;  %1774 = vmatmul.mubr.bf16.vlgmr.msra.gmra.mrb[0].mxu1 %v1169_v12 }
 0x1c2   :  { %v1132_v18 = vadd.f32 %v7112_v45, %v1109_v15  ;;  %v1110_v19 = vmax.f32 %v1058_v16, %v1060_v17  ;;  %1815 = vmatpush1.bf16.msra.mxu1 %v5922_v11  ;;  %v5951_v16 = vld [vmem:[%s8255_s1 + $0x194] ss:$8 sps:$4 sm:$0xff]  }
 0x1c3   :  { %1816 = vmatprep.subr.bf16.mxu1 %v5927_v14  ;;  %v7137_v26 = vld [vmem:[#allocation2 + $0x14] ss:$2 sm:$0xff] }
 0x1c4   :  { %1151 = vst [vmem:[#allocation2 + $0x32] sm:$0xff] %v1132_v18  ;;  %v1133_v22 = vadd.f32 %v7112_v45, %v1110_v19 }
 0x1c5   :  { %v1176_v24 = vld [vmem:[#allocation2 + $0x21] ss:$2 sm:$0xff]  ;;  %v1166_v25 = vld [vmem:[#allocation2 + $0x20] ss:$2 sm:$0xff] }
 0x1c6   :  { %1152 = vst [vmem:[#allocation2 + $0x3a] sm:$0xff] %v1133_v22  ;;  %1817 = vmatpush1.bf16.msra.mxu1 %v5925_v20  ;;  %v1064_v27 = vpop.f32.mrb[16].mxu0  ;;  %v7139_v28 = vld [vmem:[#allocation2 + $0x23] ss:$2 sm:$0xff]  ;;  %v7141_v29 = vld [vmem:[#allocation2 + $0x22] ss:$2 sm:$0xff] }
 0x1c7   :  { %v1066_v30 = vpop.f32.mrb[17].mxu0  ;;  %1818 = vmatprep.subr.bf16.mxu1 %v5930_v21  ;;  %1983 = vst [vmem:[#allocation2 + $0x22] sm:$0x3] %v6377_v34  ;;  %v5949_v22 = vld [vmem:[%s8255_s1 + $0x190] ss:$8 sps:$4 sm:$0xff]  }
 0x1c8   :  { %v1111_v32 = vmax.f32 %v1064_v27, %v1066_v30  ;;  %v1068_v33 = vpop.f32.mrb[18].mxu0 }
 0x1c9   :  { %v1070_v35 = vpop.f32.mrb[19].mxu0 }
 0x1ca   :  { %v1134_v36 = vadd.f32 %v7112_v45, %v1111_v32  ;;  %v1112_v37 = vmax.f32 %v1068_v33, %v1070_v35  ;;  %1819 = vmatpush1.bf16.msra.mxu1 %v5928_v23  ;;  %v5954_v23 = vld [vmem:[%s8255_s1 + $0x1a4] ss:$8 sps:$4 sm:$0xff]   ;;  %v5957_v35 = vld [vmem:[%s8255_s1 + $0x1b4] ss:$8 sps:$4 sm:$0xff]  }
 0x1cb   :  { %1820 = vmatprep.subr.bf16.mxu1 %v5933_v31 }
 0x1cc   :  { %1154 = vst [vmem:[#allocation2 + $0x4a] sm:$0xff] %v1134_v36  ;;  %v1135_v40 = vadd.f32 %v7112_v45, %v1112_v37  ;;  %v5960_v36 = vld [vmem:[%s8255_s1 + $0x1c4] ss:$8 sps:$4 sm:$0xff]  }
 0x1cd   :  { %v1178_v41 = vld [vmem:[#allocation2 + $0x31] ss:$2 sm:$0xff]  ;;  %v1168_v42 = vld [vmem:[#allocation2 + $0x30] ss:$2 sm:$0xff] }
 0x1ce   :  { %1155 = vst [vmem:[#allocation2 + $0x52] sm:$0xff] %v1135_v40  ;;  %1821 = vmatpush1.bf16.msra.mxu1 %v5931_v38  ;;  %v1074_v43 = vpop.f32.mrb[20].mxu0  ;;  %v1180_v44 = vpack.c.bf16 %v1178_v41, %v1176_v24  ;;  %v1170_v47 = vpack.c.bf16 %v1168_v42, %v1166_v25  ;;  %v5952_v25 = vld [vmem:[%s8255_s1 + $0x1a0] ss:$8 sps:$4 sm:$0xff]  }
 0x1cf   :  { %v1076_v48 = vpop.f32.mrb[21].mxu0  ;;  %1822 = vmatprep.subr.bf16.mxu1 %v5936_v39  ;;  %v1194_v39 = vld [vmem:[#allocation2 + $0x13] ss:$2 sm:$0xff] }
 0x1d0   :  { %v1113_v50 = vmax.f32 %v1074_v43, %v1076_v48  ;;  %v1078_v51 = vpop.f32.mrb[22].mxu0  ;;  %1783 = vmatprep.mubr.bf16.mxu1 %v1180_v44  ;;  %v5958_v41 = vld [vmem:[%s8255_s1 + $0x1c0] ss:$8 sps:$4 sm:$0xff]   ;;  %v5963_v44 = vld [vmem:[%s8255_s1 + $0x1d4] ss:$8 sps:$4 sm:$0xff]  }
 0x1d1   :  { %v1080_v52 = vpop.f32.mrb[23].mxu0  ;;  %1784 = vmatmul.mubr.bf16.gmra.mrb[4].mxu1 %v1170_v47  ;;  %v1192_v43 = vld [vmem:[#allocation2 + $0x3] ss:$2 sm:$0xff] }
 0x1d2   :  { %v1136_v53 = vadd.f32 %v7112_v45, %v1113_v50  ;;  %v1114_v54 = vmax.f32 %v1078_v51, %v1080_v52  ;;  %1823 = vmatpush1.bf16.msra.mxu1 %v5934_v46  ;;  %v1199_v46 = vpack.c.bf16 %v1194_v39, %v1192_v43  ;;  %v5961_v47 = vld [vmem:[%s8255_s1 + $0x1d0] ss:$8 sps:$4 sm:$0xff]   ;;  %v5966_v48 = vld [vmem:[%s8255_s1 + $0x1e4] ss:$8 sps:$4 sm:$0xff]   ;;  %v5969_v50 = vld [vmem:[%s8255_s1 + $0x1f4] ss:$8 sps:$4 sm:$0xff]  }
 0x1d3   :  { %1824 = vmatprep.subr.bf16.mxu1 %v5939_v49  ;;  %v5964_v49 = vld [vmem:[%s8255_s1 + $0x1e0] ss:$8 sps:$4 sm:$0xff]   ;;  %v5967_v51 = vld [vmem:[%s8255_s1 + $0x1f0] ss:$8 sps:$4 sm:$0xff]   ;;  %v5972_v52 = vld [vmem:[%s8255_s1 + $0x204] ss:$8 sps:$4 sm:$0xff]  }
 0x1d4   :  { %1156 = vst [vmem:[#allocation2 + $0x5a] sm:$0xff] %v1136_v53  ;;  %v1137_v57 = vadd.f32 %v7112_v45, %v1114_v54  ;;  %v1184_v53 = vld [vmem:[#allocation2 + $0x12] ss:$2 sm:$0xff]  ;;  %v1198_v54 = vld [vmem:[#allocation2 + $0x33] ss:$2 sm:$0xff] }
 0x1d5   :  { %v1222_v7 = vld [vmem:[#allocation2 + $0x49] ss:$2 sm:$0xff]  ;;  %v1212_v9 = vld [vmem:[#allocation2 + $0x48] ss:$2 sm:$0xff] }
 0x1d6   :  { %1157 = vst [vmem:[#allocation2 + $0x62] sm:$0xff] %v1137_v57  ;;  %1825 = vmatpush1.bf16.msra.mxu1 %v5937_v55  ;;  %v1084_v58 = vpop.f32.mrb[24].mxu0  ;;  %v1182_v55 = vld [vmem:[#allocation2 + $0x2] ss:$2 sm:$0xff] }
 0x1d7   :  { %v1086_v60 = vpop.f32.mrb[25].mxu0  ;;  %1826 = vmatprep.subr.bf16.mxu1 %v5942_v56  ;;  %v5970_v56 = vld [vmem:[%s8255_s1 + $0x200] ss:$8 sps:$4 sm:$0xff]   ;;  %v1189_v57 = vpack.c.bf16 %v1184_v53, %v1182_v55  ;;  %v6026_v53 = vld [vmem:[%s8257_s4 + $0xa4] ss:$8 sps:$4 sm:$0xff]  }
 0x1d8   :  { %v1115_v62 = vmax.f32 %v1084_v58, %v1086_v60  ;;  %v1088_v63 = vpop.f32.mrb[26].mxu0  ;;  %v5975_v58 = vld [vmem:[%s8255_s1 + $0x214] ss:$8 sps:$4 sm:$0xff]   ;;  %v5973_v60 = vld [vmem:[%s8255_s1 + $0x210] ss:$8 sps:$4 sm:$0xff]  }
 0x1d9   :  { %v1090_v0 = vpop.f32.mrb[27].mxu0  ;;  %v6029_v55 = vld [vmem:[%s8257_s4 + $0xb4] ss:$8 sps:$4 sm:$0xff]  }
 0x1da   :  { %v1138_v1 = vadd.f32 %v7112_v45, %v1115_v62  ;;  %v1116_v2 = vmax.f32 %v1088_v63, %v1090_v0  ;;  %1827 = vmatpush1.bf16.msra.mxu1 %v5940_v59  ;;  %v1200_v59 = vpack.c.bf16 %v1198_v54, %v7139_v28  ;;  %v1188_v62 = vld [vmem:[#allocation2 + $0x32] ss:$2 sm:$0xff] }
 0x1db   :  { %1828 = vmatprep.subr.bf16.mxu1 %v5945_v61  ;;  %v5978_v61 = vld [vmem:[%s8255_s1 + $0x224] ss:$8 sps:$4 sm:$0xff]   ;;  %v5976_v0 = vld [vmem:[%s8255_s1 + $0x220] ss:$8 sps:$4 sm:$0xff]   ;;  %v1190_v28 = vpack.c.bf16 %v1188_v62, %v7141_v29 }
 0x1dc   :  { %1158 = vst [vmem:[#allocation2 + $0x6a] sm:$0xff] %v1138_v1  ;;  %v1139_v5 = vadd.f32 %v7112_v45, %v1116_v2  ;;  %v1242_v1 = vld [vmem:[#allocation2 + $0x4b] ss:$2 sm:$0xff] }
 0x1dd   :  { %v1224_v8 = vld [vmem:[#allocation2 + $0x59] ss:$2 sm:$0xff]  ;;  %v1214_v10 = vld [vmem:[#allocation2 + $0x58] ss:$2 sm:$0xff] }
 0x1de   :  { %1159 = vst [vmem:[#allocation2 + $0x72] sm:$0xff] %v1139_v5  ;;  %1829 = vmatpush1.bf16.msra.mxu1 %v5943_v3  ;;  %v1094_v11 = vpop.f32.mrb[28].mxu0  ;;  %v1229_v12 = vpack.c.bf16 %v1224_v8, %v1222_v7  ;;  %v1219_v14 = vpack.c.bf16 %v1214_v10, %v1212_v9  ;;  %v1244_v63 = vld [vmem:[#allocation2 + $0x5b] ss:$2 sm:$0xff]  ;;  %v1234_v29 = vld [vmem:[#allocation2 + $0x5a] ss:$2 sm:$0xff] }
 0x1df   :  { %v1096_v15 = vpop.f32.mrb[29].mxu0  ;;  %1830 = vmatprep.subr.bf16.mxu1 %v5948_v4  ;;  %v5981_v2 = vld [vmem:[%s8255_s1 + $0x234] ss:$8 sps:$4 sm:$0xff]   ;;  %v1249_v3 = vpack.c.bf16 %v1244_v63, %v1242_v1  ;;  %v5979_v4 = vld [vmem:[%s8255_s1 + $0x230] ss:$8 sps:$4 sm:$0xff]  }
 0x1e0   :  { %v1117_v17 = vmax.f32 %v1094_v11, %v1096_v15  ;;  %v1098_v18 = vpop.f32.mrb[30].mxu0  ;;  %1793 = vmatprep.mubr.bf16.mxu1 %v1229_v12  ;;  %v5984_v5 = vld [vmem:[%s8255_s1 + $0x244] ss:$8 sps:$4 sm:$0xff]   ;;  %v5982_v9 = vld [vmem:[%s8255_s1 + $0x240] ss:$8 sps:$4 sm:$0xff]  }
 0x1e1   :  { %v1100_v19 = vpop.f32.mrb[31].mxu0  ;;  %1794 = vmatmul.mubr.bf16.gmra.mrb[8].mxu1 %v1219_v14  ;;  %v1232_v8 = vld [vmem:[#allocation2 + $0x4a] ss:$2 sm:$0xff] }
 0x1e2   :  { %v1140_v20 = vadd.f32 %v7112_v45, %v1117_v17  ;;  %v1118_v21 = vmax.f32 %v1098_v18, %v1100_v19  ;;  %1831 = vmatpush1.bf16.msra.mxu1 %v5946_v13  ;;  %v1239_v10 = vpack.c.bf16 %v1234_v29, %v1232_v8  ;;  %v5987_v11 = vld [vmem:[%s8255_s1 + $0x254] ss:$8 sps:$4 sm:$0xff]   ;;  %v5985_v13 = vld [vmem:[%s8255_s1 + $0x250] ss:$8 sps:$4 sm:$0xff]   ;;  %v5990_v14 = vld [vmem:[%s8255_s1 + $0x264] ss:$8 sps:$4 sm:$0xff]  }
 0x1e3   :  { %1832 = vmatprep.subr.bf16.mxu1 %v5951_v16  ;;  %v7200_v30 = vld [vmem:[#allocation2 + $0x5c] ss:$2 sm:$0xff]  ;;  %v5991_v19 = vld [vmem:[%s8255_s1 + $0x270] ss:$8 sps:$4 sm:$0xff]  }
 0x1e4   :  { %1160 = vst [vmem:[#allocation2 + $0x7a] sm:$0xff] %v1140_v20  ;;  %v1141_v24 = vadd.f32 %v7112_v45, %v1118_v21  ;;  %v5955_v45 = vld [vmem:[%s8255_s1 + $0x1b0] ss:$8 sps:$4 sm:$0xff]   ;;  %v5988_v16 = vld [vmem:[%s8255_s1 + $0x260] ss:$8 sps:$4 sm:$0xff]  }
 0x1e5   :  { %v1226_v27 = vld [vmem:[#allocation2 + $0x69] ss:$2 sm:$0xff]  ;;  %v1216_v31 = vld [vmem:[#allocation2 + $0x68] ss:$2 sm:$0xff] }
 0x1e6   :  { %1161 = vst [vmem:[#allocation2 + $0x82] sm:$0xff] %v1141_v24  ;;  %1833 = vmatpush1.bf16.msra.mxu1 %v5949_v22  ;;  %v7202_v32 = vld [vmem:[#allocation2 + $0x6b] ss:$2 sm:$0xff]  ;;  %v7204_v33 = vld [vmem:[#allocation2 + $0x6a] ss:$2 sm:$0xff] }
 0x1e7   :  { %1834 = vmatprep.subr.bf16.mxu1 %v5954_v23  ;;  %1988 = vst [vmem:[#allocation2 + $0x6a] sm:$0x3] %v6377_v34  ;;  %v5993_v18 = vld [vmem:[%s8255_s1 + $0x274] ss:$8 sps:$4 sm:$0xff]   ;;  %v5996_v20 = vld [vmem:[%s8257_s4 + $0x4] ss:$8 sps:$4 sm:$0xff]  }
 0x1e8   :  { %v1202_v21 = vld [vmem:[#allocation2 + $0x4] ss:$2 sm:$0xff]  ;;  %v5999_v24 = vld [vmem:[%s8257_s4 + $0x14] ss:$8 sps:$4 sm:$0xff]  }
 0x1e9   :  { %v5994_v22 = vld [vmem:[%s8257_s4] ss:$8 sps:$4 sm:$0xff]   ;;  %v1209_v23 = vpack.c.bf16 %v7137_v26, %v1202_v21  ;;  %v6041_v63 = vld [vmem:[%s8257_s4 + $0xf4] ss:$8 sps:$4 sm:$0xff]  }
 0x1ea   :  { %1835 = vmatpush1.bf16.msra.mxu1 %v5952_v25  ;;  %v5997_v25 = vld [vmem:[%s8257_s4 + $0x10] ss:$8 sps:$4 sm:$0xff]   ;;  %v6024_v54 = vld [vmem:[%s8257_s4 + $0xa0] ss:$8 sps:$4 sm:$0xff]  }
 0x1eb   :  { %1836 = vmatprep.subr.bf16.mxu1 %v5957_v35  ;;  %v1206_v26 = vld [vmem:[#allocation2 + $0x24] ss:$2 sm:$0xff]  ;;  %v6005_v35 = vld [vmem:[%s8257_s4 + $0x34] ss:$8 sps:$4 sm:$0xff]  }
 0x1ec   :  { %v6036_v62 = vld [vmem:[%s8257_s4 + $0xe0] ss:$8 sps:$4 sm:$0xff]  }
 0x1ed   :  { %v1228_v37 = vld [vmem:[#allocation2 + $0x79] ss:$2 sm:$0xff]  ;;  %v1218_v38 = vld [vmem:[#allocation2 + $0x78] ss:$2 sm:$0xff] }
 0x1ee   :  { %1837 = vmatpush1.bf16.msra.mxu1 %v5955_v45  ;;  %v1230_v40 = vpack.c.bf16 %v1228_v37, %v1226_v27  ;;  %v1220_v42 = vpack.c.bf16 %v1218_v38, %v1216_v31  ;;  %v1248_v7 = vld [vmem:[#allocation2 + $0x7b] ss:$2 sm:$0xff]  ;;  %v1238_v15 = vld [vmem:[#allocation2 + $0x7a] ss:$2 sm:$0xff] }
 0x1ef   :  { %1838 = vmatprep.subr.bf16.mxu1 %v5960_v36  ;;  %v1250_v12 = vpack.c.bf16 %v1248_v7, %v7202_v32  ;;  %v1240_v17 = vpack.c.bf16 %v1238_v15, %v7204_v33  ;;  %v6002_v27 = vld [vmem:[%s8257_s4 + $0x24] ss:$8 sps:$4 sm:$0xff]   ;;  %v1208_v31 = vld [vmem:[#allocation2 + $0x34] ss:$2 sm:$0xff] }
 0x1f0   :  { %1803 = vmatprep.mubr.bf16.mxu1 %v1230_v40  ;;  %v6000_v32 = vld [vmem:[%s8257_s4 + $0x20] ss:$8 sps:$4 sm:$0xff]   ;;  %v1210_v33 = vpack.c.bf16 %v1208_v31, %v1206_v26  ;;  %v6003_v45 = vld [vmem:[%s8257_s4 + $0x30] ss:$8 sps:$4 sm:$0xff]   ;;  %v6008_v36 = vld [vmem:[%s8257_s4 + $0x44] ss:$8 sps:$4 sm:$0xff]  }
 0x1f1   :  { %1804 = vmatmul.mubr.bf16.gmra.mrb[12].mxu1 %v1220_v42  ;;  %v1252_v37 = vld [vmem:[#allocation2 + $0x4c] ss:$2 sm:$0xff]  ;;  %v6006_v38 = vld [vmem:[%s8257_s4 + $0x40] ss:$8 sps:$4 sm:$0xff]  }
 0x1f2   :  { %1839 = vmatpush1.bf16.msra.mxu1 %v5958_v41  ;;  %1846 = vmatprep.mubr.bf16.mxu1 %v1199_v46  ;;  %v1259_v39 = vpack.c.bf16 %v7200_v30, %v1252_v37  ;;  %v6011_v40 = vld [vmem:[%s8257_s4 + $0x54] ss:$8 sps:$4 sm:$0xff]   ;;  %v6009_v41 = vld [vmem:[%s8257_s4 + $0x50] ss:$8 sps:$4 sm:$0xff]   ;;  %v6014_v42 = vld [vmem:[%s8257_s4 + $0x64] ss:$8 sps:$4 sm:$0xff]  }
 0x1f3   :  { %1840 = vmatprep.subr.bf16.mxu1 %v5963_v44  ;;  %v1258_v43 = vld [vmem:[#allocation2 + $0x7c] ss:$2 sm:$0xff]  ;;  %v1256_v30 = vld [vmem:[#allocation2 + $0x6c] ss:$2 sm:$0xff] }
 0x1f4   :  { %v6012_v44 = vld [vmem:[%s8257_s4 + $0x60] ss:$8 sps:$4 sm:$0xff]   ;;  %v1260_v46 = vpack.c.bf16 %v1258_v43, %v1256_v30  ;;  %v6122_v31 = vld [vmem:[%s8259_s8 + $0x24] ss:$8 sps:$4 sm:$0xff]   ;;  %v6047_v37 = vld [vmem:[%s8257_s4 + $0x114] ss:$8 sps:$4 sm:$0xff]  }
 0x1f6   :  { %1841 = vmatpush1.bf16.msra.mxu1 %v5961_v47  ;;  %v6017_v47 = vld [vmem:[%s8257_s4 + $0x74] ss:$8 sps:$4 sm:$0xff]  }
 0x1f7   :  { %1842 = vmatprep.subr.bf16.mxu1 %v5966_v48  ;;  %v6015_v48 = vld [vmem:[%s8257_s4 + $0x70] ss:$8 sps:$4 sm:$0xff]  }
 0x1fa   :  { %1843 = vmatpush1.bf16.msra.mxu1 %v5964_v49  ;;  %v6020_v49 = vld [vmem:[%s8257_s4 + $0x84] ss:$8 sps:$4 sm:$0xff]  }
 0x1fb   :  { %1844 = vmatprep.subr.bf16.mxu1 %v5969_v50  ;;  %v6018_v50 = vld [vmem:[%s8257_s4 + $0x80] ss:$8 sps:$4 sm:$0xff]  }
 0x1fe   :  { %1845 = vmatpush1.bf16.msra.mxu1 %v5967_v51  ;;  %v6023_v51 = vld [vmem:[%s8257_s4 + $0x94] ss:$8 sps:$4 sm:$0xff]  }
 0x1ff   :  { %1887 = vmatprep.subr.bf16.mxu1 %v5972_v52  ;;  %v6021_v52 = vld [vmem:[%s8257_s4 + $0x90] ss:$8 sps:$4 sm:$0xff]  }
 0x201   :  { %1847 = vmatmul.mubr.bf16.vlgmr.msra.gmra.mrb[0].mxu1 %v1189_v57  ;;  %v6032_v57 = vld [vmem:[%s8257_s4 + $0xc4] ss:$8 sps:$4 sm:$0xff]  }
 0x202   :  { %1856 = vmatprep.mubr.bf16.mxu1 %v1200_v59  ;;  %1888 = vmatpush1.bf16.msra.mxu1 %v5970_v56  ;;  %v6027_v56 = vld [vmem:[%s8257_s4 + $0xb0] ss:$8 sps:$4 sm:$0xff]   ;;  %v6035_v59 = vld [vmem:[%s8257_s4 + $0xd4] ss:$8 sps:$4 sm:$0xff]  }
 0x203   :  { %1889 = vmatprep.subr.bf16.mxu1 %v5975_v58  ;;  %v6030_v58 = vld [vmem:[%s8257_s4 + $0xc0] ss:$8 sps:$4 sm:$0xff]  }
 0x206   :  { %1890 = vmatpush1.bf16.msra.mxu1 %v5973_v60  ;;  %v6033_v60 = vld [vmem:[%s8257_s4 + $0xd0] ss:$8 sps:$4 sm:$0xff]  }
 0x207   :  { %1891 = vmatprep.subr.bf16.mxu1 %v5978_v61  ;;  %v6038_v61 = vld [vmem:[%s8257_s4 + $0xe4] ss:$8 sps:$4 sm:$0xff]  }
 0x209   :  { %1857 = vmatmul.mubr.bf16.gmra.mrb[4].mxu1 %v1190_v28  ;;  %v6044_v28 = vld [vmem:[%s8257_s4 + $0x104] ss:$8 sps:$4 sm:$0xff]  }
 0x20a   :  { %1866 = vmatprep.mubr.bf16.mxu1 %v1249_v3  ;;  %1892 = vmatpush1.bf16.msra.mxu1 %v5976_v0  ;;  %v6039_v0 = vld [vmem:[%s8257_s4 + $0xf0] ss:$8 sps:$4 sm:$0xff]   ;;  %v7397_v3 = vld [vmem:[%s8258_s6] ss:$0 sm:$0xff] }
 0x20b   :  { %1893 = vmatprep.subr.bf16.mxu1 %v5981_v2 }
 0x20e   :  { %1894 = vmatpush1.bf16.msra.mxu1 %v5979_v4 }
 0x20f   :  { %1895 = vmatprep.subr.bf16.mxu1 %v5984_v5 }
 0x211   :  { %1867 = vmatmul.mubr.bf16.gmra.mrb[8].mxu1 %v1239_v10 }
 0x212   :  { %1876 = vmatprep.mubr.bf16.mxu1 %v1250_v12  ;;  %1896 = vmatpush1.bf16.msra.mxu1 %v5982_v9 }
 0x213   :  { %1897 = vmatprep.subr.bf16.mxu1 %v5987_v11 }
 0x216   :  { %1898 = vmatpush1.bf16.msra.mxu1 %v5985_v13 }
 0x217   :  { %1899 = vmatprep.subr.bf16.mxu1 %v5990_v14 }
 0x219   :  { %1877 = vmatmul.mubr.bf16.gmra.mrb[12].mxu1 %v1240_v17  ;;  %v6116_v17 = vld [vmem:[%s8259_s8 + $0x4] ss:$8 sps:$4 sm:$0xff]  }
 0x21a   :  { %1900 = vmatpush1.bf16.msra.mxu1 %v5988_v16  ;;  %1919 = vmatprep.mubr.bf16.mxu1 %v6376_v6  ;;  %v6114_v16 = vld [vmem:[%s8259_s8] ss:$8 sps:$4 sm:$0xff]  }
 0x21b   :  { %1901 = vmatprep.subr.bf16.mxu1 %v5993_v18  ;;  %3323 = vmatprep.subr.bf16.mxu0 %v6116_v17 }
 0x21c   :  { %3324 = vmatpush1.bf16.msra.mxu0 %v6114_v16 }
 0x21e   :  { %1902 = vmatpush1.bf16.msra.mxu1 %v5991_v19 }
 0x21f   :  { %2533 = vmatprep.subr.bf16.mxu1 %v5996_v20  ;;  %v6119_v20 = vld [vmem:[%s8259_s8 + $0x14] ss:$8 sps:$4 sm:$0xff]  }
 0x220   :  { %3325 = vmatprep.subr.bf16.mxu0 %v6119_v20  ;;  %v6059_v20 = vld [vmem:[%s8257_s4 + $0x154] ss:$8 sps:$4 sm:$0xff]  }
 0x221   :  { %1920 = vmatmul.mubr.bf16.vlgmr.msra.gmra.mrb[0].mxu1 %v1209_v23 }
 0x222   :  { %1929 = vmatprep.mubr.bf16.mxu1 %v6376_v6  ;;  %2534 = vmatpush1.bf16.msra.mxu1 %v5994_v22 }
 0x223   :  { %2535 = vmatprep.subr.bf16.mxu1 %v5999_v24  ;;  %v6117_v24 = vld [vmem:[%s8259_s8 + $0x10] ss:$8 sps:$4 sm:$0xff]  }
 0x224   :  { %3326 = vmatpush1.bf16.msra.mxu0 %v6117_v24  ;;  %v6057_v24 = vld [vmem:[%s8257_s4 + $0x150] ss:$8 sps:$4 sm:$0xff]  }
 0x225   :  { %3327 = vmatprep.subr.bf16.mxu0 %v6122_v31 }
 0x226   :  { %2536 = vmatpush1.bf16.msra.mxu1 %v5997_v25 }
 0x227   :  { %2537 = vmatprep.subr.bf16.mxu1 %v6002_v27 }
 0x229   :  { %1930 = vmatmul.mubr.bf16.gmra.mrb[4].mxu1 %v1210_v33  ;;  %v6042_v33 = vld [vmem:[%s8257_s4 + $0x100] ss:$8 sps:$4 sm:$0xff]  }
 0x22a   :  { %1939 = vmatprep.mubr.bf16.mxu1 %v6376_v6  ;;  %2538 = vmatpush1.bf16.msra.mxu1 %v6000_v32 }
 0x22b   :  { %2539 = vmatprep.subr.bf16.mxu1 %v6005_v35 }
 0x22e   :  { %2540 = vmatpush1.bf16.msra.mxu1 %v6003_v45 }
 0x22f   :  { %2541 = vmatprep.subr.bf16.mxu1 %v6008_v36 }
 0x231   :  { %1940 = vmatmul.mubr.bf16.gmra.mrb[8].mxu1 %v1259_v39 }
 0x232   :  { %1949 = vmatprep.mubr.bf16.mxu1 %v6376_v6  ;;  %2542 = vmatpush1.bf16.msra.mxu1 %v6006_v38 }
 0x233   :  { %2543 = vmatprep.subr.bf16.mxu1 %v6011_v40  ;;  %v6120_v40 = vld [vmem:[%s8259_s8 + $0x20] ss:$8 sps:$4 sm:$0xff]  }
 0x234   :  { %3328 = vmatpush1.bf16.msra.mxu0 %v6120_v40 }
 0x236   :  { %2544 = vmatpush1.bf16.msra.mxu1 %v6009_v41 }
 0x237   :  { %2545 = vmatprep.subr.bf16.mxu1 %v6014_v42  ;;  %v6125_v42 = vld [vmem:[%s8259_s8 + $0x34] ss:$8 sps:$4 sm:$0xff]  }
 0x238   :  { %3329 = vmatprep.subr.bf16.mxu0 %v6125_v42 }
 0x239   :  { %1950 = vmatmul.mubr.bf16.gmra.mrb[12].mxu1 %v1260_v46  ;;  %v6050_v46 = vld [vmem:[%s8257_s4 + $0x124] ss:$8 sps:$4 sm:$0xff]  }
 0x23a   :  { %2546 = vmatpush1.bf16.msra.mxu1 %v6012_v44  ;;  %v6045_v44 = vld [vmem:[%s8257_s4 + $0x110] ss:$8 sps:$4 sm:$0xff]  }
 0x23b   :  { %2547 = vmatprep.subr.bf16.mxu1 %v6017_v47 }
 0x23e   :  { %2548 = vmatpush1.bf16.msra.mxu1 %v6015_v48 }
 0x23f   :  { %2549 = vmatprep.subr.bf16.mxu1 %v6020_v49  ;;  %v6123_v49 = vld [vmem:[%s8259_s8 + $0x30] ss:$8 sps:$4 sm:$0xff]  }
 0x240   :  { %3330 = vmatpush1.bf16.msra.mxu0 %v6123_v49  ;;  %v6141_v49 = vld [vmem:[%s8259_s8 + $0x90] ss:$8 sps:$4 sm:$0xff]  }
 0x242   :  { %2550 = vmatpush1.bf16.msra.mxu1 %v6018_v50  ;;  %v6128_v50 = vld [vmem:[%s8259_s8 + $0x44] ss:$8 sps:$4 sm:$0xff]  }
 0x243   :  { %2551 = vmatprep.subr.bf16.mxu1 %v6023_v51  ;;  %3331 = vmatprep.subr.bf16.mxu0 %v6128_v50  ;;  %v6146_v50 = vld [vmem:[%s8259_s8 + $0xa4] ss:$8 sps:$4 sm:$0xff]  }
 0x246   :  { %2552 = vmatpush1.bf16.msra.mxu1 %v6021_v52 }
 0x247   :  { %2553 = vmatprep.subr.bf16.mxu1 %v6026_v53 }
 0x24a   :  { %2554 = vmatpush1.bf16.msra.mxu1 %v6024_v54 }
 0x24b   :  { %2555 = vmatprep.subr.bf16.mxu1 %v6029_v55 }
 0x24e   :  { %2556 = vmatpush1.bf16.msra.mxu1 %v6027_v56  ;;  %v6048_v56 = vld [vmem:[%s8257_s4 + $0x120] ss:$8 sps:$4 sm:$0xff]  }
 0x24f   :  { %2557 = vmatprep.subr.bf16.mxu1 %v6032_v57 }
 0x252   :  { %2558 = vmatpush1.bf16.msra.mxu1 %v6030_v58 }
 0x253   :  { %2559 = vmatprep.subr.bf16.mxu1 %v6035_v59 }
 0x256   :  { %2560 = vmatpush1.bf16.msra.mxu1 %v6033_v60  ;;  %v6053_v60 = vld [vmem:[%s8257_s4 + $0x134] ss:$8 sps:$4 sm:$0xff]  }
 0x257   :  { %2561 = vmatprep.subr.bf16.mxu1 %v6038_v61 }
 0x25a   :  { %2562 = vmatpush1.bf16.msra.mxu1 %v6036_v62 }
 0x25b   :  { %2563 = vmatprep.subr.bf16.mxu1 %v6041_v63  ;;  %v6126_v63 = vld [vmem:[%s8259_s8 + $0x40] ss:$8 sps:$4 sm:$0xff]  }
 0x25c   :  { %3332 = vmatpush1.bf16.msra.mxu0 %v6126_v63  ;;  %v6078_v63 = vld [vmem:[%s8257_s4 + $0x1c0] ss:$8 sps:$4 sm:$0xff]  }
 0x25e   :  { %2564 = vmatpush1.bf16.msra.mxu1 %v6039_v0 }
 0x25f   :  { %2606 = vmatprep.subr.bf16.mxu1 %v6044_v28  ;;  %v6131_v28 = vld [vmem:[%s8259_s8 + $0x54] ss:$8 sps:$4 sm:$0xff]  }
 0x260   :  { %3333 = vmatprep.subr.bf16.mxu0 %v6131_v28  ;;  %v6081_v28 = vld [vmem:[%s8257_s4 + $0x1d0] ss:$8 sps:$4 sm:$0xff]  }
 0x2f4   :  { %v1921_v1 = vpop.f32.mrb[0].mxu1 }
 0x2f5   :  { %v1923_v2 = vpop.f32.mrb[1].mxu1 }
 0x2f6   :  { %v1960_v4 = vmax.f32 %v1921_v1, %v1923_v2  ;;  %v1925_v5 = vpop.f32.mrb[2].mxu1 }
 0x2f7   :  { %v1927_v29 = vpop.f32.mrb[3].mxu1 }
 0x2f8   :  { %v7400_v7 = vadd.f32 %v7397_v3, %v1960_v4  ;;  %v1961_v8 = vmax.f32 %v1925_v5, %v1927_v29  ;;  %v6051_v4 = vld [vmem:[%s8257_s4 + $0x130] ss:$8 sps:$4 sm:$0xff]   ;;  %v6056_v5 = vld [vmem:[%s8257_s4 + $0x144] ss:$8 sps:$4 sm:$0xff]  }
 0x2fa   :  { %1984 = vst [vmem:[#allocation2 + $0x2] sm:$0xff] %v7400_v7  ;;  %v7404_v9 = vadd.f32 %v7397_v3, %v1961_v8 }
 0x2fc   :  { %1985 = vst [vmem:[#allocation2 + $0xa] sm:$0xff] %v7404_v9  ;;  %v1931_v10 = vpop.f32.mrb[4].mxu1  ;;  %v2009_v11 = vpack.c.bf16 %v7404_v9, %v7400_v7  ;;  %v6101_v9 = vld [vmem:[%s8257_s4 + $0x234] ss:$8 sps:$4 sm:$0xff]  }
 0x2fd   :  { %v1933_v12 = vpop.f32.mrb[5].mxu1 }
 0x2fe   :  { %v1962_v13 = vmax.f32 %v1931_v10, %v1933_v12  ;;  %v1935_v14 = vpop.f32.mrb[6].mxu1  ;;  %v6129_v10 = vld [vmem:[%s8259_s8 + $0x50] ss:$8 sps:$4 sm:$0xff]   ;;  %v6134_v12 = vld [vmem:[%s8259_s8 + $0x64] ss:$8 sps:$4 sm:$0xff]  }
 0x2ff   :  { %v1937_v15 = vpop.f32.mrb[7].mxu1  ;;  %3334 = vmatpush1.bf16.msra.mxu0 %v6129_v10  ;;  %v6092_v10 = vld [vmem:[%s8257_s4 + $0x204] ss:$8 sps:$4 sm:$0xff]  }
 0x300   :  { %v7416_v18 = vadd.f32 %v7397_v3, %v1962_v13  ;;  %v1963_v19 = vmax.f32 %v1935_v14, %v1937_v15  ;;  %3335 = vmatprep.subr.bf16.mxu0 %v6134_v12 }
 0x301   :  { %v1999_v22 = vld [vmem:[#allocation2 + $0x1] sm:$0xff] }
 0x302   :  { %1986 = vst [vmem:[#allocation2 + $0x12] sm:$0xff] %v7416_v18  ;;  %v7423_v21 = vadd.f32 %v7397_v3, %v1963_v19  ;;  %v1993_v23 = vld [vmem:[#allocation2] sm:$0xff] }
 0x303   :  { %v2000_v25 = vld [vmem:[#allocation2 + $0x9] sm:$0xff] }
 0x304   :  { %v1994_v27 = vld [vmem:[#allocation2 + $0x8] sm:$0xff]  ;;  %1987 = vst [vmem:[#allocation2 + $0x1a] sm:$0xff] %v7423_v21  ;;  %v1941_v26 = vpop.f32.mrb[8].mxu1  ;;  %v2003_v32 = vpack.c.bf16 %v2000_v25, %v1999_v22  ;;  %v2010_v45 = vpack.c.bf16 %v7423_v21, %v7416_v18  ;;  %v6107_v18 = vld [vmem:[%s8257_s4 + $0x254] ss:$8 sps:$4 sm:$0xff]  }
 0x305   :  { %v1997_v35 = vpack.c.bf16 %v1994_v27, %v1993_v23  ;;  %v1943_v36 = vpop.f32.mrb[9].mxu1  ;;  %v6132_v22 = vld [vmem:[%s8259_s8 + $0x60] ss:$8 sps:$4 sm:$0xff]   ;;  %v6137_v23 = vld [vmem:[%s8259_s8 + $0x74] ss:$8 sps:$4 sm:$0xff]  }
 0x306   :  { %v1964_v38 = vmax.f32 %v1941_v26, %v1943_v36  ;;  %v1945_v39 = vpop.f32.mrb[10].mxu1  ;;  %2565 = vmatprep.mubr.bf16.mxu1 %v2003_v32  ;;  %v6062_v25 = vld [vmem:[%s8257_s4 + $0x164] ss:$8 sps:$4 sm:$0xff]   ;;  %v6135_v27 = vld [vmem:[%s8259_s8 + $0x70] ss:$8 sps:$4 sm:$0xff]   ;;  %3336 = vmatpush1.bf16.msra.mxu0 %v6132_v22 }
 0x307   :  { %v1947_v41 = vpop.f32.mrb[11].mxu1  ;;  %2566 = vmatmul.mubr.bf16.vlgmr.msra.gmra.mrb[16].mxu1 %v1997_v35  ;;  %v6140_v32 = vld [vmem:[%s8259_s8 + $0x84] ss:$8 sps:$4 sm:$0xff]   ;;  %3337 = vmatprep.subr.bf16.mxu0 %v6137_v23  ;;  %v6096_v22 = vld [vmem:[%s8257_s4 + $0x220] ss:$8 sps:$4 sm:$0xff]  }
 0x308   :  { %v7447_v43 = vadd.f32 %v7397_v3, %v1964_v38  ;;  %v1965_v30 = vmax.f32 %v1945_v39, %v1947_v41  ;;  %2607 = vmatpush1.bf16.msra.mxu1 %v6042_v33  ;;  %v6060_v38 = vld [vmem:[%s8257_s4 + $0x160] ss:$8 sps:$4 sm:$0xff]   ;;  %v6065_v41 = vld [vmem:[%s8257_s4 + $0x174] ss:$8 sps:$4 sm:$0xff]   ;;  %v6099_v23 = vld [vmem:[%s8257_s4 + $0x230] ss:$8 sps:$4 sm:$0xff]  }
 0x309   :  { %2608 = vmatprep.subr.bf16.mxu1 %v6047_v37  ;;  %v2001_v48 = vld [vmem:[#allocation2 + $0x11] sm:$0xff]  ;;  %v2011_v40 = vld [vmem:[#allocation2 + $0x3] sm:$0xff] }
 0x30a   :  { %1989 = vst [vmem:[#allocation2 + $0x4a] sm:$0xff] %v7447_v43  ;;  %v7457_v47 = vadd.f32 %v7397_v3, %v1965_v30  ;;  %v1995_v52 = vld [vmem:[#allocation2 + $0x10] sm:$0xff]  ;;  %3338 = vmatpush1.bf16.msra.mxu0 %v6135_v27  ;;  %v6138_v30 = vld [vmem:[%s8259_s8 + $0x80] ss:$8 sps:$4 sm:$0xff]  }
 0x30b   :  { %v2002_v51 = vld [vmem:[#allocation2 + $0x19] sm:$0xff]  ;;  %v2012_v26 = vld [vmem:[#allocation2 + $0xb] sm:$0xff]  ;;  %3339 = vmatprep.subr.bf16.mxu0 %v6140_v32 }
 0x30c   :  { %v1996_v53 = vld [vmem:[#allocation2 + $0x18] sm:$0xff]  ;;  %1990 = vst [vmem:[#allocation2 + $0x52] sm:$0xff] %v7457_v47  ;;  %2609 = vmatpush1.bf16.msra.mxu1 %v6045_v44  ;;  %v1951_v54 = vpop.f32.mrb[12].mxu1  ;;  %v2004_v55 = vpack.c.bf16 %v2002_v51, %v2001_v48  ;;  %v2039_v58 = vpack.c.bf16 %v7457_v47, %v7447_v43  ;;  %v2015_v42 = vpack.c.bf16 %v2012_v26, %v2011_v40  ;;  %v6068_v48 = vld [vmem:[%s8257_s4 + $0x184] ss:$8 sps:$4 sm:$0xff]  }
 0x30d   :  { %v1998_v57 = vpack.c.bf16 %v1996_v53, %v1995_v52  ;;  %v1953_v59 = vpop.f32.mrb[13].mxu1  ;;  %2610 = vmatprep.subr.bf16.mxu1 %v6050_v46  ;;  %v6143_v44 = vld [vmem:[%s8259_s8 + $0x94] ss:$8 sps:$4 sm:$0xff]   ;;  %v6063_v46 = vld [vmem:[%s8257_s4 + $0x170] ss:$8 sps:$4 sm:$0xff]  }
 0x30e   :  { %v1966_v61 = vmax.f32 %v1951_v54, %v1953_v59  ;;  %v1955_v62 = vpop.f32.mrb[14].mxu1  ;;  %2575 = vmatprep.mubr.bf16.mxu1 %v2004_v55  ;;  %3340 = vmatpush1.bf16.msra.mxu0 %v6138_v30  ;;  %v6066_v51 = vld [vmem:[%s8257_s4 + $0x180] ss:$8 sps:$4 sm:$0xff]   ;;  %v6071_v52 = vld [vmem:[%s8257_s4 + $0x194] ss:$8 sps:$4 sm:$0xff]  }
 0x30f   :  { %v1957_v0 = vpop.f32.mrb[15].mxu1  ;;  %2576 = vmatmul.mubr.bf16.gmra.mrb[20].mxu1 %v1998_v57  ;;  %3341 = vmatprep.subr.bf16.mxu0 %v6143_v44  ;;  %v6144_v53 = vld [vmem:[%s8259_s8 + $0xa0] ss:$8 sps:$4 sm:$0xff]   ;;  %v6149_v54 = vld [vmem:[%s8259_s8 + $0xb4] ss:$8 sps:$4 sm:$0xff]  }
 0x310   :  { %v7481_v1 = vadd.f32 %v7397_v3, %v1966_v61  ;;  %v1967_v2 = vmax.f32 %v1955_v62, %v1957_v0  ;;  %2611 = vmatpush1.bf16.msra.mxu1 %v6048_v56  ;;  %v6069_v55 = vld [vmem:[%s8257_s4 + $0x190] ss:$8 sps:$4 sm:$0xff]   ;;  %v6074_v56 = vld [vmem:[%s8257_s4 + $0x1a4] ss:$8 sps:$4 sm:$0xff]   ;;  %v6072_v59 = vld [vmem:[%s8257_s4 + $0x1a0] ss:$8 sps:$4 sm:$0xff]  }
 0x311   :  { %2612 = vmatprep.subr.bf16.mxu1 %v6053_v60  ;;  %v2029_v8 = vld [vmem:[#allocation2 + $0x49] sm:$0xff]  ;;  %v6077_v60 = vld [vmem:[%s8257_s4 + $0x1b4] ss:$8 sps:$4 sm:$0xff]  }
 0x312   :  { %1991 = vst [vmem:[#allocation2 + $0x5a] sm:$0xff] %v7481_v1  ;;  %v7491_v29 = vadd.f32 %v7397_v3, %v1967_v2  ;;  %v2023_v14 = vld [vmem:[#allocation2 + $0x48] sm:$0xff]  ;;  %3342 = vmatpush1.bf16.msra.mxu0 %v6141_v49  ;;  %v6147_v57 = vld [vmem:[%s8259_s8 + $0xb0] ss:$8 sps:$4 sm:$0xff]   ;;  %v6083_v0 = vld [vmem:[%s8257_s4 + $0x1d4] ss:$8 sps:$4 sm:$0xff]  }
 0x313   :  { %v2030_v13 = vld [vmem:[#allocation2 + $0x51] sm:$0xff]  ;;  %v6054_v3 = vld [vmem:[%s8257_s4 + $0x140] ss:$8 sps:$4 sm:$0xff]   ;;  %3343 = vmatprep.subr.bf16.mxu0 %v6146_v50  ;;  %v6080_v62 = vld [vmem:[%s8257_s4 + $0x1c4] ss:$8 sps:$4 sm:$0xff]  }
 0x314   :  { %v2024_v15 = vld [vmem:[#allocation2 + $0x50] sm:$0xff]  ;;  %1992 = vst [vmem:[#allocation2 + $0x62] sm:$0xff] %v7491_v29  ;;  %2613 = vmatpush1.bf16.msra.mxu1 %v6051_v4  ;;  %v2033_v16 = vpack.c.bf16 %v2030_v13, %v2029_v8  ;;  %v2040_v19 = vpack.c.bf16 %v7491_v29, %v7481_v1  ;;  %v6086_v2 = vld [vmem:[%s8257_s4 + $0x1e4] ss:$8 sps:$4 sm:$0xff]   ;;  %v6084_v4 = vld [vmem:[%s8257_s4 + $0x1e0] ss:$8 sps:$4 sm:$0xff]  }
 0x315   :  { %v2027_v17 = vpack.c.bf16 %v2024_v15, %v2023_v14  ;;  %2614 = vmatprep.subr.bf16.mxu1 %v6056_v5  ;;  %v6075_v61 = vld [vmem:[%s8257_s4 + $0x1b0] ss:$8 sps:$4 sm:$0xff]   ;;  %v6089_v5 = vld [vmem:[%s8257_s4 + $0x1f4] ss:$8 sps:$4 sm:$0xff]   ;;  %v6090_v14 = vld [vmem:[%s8257_s4 + $0x200] ss:$8 sps:$4 sm:$0xff]  }
 0x316   :  { %2585 = vmatprep.mubr.bf16.mxu1 %v2033_v16  ;;  %3344 = vmatpush1.bf16.msra.mxu0 %v6144_v53  ;;  %v6087_v8 = vld [vmem:[%s8257_s4 + $0x1f0] ss:$8 sps:$4 sm:$0xff]   ;;  %v6095_v15 = vld [vmem:[%s8257_s4 + $0x214] ss:$8 sps:$4 sm:$0xff]   ;;  %v6110_v26 = vld [vmem:[%s8257_s4 + $0x264] ss:$8 sps:$4 sm:$0xff]  }
 0x317   :  { %2586 = vmatmul.mubr.bf16.gmra.mrb[24].mxu1 %v2027_v17  ;;  %3345 = vmatprep.subr.bf16.mxu0 %v6149_v54  ;;  %v2013_v12 = vld [vmem:[#allocation2 + $0x13] sm:$0xff]  ;;  %v2014_v13 = vld [vmem:[#allocation2 + $0x1b] sm:$0xff]  ;;  %v6098_v17 = vld [vmem:[%s8257_s4 + $0x224] ss:$8 sps:$4 sm:$0xff]  }
 0x318   :  { %2615 = vmatpush1.bf16.msra.mxu1 %v6054_v3  ;;  %v2016_v16 = vpack.c.bf16 %v2014_v13, %v2013_v12  ;;  %v6093_v3 = vld [vmem:[%s8257_s4 + $0x210] ss:$8 sps:$4 sm:$0xff]   ;;  %v6108_v32 = vld [vmem:[%s8257_s4 + $0x260] ss:$8 sps:$4 sm:$0xff]   ;;  %v6113_v43 = vld [vmem:[%s8257_s4 + $0x274] ss:$8 sps:$4 sm:$0xff]  }
 0x319   :  { %2616 = vmatprep.subr.bf16.mxu1 %v6059_v20  ;;  %v2031_v31 = vld [vmem:[#allocation2 + $0x59] sm:$0xff]  ;;  %v2041_v7 = vld [vmem:[#allocation2 + $0x4b] sm:$0xff] }
 0x31a   :  { %v2025_v35 = vld [vmem:[#allocation2 + $0x58] sm:$0xff]  ;;  %3346 = vmatpush1.bf16.msra.mxu0 %v6147_v57  ;;  %v6150_v30 = vld [vmem:[%s8259_s8 + $0xc0] ss:$8 sps:$4 sm:$0xff]  }
 0x31b   :  { %v2032_v33 = vld [vmem:[#allocation2 + $0x61] sm:$0xff]  ;;  %v2042_v20 = vld [vmem:[#allocation2 + $0x53] sm:$0xff] }
 0x31c   :  { %v2026_v36 = vld [vmem:[#allocation2 + $0x60] sm:$0xff]  ;;  %2617 = vmatpush1.bf16.msra.mxu1 %v6057_v24  ;;  %v2034_v37 = vpack.c.bf16 %v2032_v33, %v2031_v31  ;;  %v6111_v47 = vld [vmem:[%s8257_s4 + $0x270] ss:$8 sps:$4 sm:$0xff]   ;;  %v6155_v44 = vld [vmem:[%s8259_s8 + $0xd4] ss:$8 sps:$4 sm:$0xff]  }
 0x31d   :  { %v2028_v39 = vpack.c.bf16 %v2026_v36, %v2025_v35  ;;  %2618 = vmatprep.subr.bf16.mxu1 %v6062_v25  ;;  %v6104_v24 = vld [vmem:[%s8257_s4 + $0x244] ss:$8 sps:$4 sm:$0xff]   ;;  %v2043_v25 = vld [vmem:[#allocation2 + $0x5b] sm:$0xff] }
 0x31e   :  { %2595 = vmatprep.mubr.bf16.mxu1 %v2034_v37  ;;  %v2044_v27 = vld [vmem:[#allocation2 + $0x63] sm:$0xff]  ;;  %v2019_v36 = vld [vmem:[#allocation2 + $0x14] sm:$0xff]  ;;  %v2047_v37 = vld [vmem:[#allocation2 + $0x4c] sm:$0xff] }
 0x31f   :  { %2596 = vmatmul.mubr.bf16.gmra.mrb[28].mxu1 %v2028_v39  ;;  %v6102_v31 = vld [vmem:[%s8257_s4 + $0x240] ss:$8 sps:$4 sm:$0xff]   ;;  %v2046_v21 = vpack.c.bf16 %v2044_v27, %v2043_v25  ;;  %v6161_v50 = vld [vmem:[%s8259_s8 + $0xf4] ss:$8 sps:$4 sm:$0xff]  }
 0x320   :  { %2619 = vmatpush1.bf16.msra.mxu1 %v6060_v38  ;;  %2638 = vmatprep.mubr.bf16.mxu1 %v2015_v42  ;;  %v2017_v33 = vld [vmem:[#allocation2 + $0x4] sm:$0xff]  ;;  %v2020_v1 = vld [vmem:[#allocation2 + $0x1c] sm:$0xff] }
 0x321   :  { %2620 = vmatprep.subr.bf16.mxu1 %v6065_v41  ;;  %v2022_v29 = vpack.c.bf16 %v2020_v1, %v2019_v36  ;;  %v2049_v39 = vld [vmem:[#allocation2 + $0x5c] sm:$0xff]  ;;  %v2050_v40 = vld [vmem:[#allocation2 + $0x64] sm:$0xff] }
 0x322   :  { %v2052_v41 = vpack.c.bf16 %v2050_v40, %v2049_v39  ;;  %v6152_v42 = vld [vmem:[%s8259_s8 + $0xc4] ss:$8 sps:$4 sm:$0xff]   ;;  %v6156_v49 = vld [vmem:[%s8259_s8 + $0xe0] ss:$8 sps:$4 sm:$0xff]  }
 0x323   :  { %3347 = vmatprep.subr.bf16.mxu0 %v6152_v42  ;;  %v6171_v42 = vld [vmem:[%s8259_s8 + $0x130] ss:$8 sps:$4 sm:$0xff]  }
 0x324   :  { %2621 = vmatpush1.bf16.msra.mxu1 %v6063_v46  ;;  %3348 = vmatpush1.bf16.msra.mxu0 %v6150_v30  ;;  %v6153_v46 = vld [vmem:[%s8259_s8 + $0xd0] ss:$8 sps:$4 sm:$0xff]   ;;  %v6176_v30 = vld [vmem:[%s8259_s8 + $0x144] ss:$8 sps:$4 sm:$0xff]  }
 0x325   :  { %2622 = vmatprep.subr.bf16.mxu1 %v6068_v48  ;;  %3349 = vmatprep.subr.bf16.mxu0 %v6155_v44  ;;  %v6158_v48 = vld [vmem:[%s8259_s8 + $0xe4] ss:$8 sps:$4 sm:$0xff]  }
 0x328   :  { %2623 = vmatpush1.bf16.msra.mxu1 %v6066_v51  ;;  %3350 = vmatpush1.bf16.msra.mxu0 %v6153_v46  ;;  %v6159_v51 = vld [vmem:[%s8259_s8 + $0xf0] ss:$8 sps:$4 sm:$0xff]  }
 0x329   :  { %2624 = vmatprep.subr.bf16.mxu1 %v6071_v52  ;;  %3351 = vmatprep.subr.bf16.mxu0 %v6158_v48  ;;  %v6164_v52 = vld [vmem:[%s8259_s8 + $0x104] ss:$8 sps:$4 sm:$0xff]  }
 0x32c   :  { %2625 = vmatpush1.bf16.msra.mxu1 %v6069_v55  ;;  %3352 = vmatpush1.bf16.msra.mxu0 %v6156_v49  ;;  %v7699_v55 = vld [vmem:[%s8260_s0] ss:$0 sm:$0xff] }
 0x32d   :  { %2626 = vmatprep.subr.bf16.mxu1 %v6074_v56  ;;  %3353 = vmatprep.subr.bf16.mxu0 %v6161_v50 }
 0x330   :  { %2627 = vmatpush1.bf16.msra.mxu1 %v6072_v59  ;;  %3354 = vmatpush1.bf16.msra.mxu0 %v6159_v51 }
 0x331   :  { %2628 = vmatprep.subr.bf16.mxu1 %v6077_v60  ;;  %3396 = vmatprep.subr.bf16.mxu0 %v6164_v52  ;;  %v6174_v52 = vld [vmem:[%s8259_s8 + $0x140] ss:$8 sps:$4 sm:$0xff]  }
 0x334   :  { %2629 = vmatpush1.bf16.msra.mxu1 %v6075_v61 }
 0x335   :  { %2630 = vmatprep.subr.bf16.mxu1 %v6080_v62 }
 0x338   :  { %2631 = vmatpush1.bf16.msra.mxu1 %v6078_v63 }
 0x339   :  { %2632 = vmatprep.subr.bf16.mxu1 %v6083_v0 }
 0x33c   :  { %2633 = vmatpush1.bf16.msra.mxu1 %v6081_v28 }
 0x33d   :  { %2634 = vmatprep.subr.bf16.mxu1 %v6086_v2 }
 0x340   :  { %2635 = vmatpush1.bf16.msra.mxu1 %v6084_v4 }
 0x341   :  { %2636 = vmatprep.subr.bf16.mxu1 %v6089_v5 }
 0x344   :  { %2637 = vmatpush1.bf16.msra.mxu1 %v6087_v8 }
 0x345   :  { %2679 = vmatprep.subr.bf16.mxu1 %v6092_v10 }
 0x347   :  { %2639 = vmatmul.mubr.bf16.vlgmr.msra.gmra.mrb[16].mxu1 %v2009_v11  ;;  %v2045_v11 = vpack.c.bf16 %v2042_v20, %v2041_v7  ;;  %v6162_v20 = vld [vmem:[%s8259_s8 + $0x100] ss:$8 sps:$4 sm:$0xff]  }
 0x348   :  { %2648 = vmatprep.mubr.bf16.mxu1 %v2016_v16  ;;  %2680 = vmatpush1.bf16.msra.mxu1 %v6090_v14 }
 0x349   :  { %2681 = vmatprep.subr.bf16.mxu1 %v6095_v15 }
 0x34c   :  { %2682 = vmatpush1.bf16.msra.mxu1 %v6093_v3 }
 0x34d   :  { %2683 = vmatprep.subr.bf16.mxu1 %v6098_v17 }
 0x34f   :  { %2649 = vmatmul.mubr.bf16.gmra.mrb[20].mxu1 %v2010_v45  ;;  %v6105_v45 = vld [vmem:[%s8257_s4 + $0x250] ss:$8 sps:$4 sm:$0xff]  }
 0x350   :  { %2658 = vmatprep.mubr.bf16.mxu1 %v2045_v11  ;;  %2684 = vmatpush1.bf16.msra.mxu1 %v6096_v22  ;;  %v6167_v11 = vld [vmem:[%s8259_s8 + $0x114] ss:$8 sps:$4 sm:$0xff]  }
 0x351   :  { %2685 = vmatprep.subr.bf16.mxu1 %v6101_v9 }
 0x354   :  { %2686 = vmatpush1.bf16.msra.mxu1 %v6099_v23 }
 0x355   :  { %2687 = vmatprep.subr.bf16.mxu1 %v6104_v24 }
 0x357   :  { %2659 = vmatmul.mubr.bf16.gmra.mrb[24].mxu1 %v2039_v58  ;;  %v2018_v58 = vld [vmem:[#allocation2 + $0xc] sm:$0xff] }
 0x358   :  { %2668 = vmatprep.mubr.bf16.mxu1 %v2046_v21  ;;  %2688 = vmatpush1.bf16.msra.mxu1 %v6102_v31  ;;  %v2021_v35 = vpack.c.bf16 %v2018_v58, %v2017_v33  ;;  %v6170_v21 = vld [vmem:[%s8259_s8 + $0x124] ss:$8 sps:$4 sm:$0xff]  }
 0x359   :  { %2689 = vmatprep.subr.bf16.mxu1 %v6107_v18  ;;  %v6165_v18 = vld [vmem:[%s8259_s8 + $0x110] ss:$8 sps:$4 sm:$0xff]  }
 0x35c   :  { %2690 = vmatpush1.bf16.msra.mxu1 %v6105_v45 }
 0x35d   :  { %2691 = vmatprep.subr.bf16.mxu1 %v6110_v26 }
 0x35f   :  { %2669 = vmatmul.mubr.bf16.gmra.mrb[28].mxu1 %v2040_v19  ;;  %v2048_v19 = vld [vmem:[#allocation2 + $0x54] sm:$0xff] }
 0x360   :  { %2692 = vmatpush1.bf16.msra.mxu1 %v6108_v32  ;;  %2711 = vmatprep.mubr.bf16.mxu1 %v6376_v6  ;;  %v2051_v38 = vpack.c.bf16 %v2048_v19, %v2047_v37  ;;  %v6173_v19 = vld [vmem:[%s8259_s8 + $0x134] ss:$8 sps:$4 sm:$0xff]  }
 0x361   :  { %2693 = vmatprep.subr.bf16.mxu1 %v6113_v43 }
 0x364   :  { %2694 = vmatpush1.bf16.msra.mxu1 %v6111_v47 }
 0x365   :  { %5486 = vmatprep.subr.bf16.mxu1 %v6377_v34 }
 0x367   :  { %2712 = vmatmul.mubr.bf16.vlgmr.msra.gmra.mrb[16].mxu1 %v2021_v35  ;;  %v6168_v35 = vld [vmem:[%s8259_s8 + $0x120] ss:$8 sps:$4 sm:$0xff]  }
 0x368   :  { %2721 = vmatprep.mubr.bf16.mxu1 %v6376_v6 }
 0x36f   :  { %2722 = vmatmul.mubr.bf16.gmra.mrb[20].mxu1 %v2022_v29 }
 0x370   :  { %2731 = vmatprep.mubr.bf16.mxu1 %v6376_v6 }
 0x377   :  { %2732 = vmatmul.mubr.bf16.gmra.mrb[24].mxu1 %v2051_v38 }
 0x378   :  { %2741 = vmatprep.mubr.bf16.mxu1 %v6376_v6 }
 0x37f   :  { %2742 = vmatmul.mubr.bf16.gmra.mrb[28].mxu1 %v2052_v41 }
 0x380   :  { %5490 = vmatprep.mubr.msk.bf16.mxu1 %vm6378_vm0, %v6377_v34 }
 0x43a   :  { %v2713_v53 = vpop.f32.mrb[16].mxu1 }
 0x43b   :  { %v2715_v54 = vpop.f32.mrb[17].mxu1 }
 0x43c   :  { %v2752_v56 = vmax.f32 %v2713_v53, %v2715_v54  ;;  %v2717_v57 = vpop.f32.mrb[18].mxu1 }
 0x43d   :  { %v2719_v59 = vpop.f32.mrb[19].mxu1 }
 0x43e   :  { %v7702_v60 = vadd.f32 %v7699_v55, %v2752_v56  ;;  %v2753_v61 = vmax.f32 %v2717_v57, %v2719_v59  ;;  %v6177_v56 = vld [vmem:[%s8259_s8 + $0x150] ss:$8 sps:$4 sm:$0xff]   ;;  %v6182_v57 = vld [vmem:[%s8259_s8 + $0x164] ss:$8 sps:$4 sm:$0xff]  }
 0x440   :  { %2775 = vst [vmem:[#allocation2 + $0x2] sm:$0xff] %v7702_v60  ;;  %v7706_v62 = vadd.f32 %v7699_v55, %v2753_v61 }
 0x442   :  { %2776 = vst [vmem:[#allocation2 + $0xa] sm:$0xff] %v7706_v62  ;;  %v2723_v63 = vpop.f32.mrb[20].mxu1  ;;  %v2799_v0 = vpack.c.bf16 %v7706_v62, %v7702_v60  ;;  %v6221_v62 = vld [vmem:[%s8259_s8 + $0x234] ss:$8 sps:$4 sm:$0xff]  }
 0x443   :  { %v2725_v28 = vpop.f32.mrb[21].mxu1 }
 0x444   :  { %v2754_v2 = vmax.f32 %v2723_v63, %v2725_v28  ;;  %v2727_v4 = vpop.f32.mrb[22].mxu1 }
 0x445   :  { %v2729_v5 = vpop.f32.mrb[23].mxu1 }
 0x446   :  { %v7712_v8 = vadd.f32 %v7699_v55, %v2754_v2  ;;  %v2755_v10 = vmax.f32 %v2727_v4, %v2729_v5  ;;  %v6180_v5 = vld [vmem:[%s8259_s8 + $0x160] ss:$8 sps:$4 sm:$0xff]  }
 0x447   :  { %v2789_v13 = vld [vmem:[#allocation2 + $0x1] sm:$0xff] }
 0x448   :  { %2777 = vst [vmem:[#allocation2 + $0x12] sm:$0xff] %v7712_v8  ;;  %v7716_v12 = vadd.f32 %v7699_v55, %v2755_v10  ;;  %v2783_v15 = vld [vmem:[#allocation2] sm:$0xff] }
 0x449   :  { %v2790_v14 = vld [vmem:[#allocation2 + $0x9] sm:$0xff] }
 0x44a   :  { %v2784_v16 = vld [vmem:[#allocation2 + $0x8] sm:$0xff]  ;;  %2778 = vst [vmem:[#allocation2 + $0x1a] sm:$0xff] %v7716_v12  ;;  %v2733_v3 = vpop.f32.mrb[24].mxu1  ;;  %v2793_v17 = vpack.c.bf16 %v2790_v14, %v2789_v13  ;;  %v2800_v7 = vpack.c.bf16 %v7716_v12, %v7712_v8  ;;  %v6185_v14 = vld [vmem:[%s8259_s8 + $0x174] ss:$8 sps:$4 sm:$0xff]  }
 0x44b   :  { %v2787_v22 = vpack.c.bf16 %v2784_v16, %v2783_v15  ;;  %v2735_v9 = vpop.f32.mrb[25].mxu1  ;;  %v2801_v13 = vld [vmem:[#allocation2 + $0x3] sm:$0xff]  ;;  %v6183_v16 = vld [vmem:[%s8259_s8 + $0x170] ss:$8 sps:$4 sm:$0xff]   ;;  %v6227_v8 = vld [vmem:[%s8259_s8 + $0x254] ss:$8 sps:$4 sm:$0xff]  }
 0x44c   :  { %v2756_v23 = vmax.f32 %v2733_v3, %v2735_v9  ;;  %v2737_v24 = vpop.f32.mrb[26].mxu1  ;;  %3355 = vmatprep.mubr.bf16.mxu0 %v2793_v17  ;;  %v6188_v3 = vld [vmem:[%s8259_s8 + $0x184] ss:$8 sps:$4 sm:$0xff]   ;;  %v6186_v17 = vld [vmem:[%s8259_s8 + $0x180] ss:$8 sps:$4 sm:$0xff]  }
 0x44d   :  { %v2739_v25 = vpop.f32.mrb[27].mxu1  ;;  %3356 = vmatmul.mubr.bf16.vlgmr.msra.gmra.mrb[32].mxu0 %v2787_v22  ;;  %v6189_v22 = vld [vmem:[%s8259_s8 + $0x190] ss:$8 sps:$4 sm:$0xff]   ;;  %v6194_v9 = vld [vmem:[%s8259_s8 + $0x1a4] ss:$8 sps:$4 sm:$0xff]  }
 0x44e   :  { %v7728_v27 = vadd.f32 %v7699_v55, %v2756_v23  ;;  %v2757_v31 = vmax.f32 %v2737_v24, %v2739_v25  ;;  %3397 = vmatpush1.bf16.msra.mxu0 %v6162_v20  ;;  %v6191_v20 = vld [vmem:[%s8259_s8 + $0x194] ss:$8 sps:$4 sm:$0xff]   ;;  %v6195_v24 = vld [vmem:[%s8259_s8 + $0x1b0] ss:$8 sps:$4 sm:$0xff]   ;;  %v6200_v25 = vld [vmem:[%s8259_s8 + $0x1c4] ss:$8 sps:$4 sm:$0xff]  }
 0x44f   :  { %3398 = vmatprep.subr.bf16.mxu0 %v6167_v11  ;;  %v2791_v26 = vld [vmem:[#allocation2 + $0x11] sm:$0xff]  ;;  %v6192_v11 = vld [vmem:[%s8259_s8 + $0x1a0] ss:$8 sps:$4 sm:$0xff]  }
 0x450   :  { %2779 = vst [vmem:[#allocation2 + $0x4a] sm:$0xff] %v7728_v27  ;;  %v7738_v45 = vadd.f32 %v7699_v55, %v2757_v31  ;;  %v2785_v43 = vld [vmem:[#allocation2 + $0x10] sm:$0xff]  ;;  %v6198_v31 = vld [vmem:[%s8259_s8 + $0x1c0] ss:$8 sps:$4 sm:$0xff]  }
 0x451   :  { %v2792_v32 = vld [vmem:[#allocation2 + $0x19] sm:$0xff]  ;;  %v2802_v61 = vld [vmem:[#allocation2 + $0xb] sm:$0xff] }
 0x452   :  { %v2786_v47 = vld [vmem:[#allocation2 + $0x18] sm:$0xff]  ;;  %2780 = vst [vmem:[#allocation2 + $0x52] sm:$0xff] %v7738_v45  ;;  %3399 = vmatpush1.bf16.msra.mxu0 %v6165_v18  ;;  %v2743_v58 = vpop.f32.mrb[28].mxu1  ;;  %v2794_v33 = vpack.c.bf16 %v2792_v32, %v2791_v26  ;;  %v2829_v1 = vpack.c.bf16 %v7738_v45, %v7728_v27  ;;  %v2805_v15 = vpack.c.bf16 %v2802_v61, %v2801_v13  ;;  %v6206_v26 = vld [vmem:[%s8259_s8 + $0x1e4] ss:$8 sps:$4 sm:$0xff]  }
 0x453   :  { %v2788_v36 = vpack.c.bf16 %v2786_v47, %v2785_v43  ;;  %v2745_v29 = vpop.f32.mrb[29].mxu1  ;;  %3400 = vmatprep.subr.bf16.mxu0 %v6170_v21  ;;  %v6197_v23 = vld [vmem:[%s8259_s8 + $0x1b4] ss:$8 sps:$4 sm:$0xff]   ;;  %v6201_v21 = vld [vmem:[%s8259_s8 + $0x1d0] ss:$8 sps:$4 sm:$0xff]  }
 0x454   :  { %v2758_v37 = vmax.f32 %v2743_v58, %v2745_v29  ;;  %v2747_v38 = vpop.f32.mrb[30].mxu1  ;;  %3365 = vmatprep.mubr.bf16.mxu0 %v2794_v33  ;;  %v6203_v18 = vld [vmem:[%s8259_s8 + $0x1d4] ss:$8 sps:$4 sm:$0xff]   ;;  %v6204_v32 = vld [vmem:[%s8259_s8 + $0x1e0] ss:$8 sps:$4 sm:$0xff]  }
 0x455   :  { %v2749_v39 = vpop.f32.mrb[31].mxu1  ;;  %3366 = vmatmul.mubr.bf16.gmra.mrb[36].mxu0 %v2788_v36  ;;  %v6209_v43 = vld [vmem:[%s8259_s8 + $0x1f4] ss:$8 sps:$4 sm:$0xff]   ;;  %v6207_v47 = vld [vmem:[%s8259_s8 + $0x1f0] ss:$8 sps:$4 sm:$0xff]  }
 0x456   :  { %v7750_v40 = vadd.f32 %v7699_v55, %v2758_v37  ;;  %v2759_v41 = vmax.f32 %v2747_v38, %v2749_v39  ;;  %3401 = vmatpush1.bf16.msra.mxu0 %v6168_v35  ;;  %v6212_v58 = vld [vmem:[%s8259_s8 + $0x204] ss:$8 sps:$4 sm:$0xff]   ;;  %v2803_v33 = vld [vmem:[#allocation2 + $0x13] sm:$0xff]  ;;  %v2804_v35 = vld [vmem:[#allocation2 + $0x1b] sm:$0xff] }
 0x457   :  { %3402 = vmatprep.subr.bf16.mxu0 %v6173_v19  ;;  %v2819_v46 = vld [vmem:[#allocation2 + $0x49] sm:$0xff]  ;;  %v6215_v29 = vld [vmem:[%s8259_s8 + $0x214] ss:$8 sps:$4 sm:$0xff]   ;;  %v2806_v19 = vpack.c.bf16 %v2804_v35, %v2803_v33 }
 0x458   :  { %2781 = vst [vmem:[#allocation2 + $0x5a] sm:$0xff] %v7750_v40  ;;  %v7760_v44 = vadd.f32 %v7699_v55, %v2759_v41  ;;  %v2813_v49 = vld [vmem:[#allocation2 + $0x48] sm:$0xff]  ;;  %v6179_v55 = vld [vmem:[%s8259_s8 + $0x154] ss:$8 sps:$4 sm:$0xff]   ;;  %v6213_v37 = vld [vmem:[%s8259_s8 + $0x210] ss:$8 sps:$4 sm:$0xff]  }
 0x459   :  { %v2820_v48 = vld [vmem:[#allocation2 + $0x51] sm:$0xff]  ;;  %v6210_v36 = vld [vmem:[%s8259_s8 + $0x200] ss:$8 sps:$4 sm:$0xff]   ;;  %v6218_v38 = vld [vmem:[%s8259_s8 + $0x224] ss:$8 sps:$4 sm:$0xff]  }
 0x45a   :  { %v2814_v50 = vld [vmem:[#allocation2 + $0x50] sm:$0xff]  ;;  %2782 = vst [vmem:[#allocation2 + $0x62] sm:$0xff] %v7760_v44  ;;  %3403 = vmatpush1.bf16.msra.mxu0 %v6171_v42  ;;  %v2823_v51 = vpack.c.bf16 %v2820_v48, %v2819_v46  ;;  %v2830_v54 = vpack.c.bf16 %v7760_v44, %v7750_v40  ;;  %v6216_v41 = vld [vmem:[%s8259_s8 + $0x220] ss:$8 sps:$4 sm:$0xff]  }
 0x45b   :  { %v2817_v53 = vpack.c.bf16 %v2814_v50, %v2813_v49  ;;  %3404 = vmatprep.subr.bf16.mxu0 %v6176_v30  ;;  %v2831_v60 = vld [vmem:[#allocation2 + $0x4b] sm:$0xff]  ;;  %v6233_v27 = vld [vmem:[%s8259_s8 + $0x274] ss:$8 sps:$4 sm:$0xff]  }
 0x45c   :  { %3375 = vmatprep.mubr.bf16.mxu0 %v2823_v51  ;;  %v6219_v42 = vld [vmem:[%s8259_s8 + $0x230] ss:$8 sps:$4 sm:$0xff]   ;;  %v6224_v30 = vld [vmem:[%s8259_s8 + $0x244] ss:$8 sps:$4 sm:$0xff]   ;;  %v6222_v49 = vld [vmem:[%s8259_s8 + $0x240] ss:$8 sps:$4 sm:$0xff]  }
 0x45d   :  { %3376 = vmatmul.mubr.bf16.gmra.mrb[40].mxu0 %v2817_v53  ;;  %v6230_v50 = vld [vmem:[%s8259_s8 + $0x264] ss:$8 sps:$4 sm:$0xff]   ;;  %v6228_v51 = vld [vmem:[%s8259_s8 + $0x260] ss:$8 sps:$4 sm:$0xff]   ;;  %v6231_v45 = vld [vmem:[%s8259_s8 + $0x270] ss:$8 sps:$4 sm:$0xff]  }
 0x45e   :  { %3405 = vmatpush1.bf16.msra.mxu0 %v6174_v52  ;;  %v2807_v52 = vld [vmem:[#allocation2 + $0x4] sm:$0xff]  ;;  %v2810_v40 = vld [vmem:[#allocation2 + $0x1c] sm:$0xff] }
 0x45f   :  { %3406 = vmatprep.subr.bf16.mxu0 %v6179_v55  ;;  %v2821_v59 = vld [vmem:[#allocation2 + $0x59] sm:$0xff] }
 0x460   :  { %v2815_v28 = vld [vmem:[#allocation2 + $0x58] sm:$0xff] }
 0x461   :  { %v2822_v63 = vld [vmem:[#allocation2 + $0x61] sm:$0xff]  ;;  %v2832_v39 = vld [vmem:[#allocation2 + $0x53] sm:$0xff] }
 0x462   :  { %v2816_v2 = vld [vmem:[#allocation2 + $0x60] sm:$0xff]  ;;  %3407 = vmatpush1.bf16.msra.mxu0 %v6177_v56  ;;  %v2824_v4 = vpack.c.bf16 %v2822_v63, %v2821_v59  ;;  %v2809_v55 = vld [vmem:[#allocation2 + $0x14] sm:$0xff]  ;;  %v2837_v56 = vld [vmem:[#allocation2 + $0x4c] sm:$0xff] }
 0x463   :  { %v2818_v10 = vpack.c.bf16 %v2816_v2, %v2815_v28  ;;  %3408 = vmatprep.subr.bf16.mxu0 %v6182_v57  ;;  %v2833_v46 = vld [vmem:[#allocation2 + $0x5b] sm:$0xff]  ;;  %v2834_v48 = vld [vmem:[#allocation2 + $0x63] sm:$0xff]  ;;  %v2812_v44 = vpack.c.bf16 %v2810_v40, %v2809_v55 }
 0x464   :  { %3385 = vmatprep.mubr.bf16.mxu0 %v2824_v4  ;;  %v2836_v12 = vpack.c.bf16 %v2834_v48, %v2833_v46  ;;  %v2839_v59 = vld [vmem:[#allocation2 + $0x5c] sm:$0xff]  ;;  %v2840_v61 = vld [vmem:[#allocation2 + $0x64] sm:$0xff] }
 0x465   :  { %3386 = vmatmul.mubr.bf16.gmra.mrb[44].mxu0 %v2818_v10  ;;  %v2842_v63 = vpack.c.bf16 %v2840_v61, %v2839_v59  ;;  %v6234_v28 = vld [vmem:[%s8261_s7] sm:$0xff]   ;;  %v6235_v2 = vld [vmem:[%s8261_s7 + $0x8] sm:$0xff]   ;;  %s6379_s7 = smov 64  }
 0x466   :  { %3409 = vmatpush1.bf16.msra.mxu0 %v6180_v5  ;;  %3428 = vmatprep.mubr.bf16.mxu0 %v2805_v15 }
 0x467   :  { %3410 = vmatprep.subr.bf16.mxu0 %v6185_v14  ;;  %5487 = vmatpush3.bf16.msra.mxu1 %v6234_v28 }
 0x468   :  { %5488 = vmatprep.subr.bf16.mxu1 %v6377_v34 }
 0x46a   :  { %3411 = vmatpush1.bf16.msra.mxu0 %v6183_v16 }
 0x46b   :  { %3412 = vmatprep.subr.bf16.mxu0 %v6188_v3  ;;  %5489 = vmatpush3.bf16.msra.mxu1 %v6235_v2 }
 0x46c   :  { %5494 = vmatprep.subr.bf16.mxu1 %v6377_v34 }
 0x46e   :  { %3413 = vmatpush1.bf16.msra.mxu0 %v6186_v17 }
 0x46f   :  { %3414 = vmatprep.subr.bf16.mxu0 %v6191_v20 }
 0x472   :  { %3415 = vmatpush1.bf16.msra.mxu0 %v6189_v22 }
 0x473   :  { %3416 = vmatprep.subr.bf16.mxu0 %v6194_v9 }
 0x476   :  { %3417 = vmatpush1.bf16.msra.mxu0 %v6192_v11 }
 0x477   :  { %3418 = vmatprep.subr.bf16.mxu0 %v6197_v23  ;;  %v5325_v23 = vld [vmem:[%s8262_s30] ss:$0 sm:$0xff] }
 0x47a   :  { %3419 = vmatpush1.bf16.msra.mxu0 %v6195_v24 }
 0x47b   :  { %3420 = vmatprep.subr.bf16.mxu0 %v6200_v25 }
 0x47e   :  { %3421 = vmatpush1.bf16.msra.mxu0 %v6198_v31 }
 0x47f   :  { %3422 = vmatprep.subr.bf16.mxu0 %v6203_v18 }
 0x482   :  { %3423 = vmatpush1.bf16.msra.mxu0 %v6201_v21 }
 0x483   :  { %3424 = vmatprep.subr.bf16.mxu0 %v6206_v26 }
 0x486   :  { %3425 = vmatpush1.bf16.msra.mxu0 %v6204_v32 }
 0x487   :  { %3426 = vmatprep.subr.bf16.mxu0 %v6209_v43 }
 0x48a   :  { %3427 = vmatpush1.bf16.msra.mxu0 %v6207_v47 }
 0x48b   :  { %3469 = vmatprep.subr.bf16.mxu0 %v6212_v58 }
 0x48d   :  { %3429 = vmatmul.mubr.bf16.vlgmr.msra.gmra.mrb[32].mxu0 %v2799_v0  ;;  %v2835_v0 = vpack.c.bf16 %v2832_v39, %v2831_v60 }
 0x48e   :  { %3438 = vmatprep.mubr.bf16.mxu0 %v2806_v19  ;;  %3470 = vmatpush1.bf16.msra.mxu0 %v6210_v36 }
 0x48f   :  { %3471 = vmatprep.subr.bf16.mxu0 %v6215_v29 }
 0x492   :  { %3472 = vmatpush1.bf16.msra.mxu0 %v6213_v37 }
 0x493   :  { %3473 = vmatprep.subr.bf16.mxu0 %v6218_v38 }
 0x495   :  { %3439 = vmatmul.mubr.bf16.gmra.mrb[36].mxu0 %v2800_v7  ;;  %v6225_v7 = vld [vmem:[%s8259_s8 + $0x250] ss:$8 sps:$4 sm:$0xff]  }
 0x496   :  { %3448 = vmatprep.mubr.bf16.mxu0 %v2835_v0  ;;  %3474 = vmatpush1.bf16.msra.mxu0 %v6216_v41 }
 0x497   :  { %3475 = vmatprep.subr.bf16.mxu0 %v6221_v62 }
 0x49a   :  { %3476 = vmatpush1.bf16.msra.mxu0 %v6219_v42 }
 0x49b   :  { %3477 = vmatprep.subr.bf16.mxu0 %v6224_v30 }
 0x49d   :  { %3449 = vmatmul.mubr.bf16.gmra.mrb[40].mxu0 %v2829_v1  ;;  %v2808_v1 = vld [vmem:[#allocation2 + $0xc] sm:$0xff] }
 0x49e   :  { %3458 = vmatprep.mubr.bf16.mxu0 %v2836_v12  ;;  %3478 = vmatpush1.bf16.msra.mxu0 %v6222_v49  ;;  %v2811_v53 = vpack.c.bf16 %v2808_v1, %v2807_v52  ;;  %v6236_v49 = vld [vmem:[%s8263_s10] sm:$0xff]   ;;  %v6237_v12 = vld [vmem:[%s8263_s10 + $0x8] sm:$0xff]  }
 0x49f   :  { %3479 = vmatprep.subr.bf16.mxu0 %v6227_v8  ;;  %v5330_v52 = vld [vmem:[%s8220_s12] ss:$0 sm:$0xff] }
 0x4a2   :  { %3480 = vmatpush1.bf16.msra.mxu0 %v6225_v7 }
 0x4a3   :  { %3481 = vmatprep.subr.bf16.mxu0 %v6230_v50 }
 0x4a5   :  { %3459 = vmatmul.mubr.bf16.gmra.mrb[44].mxu0 %v2830_v54  ;;  %v2838_v54 = vld [vmem:[#allocation2 + $0x54] sm:$0xff] }
 0x4a6   :  { %3482 = vmatpush1.bf16.msra.mxu0 %v6228_v51  ;;  %3501 = vmatprep.mubr.bf16.mxu0 %v6376_v6  ;;  %v2841_v57 = vpack.c.bf16 %v2838_v54, %v2837_v56  ;;  %v5326_v51 = vld [vmem:[%s8219_s11] ss:$0 sm:$0xff]  ;;  %s6380_s11 = smov 96  }
 0x4a7   :  { %3483 = vmatprep.subr.bf16.mxu0 %v6233_v27 }
 0x4aa   :  { %3484 = vmatpush1.bf16.msra.mxu0 %v6231_v45 }
 0x4ab   :  { %5518 = vmatprep.subr.bf16.mxu0 %v6377_v34 }
 0x4ad   :  { %3502 = vmatmul.mubr.bf16.vlgmr.msra.gmra.mrb[32].mxu0 %v2811_v53 }
 0x4ae   :  { %3511 = vmatprep.mubr.bf16.mxu0 %v6376_v6 }
 0x4b5   :  { %3512 = vmatmul.mubr.bf16.gmra.mrb[36].mxu0 %v2812_v44 }
 0x4b6   :  { %3521 = vmatprep.mubr.bf16.mxu0 %v6376_v6 }
 0x4bd   :  { %3522 = vmatmul.mubr.bf16.gmra.mrb[40].mxu0 %v2841_v57 }
 0x4be   :  { %3531 = vmatprep.mubr.bf16.mxu0 %v6376_v6 }
 0x4c5   :  { %3532 = vmatmul.mubr.bf16.gmra.mrb[44].mxu0 %v2842_v63 }
 0x4c6   :  { %5522 = vmatprep.mubr.msk.bf16.mxu0 %vm6378_vm0, %v6377_v34 }
 0x580   :  { %v3503_v4 = vpop.f32.mrb[32].mxu0 }
 0x581   :  { %v3505_v5 = vpop.f32.mrb[33].mxu0 }
 0x582   :  { %v3542_v10 = vmax.f32 %v3503_v4, %v3505_v5  ;;  %v3507_v13 = vpop.f32.mrb[34].mxu0 }
 0x583   :  { %v3509_v14 = vpop.f32.mrb[35].mxu0 }
 0x584   :  { %v3543_v15 = vmax.f32 %v3507_v13, %v3509_v14  ;;  %v3557_v26 = vadd.f32 %v5325_v23, %v3542_v10 }
 0x586   :  { %v3558_v43 = vadd.f32 %v5325_v23, %v3543_v15 }
 0x588   :  { %v3513_v16 = vpop.f32.mrb[36].mxu0 }
 0x589   :  { %v3515_v3 = vpop.f32.mrb[37].mxu0 }
 0x58a   :  { %v3544_v17 = vmax.f32 %v3513_v16, %v3515_v3  ;;  %v3517_v20 = vpop.f32.mrb[38].mxu0 }
 0x58b   :  { %v3519_v22 = vpop.f32.mrb[39].mxu0 }
 0x58c   :  { %v3545_v9 = vmax.f32 %v3517_v20, %v3519_v22  ;;  %v3559_v38 = vadd.f32 %v5325_v23, %v3544_v17 }
 0x58e   :  { %v3560_v60 = vadd.f32 %v5325_v23, %v3545_v9 }
 0x590   :  { %v3523_v11 = vpop.f32.mrb[40].mxu0 }
 0x591   :  { %v3525_v24 = vpop.f32.mrb[41].mxu0 }
 0x592   :  { %v3546_v25 = vmax.f32 %v3523_v11, %v3525_v24  ;;  %v3527_v31 = vpop.f32.mrb[42].mxu0 }
 0x593   :  { %v3529_v18 = vpop.f32.mrb[43].mxu0 }
 0x594   :  { %v3547_v21 = vmax.f32 %v3527_v31, %v3529_v18  ;;  %v3561_v32 = vadd.f32 %v5325_v23, %v3546_v25 }
 0x596   :  { %v3562_v47 = vadd.f32 %v5325_v23, %v3547_v21  ;;  %v5741_v58 = vpack.i.bf16 %v3561_v32, %v3557_v26 }
 0x598   :  { %5742 = vxpose.xlu0.b32.start [1/4] (short) (narrow) %v5741_v58, 8  ;;  %v3533_v33 = vpop.f32.mrb[44].mxu0  ;;  %v5743_v35 = vpack.i.bf16 %v3562_v47, %v3558_v43 }
 0x599   :  { %v3535_v36 = vpop.f32.mrb[45].mxu0 }
 0x59a   :  { %v3548_v29 = vmax.f32 %v3533_v33, %v3535_v36  ;;  %v3537_v19 = vpop.f32.mrb[46].mxu0  ;;  %v6239_v36 = vld [vmem:[%s8222_s14 + $0x8] sm:$0xff]  }
 0x59b   :  { %v3539_v37 = vpop.f32.mrb[47].mxu0 }
 0x59c   :  { %v3563_v39 = vadd.f32 %v5325_v23, %v3548_v29  ;;  %v3549_v41 = vmax.f32 %v3537_v19, %v3539_v37  ;;  %5744 = vxpose.xlu0.b32.cont [2/4] (short) (narrow) %v5743_v35, 8  ;;  %v6238_v35 = vld [vmem:[%s8222_s14] sm:$0xff]   ;;  %v6241_v19 = vld [vmem:[%s8221_s13 + $0x8] sm:$0xff]  }
 0x59d   :  { %5519 = vmatpush3.bf16.msra.mxu0 %v6238_v35  ;;  %v6240_v29 = vld [vmem:[%s8221_s13] sm:$0xff]  }
 0x59e   :  { %v3564_v62 = vadd.f32 %v5325_v23, %v3549_v41  ;;  %v5745_v0 = vpack.i.bf16 %v3563_v39, %v3559_v38  ;;  %5520 = vmatprep.subr.bf16.mxu0 %v6377_v34 }
 0x5a0   :  { %5746 = vxpose.xlu0.b32.cont [3/4] (short) (narrow) %v5745_v0, 8  ;;  %v5747_v42 = vpack.i.bf16 %v3564_v62, %v3560_v60 }
 0x5a1   :  { %5521 = vmatpush3.bf16.msra.mxu0 %v6239_v36 }
 0x5a4   :  { %5748 = vxpose.xlu0.b32.end [4/4] (short) (narrow) %v5747_v42, 8  ;;  %5523 = vmatmul.mubr.bf16.vlgmr.msra.gmra.mrb[48].mxu0 %v6376_v6  ;;  %v5340_v42 = vld [vmem:[%s8224_s16] ss:$0 sm:$0xff] }
 0x5a5   :  { %4234 = vmatprep.mubr.bf16.mxu0 %v6376_v6 }
 0x618   :  { %v5749_v30 = vpop.trf.xlu0 }
 0x619   :  { %v5753_v46 = vunpack.i.h.bf16 %v5749_v30  ;;  %v5750_v48 = vunpack.i.l.bf16 %v5749_v30 }
 0x61b   :  { %v3629_v8 = vpack.c.bf16 %v5753_v46, %v5750_v48 }
 0x61d   :  { %5491 = vmatmul.mubr.msk.bf16.vlgmr.msra.gmra.mrb[32].mxu1 %vm3653_vm1, %v3629_v8 }
 0x61e   :  { %5495 = vmatpush3.bf16.msra.mxu1 %v6236_v49  ;;  %5498 = vmatprep.mubr.msk.bf16.mxu1 %vm6378_vm0, %v6377_v34 }
 0x61f   :  { %5496 = vmatprep.subr.bf16.mxu1 %v6377_v34 }
 0x622   :  { %5497 = vmatpush3.bf16.msra.mxu1 %v6237_v12 }
 0x623   :  { %5502 = vmatprep.subr.bf16.mxu1 %v6377_v34 }
 0x625   :  { %5499 = vmatmul.mubr.bf16.vlgmr.msra.gmra.mrb[36].mxu1 %v6376_v6 }
 0x626   :  { %5503 = vmatpush3.bf16.msra.mxu1 %v6236_v49  ;;  %5506 = vmatprep.mubr.msk.bf16.mxu1 %vm6378_vm0, %v6377_v34 }
 0x627   :  { %5504 = vmatprep.subr.bf16.mxu1 %v6377_v34 }
 0x62a   :  { %5505 = vmatpush3.bf16.msra.mxu1 %v6237_v12 }
 0x62b   :  { %5510 = vmatprep.subr.bf16.mxu1 %v6377_v34 }
 0x677   :  { %v3991_v30 = vpop.f32.mrb[48].mxu0 }
 0x678   :  { %v3992_v46 = vadd.f32 %v5340_v42, %v3991_v30  ;;  %v5524_v48 = vpop.f32.mrb[49].mxu0  ;;  %v6254_v30 = vld [vmem:[%s8225_s17 + $0x10] ss:$20 sps:$4 sm:$0xff]  }
 0x679   :  { %v3994_v49 = vpop.f32.mrb[50].mxu0 }
 0x67a   :  { %v5525_v8 = vpop.f32.mrb[51].mxu0  ;;  %v6260_v49 = vld [vmem:[%s8227_s19 + $0x48] sm:$0xff]  }
 0x67b   :  { %v6255_v8 = vld [vmem:[%s8225_s17 + $0x38] ss:$20 sps:$4 sm:$0xff]  }
 0x6f0   :  { %v3691_v7 = vpop.f32.mrb[32].mxu1 }
 0x6f1   :  { %v5492_v50 = vpop.f32.mrb[33].mxu1  ;;  %v3692_v56 = vadd.f32 %v5326_v51, %v3691_v7  ;;  %v5336_v7 = vld [vmem:[%s8223_s15] ss:$0 sm:$0xff] }
 0x6f2   :  { %v3694_v27 = vpop.f32.mrb[34].mxu1 }
 0x6f3   :  { %v3695_v45 = vadd.f32 %v5326_v51, %v3694_v27  ;;  %v5493_v1 = vpop.f32.mrb[35].mxu1 }
 0x6f8   :  { %v3758_v53 = vpop.f32.mrb[36].mxu1 }
 0x6f9   :  { %v3759_v55 = vadd.f32 %v5330_v52, %v3758_v53  ;;  %v5500_v40 = vpop.f32.mrb[37].mxu1 }
 0x6fa   :  { %v3761_v44 = vpop.f32.mrb[38].mxu1 }
 0x6fb   :  { %3772 = vrot.lane.b32.xlu1 %v3759_v55, %s6379_s7  ;;  %v5501_v54 = vpop.f32.mrb[39].mxu1  ;;  %v3764_v57 = vadd.f32 %v3759_v55, %v3692_v56 }
 0x6fd   :  { %v5333_v59 = vmul.f32 -1.442695, %v3764_v57 }
 0x6ff   :  { %6300 = vpow2.f32 %v5333_v59 }
 0x709   :  { %v6301_v61 = vpop.eup %6300 }
 0x70a   :  { %v3768_v63 = vadd.f32 1.0, %v6301_v61 }
 0x70c   :  { %6302 = vrcp.f32 %v3768_v63 }
 0x716   :  { %v6303_v28 = vpop.eup %6302 }
 0x717   :  { %v3782_v14 = vsub.f32 1.0, %v6303_v28  ;;  %v3788_v16 = vmul.f32 0.0, %v6303_v28 }
 0x76d   :  { %v3773_v2 = vpop.permute.xlu1 %3772 }
 0x76e   :  { %v3775_v4 = vmul.f32 %v6303_v28, %v3773_v2 }
 0x770   :  { %3777 = vrot.lane.b32.xlu1 %v3775_v4, %s6379_s7 }
 0x7e2   :  { %v3778_v5 = vpop.permute.xlu1 %3777 }
 0x7e3   :  { %v3780_v10 = vadd.f32 %v3778_v5, %v3692_v56 }
 0x7e5   :  { %6304 = vtanh.f32 %v3780_v10 }
 0x7ef   :  { %v6305_v13 = vpop.eup %6304 }
 0x7f0   :  { %3784 = vrot.lane.b32.xlu1 %v6305_v13, %s6380_s11 }
 0x862   :  { %v3785_v15 = vpop.permute.xlu1 %3784 }
 0x863   :  { %v3787_v3 = vmul.f32 %v3785_v15, %v3782_v14 }
 0x865   :  { %v3789_v17 = vadd.f32 %v3788_v16, %v3787_v3 }
 0x867   :  { %v3790_v20 = vpack.c.bf16 %v3789_v17, %v3789_v17 }
 0x869   :  { %3792 = vrot.lane.b32.xlu1 %v3790_v20, %s6380_s11 }
 0x8db   :  { %v3793_v22 = vpop.permute.xlu1 %3792 }
 0x8dc   :  { %5507 = vmatmul.mubr.msk.bf16.vlgmr.msra.gmra.mrb[40].mxu1 %vm3653_vm1, %v3793_v22 }
 0x8dd   :  { %5514 = vmatprep.mubr.msk.bf16.mxu1 %vm6378_vm0, %v6377_v34  ;;  %5511 = vmatpush3.bf16.msra.mxu1 %v6240_v29 }
 0x8de   :  { %5512 = vmatprep.subr.bf16.mxu1 %v6377_v34 }
 0x8e1   :  { %5513 = vmatpush3.bf16.msra.mxu1 %v6241_v19 }
 0x8e2   :  { %5526 = vmatprep.subr.bf16.mxu1 %v6377_v34 }
 0x9af   :  { %v3831_v9 = vpop.f32.mrb[40].mxu1 }
 0x9b0   :  { %v3832_v11 = vadd.f32 %v5330_v52, %v3831_v9  ;;  %v5508_v23 = vpop.f32.mrb[41].mxu1 }
 0x9b1   :  { %v3834_v24 = vpop.f32.mrb[42].mxu1 }
 0x9b2   :  { %3845 = vrot.lane.b32.xlu0 %v3832_v11, %s6379_s7  ;;  %v5509_v25 = vpop.f32.mrb[43].mxu1  ;;  %v3837_v31 = vadd.f32 %v3832_v11, %v3695_v45 }
 0x9b4   :  { %v5335_v18 = vmul.f32 -1.442695, %v3837_v31 }
 0x9b6   :  { %6306 = vpow2.f32 %v5335_v18 }
 0x9c0   :  { %v6307_v21 = vpop.eup %6306 }
 0x9c1   :  { %v3841_v26 = vadd.f32 1.0, %v6307_v21  ;;  %v6242_v21 = vld [vmem:[%s8225_s17] ss:$20 sps:$4 sm:$0xff]  }
 0x9c3   :  { %6308 = vrcp.f32 %v3841_v26  ;;  %v6244_v26 = vld [vmem:[%s8225_s17 + $0x4] ss:$20 sps:$4 sm:$0xff]  }
 0x9c4   :  { %4202 = vmatprep.subr.bf16.mxu0 %v6244_v26 }
 0x9c5   :  { %4203 = vmatpush1.bf16.msra.mxu0 %v6242_v21 }
 0x9cd   :  { %v6309_v32 = vpop.eup %6308 }
 0x9ce   :  { %v3855_v38 = vsub.f32 1.0, %v6309_v32  ;;  %v3861_v41 = vmul.f32 %v6309_v32, %v3789_v17 }
 0xa24   :  { %v3846_v43 = vpop.permute.xlu0 %3845 }
 0xa25   :  { %v3848_v47 = vmul.f32 %v6309_v32, %v3846_v43  ;;  %v6245_v32 = vld [vmem:[%s8225_s17 + $0x8] ss:$20 sps:$4 sm:$0xff]   ;;  %v6247_v43 = vld [vmem:[%s8225_s17 + $0xc] ss:$20 sps:$4 sm:$0xff]  }
 0xa27   :  { %3850 = vrot.lane.b32.xlu1 %v3848_v47, %s6379_s7  ;;  %v6250_v47 = vld [vmem:[%s8225_s17 + $0x2c] ss:$20 sps:$4 sm:$0xff]  }
 0xa28   :  { %4204 = vmatprep.subr.bf16.mxu0 %v6250_v47 }
 0xa99   :  { %v3851_v58 = vpop.permute.xlu1 %3850 }
 0xa9a   :  { %v3853_v33 = vadd.f32 %v3851_v58, %v3695_v45  ;;  %v6253_v58 = vld [vmem:[%s8225_s17 + $0x34] ss:$20 sps:$4 sm:$0xff]  }
 0xa9c   :  { %6310 = vtanh.f32 %v3853_v33 }
 0xaa6   :  { %v6311_v37 = vpop.eup %6310 }
 0xaa7   :  { %3857 = vrot.lane.b32.xlu1 %v6311_v37, %s6380_s11 }
 0xb19   :  { %v3858_v39 = vpop.permute.xlu1 %3857 }
 0xb1a   :  { %v3860_v60 = vmul.f32 %v3858_v39, %v3855_v38 }
 0xb1c   :  { %v3862_v62 = vadd.f32 %v3861_v41, %v3860_v60 }
 0xb1e   :  { %v3863_v0 = vpack.c.bf16 %v3862_v62, %v3789_v17  ;;  %v6256_v62 = vld [vmem:[%s8227_s19 + $0x40] sm:$0xff]  }
 0xb20   :  { %3876 = vrot.lane.b32.xlu1 %v3863_v0, %s6380_s11 }
 0xb24   :  { %4005 = vrot.lane.b32.xlu1 %v3992_v46, %s6379_s7 }
 0xb92   :  { %v3877_v12 = vpop.permute.xlu1 %3876 }
 0xb93   :  { %5515 = vmatmul.mubr.msk.bf16.vlgmr.msra.gmra.mrb[44].mxu1 %vm3653_vm1, %v3877_v12  ;;  %v6258_v12 = vld [vmem:[%s8227_s19 + $0xc0] sm:$0xff]  }
 0xb94   :  { %5527 = vmatpush3.bf16.msra.mxu1 %v6238_v35  ;;  %5530 = vmatprep.mubr.msk.bf16.mxu1 %vm6378_vm0, %v6377_v34  ;;  %v6248_v35 = vld [vmem:[%s8225_s17 + $0x28] ss:$20 sps:$4 sm:$0xff]  }
 0xb95   :  { %5528 = vmatprep.subr.bf16.mxu1 %v6377_v34  ;;  %4205 = vmatpush1.bf16.msra.mxu0 %v6248_v35 }
 0xb96   :  { %v4006_v54 = vpop.permute.xlu1 %4005  ;;  %5534 = vmatprep.subr.bf16.mxu0 %v6377_v34 }
 0xb98   :  { %5529 = vmatpush3.bf16.msra.mxu1 %v6239_v36  ;;  %v6251_v36 = vld [vmem:[%s8225_s17 + $0x30] ss:$20 sps:$4 sm:$0xff]  }
 0xb99   :  { %4243 = vmatprep.subr.bf16.mxu1 %v6247_v43 }
 0xc66   :  { %v3927_v50 = vpop.f32.mrb[44].mxu1 }
 0xc67   :  { %v3928_v51 = vadd.f32 %v5336_v7, %v3927_v50  ;;  %v5516_v27 = vpop.f32.mrb[45].mxu1  ;;  %v6264_v50 = vld [vmem:[%s8227_s19 + $0x50] sm:$0xff]  }
 0xc68   :  { %v3930_v45 = vpop.f32.mrb[46].mxu1  ;;  %v6262_v27 = vld [vmem:[%s8227_s19 + $0xc8] sm:$0xff]  }
 0xc69   :  { %v3997_v1 = vadd.f32 %v3992_v46, %v3928_v51  ;;  %v3931_v52 = vadd.f32 %v5336_v7, %v3930_v45  ;;  %v5517_v53 = vpop.f32.mrb[47].mxu1  ;;  %v6257_v46 = vld [vmem:[%s8227_s19] sm:$0xff]   ;;  %v6261_v7 = vld [vmem:[%s8227_s19 + $0x8] sm:$0xff]   ;;  %v6265_v45 = vld [vmem:[%s8227_s19 + $0x10] sm:$0xff]  }
 0xc6a   :  { %v6266_v53 = vld [vmem:[%s8227_s19 + $0xd0] sm:$0xff]  }
 0xc6b   :  { %v5343_v55 = vmul.f32 -1.442695, %v3997_v1  ;;  %v6268_v1 = vld [vmem:[%s8227_s19 + $0x58] sm:$0xff]  }
 0xc6d   :  { %6312 = vpow2.f32 %v5343_v55  ;;  %v6269_v55 = vld [vmem:[%s8227_s19 + $0x18] sm:$0xff]  }
 0xc77   :  { %v6313_v40 = vpop.eup %6312 }
 0xc78   :  { %v4001_v44 = vadd.f32 1.0, %v6313_v40  ;;  %v6272_v40 = vld [vmem:[%s8227_s19 + $0x60] sm:$0xff]  }
 0xc7a   :  { %6314 = vrcp.f32 %v4001_v44  ;;  %v6267_v44 = vld [vmem:[%s8227_s19 + $0x90] sm:$0xff]  }
 0xc84   :  { %v6315_v56 = vpop.eup %6314 }
 0xc85   :  { %v4008_v57 = vmul.f32 %v6315_v56, %v4006_v54  ;;  %v4015_v28 = vsub.f32 1.0, %v6315_v56  ;;  %v4021_v4 = vmul.f32 0.0, %v6315_v56  ;;  %v6270_v54 = vld [vmem:[%s8227_s19 + $0xd8] sm:$0xff]   ;;  %v6273_v56 = vld [vmem:[%s8227_s19 + $0x20] sm:$0xff]  }
 0xc87   :  { %4010 = vrot.lane.b32.xlu1 %v4008_v57, %s6379_s7  ;;  %v6276_v57 = vld [vmem:[%s8227_s19 + $0x68] sm:$0xff]  }
 0xcf9   :  { %v4011_v59 = vpop.permute.xlu1 %4010 }
 0xcfa   :  { %v4013_v61 = vadd.f32 %v4011_v59, %v3928_v51  ;;  %v6259_v51 = vld [vmem:[%s8227_s19 + $0x80] sm:$0xff]   ;;  %v6271_v59 = vld [vmem:[%s8227_s19 + $0x98] sm:$0xff]  }
 0xcfc   :  { %6316 = vtanh.f32 %v4013_v61  ;;  %v6274_v61 = vld [vmem:[%s8227_s19 + $0xe0] sm:$0xff]  }
 0xd06   :  { %v6317_v63 = vpop.eup %6316 }
 0xd07   :  { %4017 = vrot.lane.b32.xlu1 %v6317_v63, %s6380_s11  ;;  %v6277_v63 = vld [vmem:[%s8227_s19 + $0x28] sm:$0xff]  }
 0xd79   :  { %v4018_v2 = vpop.permute.xlu1 %4017 }
 0xd7a   :  { %v4020_v5 = vmul.f32 %v4018_v2, %v4015_v28  ;;  %v6275_v28 = vld [vmem:[%s8227_s19 + $0xa0] sm:$0xff]   ;;  %v6278_v2 = vld [vmem:[%s8227_s19 + $0xe8] sm:$0xff]  }
 0xd7c   :  { %v4022_v10 = vadd.f32 %v4021_v4, %v4020_v5  ;;  %v6279_v4 = vld [vmem:[%s8227_s19 + $0xa8] sm:$0xff]   ;;  %v6280_v5 = vld [vmem:[%s8227_s19 + $0x70] sm:$0xff]  }
 0xd7e   :  { %v4023_v13 = vpack.c.bf16 %v4022_v10, %v4022_v10  ;;  %v4097_v41 = vrot.slane %v4022_v10, 7 }
 0xd80   :  { %4025 = vrot.lane.b32.xlu1 %v4023_v13, %s6380_s11  ;;  %v6282_v13 = vld [vmem:[%s8227_s19 + $0xf0] sm:$0xff]  }
 0xdf2   :  { %v4026_v14 = vpop.permute.xlu1 %4025 }
 0xdf3   :  { %5531 = vmatmul.mubr.msk.bf16.vlgmr.msra.gmra.mrb[48].mxu1 %vm3653_vm1, %v4026_v14  ;;  %v6283_v14 = vld [vmem:[%s8227_s19 + $0xb0] sm:$0xff]  }
 0xdf4   :  { %4275 = vmatprep.mubr.bf16.mxu1 %v6376_v6  ;;  %4244 = vmatpush1.bf16.msra.mxu1 %v6245_v32 }
 0xdf5   :  { %4245 = vmatprep.subr.bf16.mxu1 %v6253_v58 }
 0xdf8   :  { %4246 = vmatpush1.bf16.msra.mxu1 %v6251_v36 }
 0xdf9   :  { %5428 = vmatprep.subr.bf16.mxu1 %v6256_v62 }
 0xec6   :  { %v4064_v15 = vpop.f32.mrb[48].mxu1 }
 0xec7   :  { %v4065_v16 = vadd.f32 %v5340_v42, %v4064_v15  ;;  %v5532_v3 = vpop.f32.mrb[49].mxu1  ;;  %v6284_v15 = vld [vmem:[%s8227_s19 + $0x78] sm:$0xff]  }
 0xec8   :  { %v4067_v17 = vpop.f32.mrb[50].mxu1  ;;  %v6286_v3 = vld [vmem:[%s8227_s19 + $0xf8] sm:$0xff]  }
 0xec9   :  { %4078 = vrot.lane.b32.xlu1 %v4065_v16, %s6379_s7  ;;  %v5533_v20 = vpop.f32.mrb[51].mxu1  ;;  %v4070_v22 = vadd.f32 %v4065_v16, %v3931_v52  ;;  %v6285_v16 = vld [vmem:[%s8227_s19 + $0x38] sm:$0xff]  }
 0xeca   :  { %v6287_v17 = vld [vmem:[%s8227_s19 + $0xb8] sm:$0xff]   ;;  %v4119_v20 = vlaneseq }
 0xecb   :  { %v5345_v9 = vmul.f32 -1.442695, %v4070_v22 }
 0xecc   :  { %v4120_v22 = vshrl.u32 %v4119_v20, 7 }
 0xecd   :  { %6318 = vpow2.f32 %v5345_v9 }
 0xece   :  { %v4121_v9 = vsub.s32 0, %v4120_v22 }
 0xed7   :  { %v6319_v11 = vpop.eup %6318 }
 0xed8   :  { %v4074_v23 = vadd.f32 1.0, %v6319_v11  ;;  %v4129_v11 = vsub.s32 2, %v4120_v22 }
 0xeda   :  { %6320 = vrcp.f32 %v4074_v23  ;;  %v4117_v23 = vld [vmem:[%s8226_s18] sm:$0x1f] }
 0xee4   :  { %v6321_v24 = vpop.eup %6320 }
 0xee5   :  { %v4088_v29 = vsub.f32 1.0, %v6321_v24  ;;  %v4094_v37 = vmul.f32 %v6321_v24, %v4022_v10  ;;  %v6281_v10 = vld [vmem:[%s8227_s19 + $0x30] sm:$0xff]  }
 0xf3b   :  { %v4079_v25 = vpop.permute.xlu1 %4078 }
 0xf3c   :  { %v4081_v31 = vmul.f32 %v6321_v24, %v4079_v25  ;;  %v4125_v24 = vsub.s32 1, %v4120_v22  ;;  %v4133_v25 = vsub.s32 3, %v4120_v22 }
 0xf3e   :  { %4083 = vrot.lane.b32.xlu1 %v4081_v31, %s6379_s7  ;;  %v4122_v31 = vrot.slane %v4117_v23, %v4121_v9  ;;  %v4134_v21 = vrot.slane %v4117_v23, %v4133_v25  ;;  %v5392_v9 = vld [vmem:[%s8230_s22] ss:$0 sm:$0xff]  ;;  %s6381_s22 = smov [#allocation3]  }
 0xfb0   :  { %v4084_v18 = vpop.permute.xlu1 %4083 }
 0xfb1   :  { %v4086_v6 = vadd.f32 %v4084_v18, %v3931_v52  ;;  %v6263_v52 = vld [vmem:[%s8227_s19 + $0x88] sm:$0xff]   ;;  %v4130_v18 = vrot.slane %v4117_v23, %v4129_v11 }
 0xfb3   :  { %6322 = vtanh.f32 %v4086_v6  ;;  %v4126_v6 = vrot.slane %v4117_v23, %v4125_v24 }
 0xfbd   :  { %v6323_v33 = vpop.eup %6322 }
 0xfbe   :  { %4090 = vrot.lane.b32.xlu1 %v6323_v33, %s6380_s11 }
0x1030   :  { %v4091_v19 = vpop.permute.xlu1 %4090 }
0x1031   :  { %v4093_v38 = vmul.f32 %v4091_v19, %v4088_v29 }
0x1033   :  { %v4095_v39 = vadd.f32 %v4094_v37, %v4093_v38 }
0x1035   :  { %v4100_v60 = vrot.slane %v4095_v39, 6 }
0x1037   :  { %v4103_v0 = vsel %vm4102_vm2, %v4097_v41, %v4100_v60 }
0x1038   :  { %v4104_v42 = vpack.c.bf16 %v4103_v0, %v4103_v0 }
0x103a   :  { %4145 = vrot.lane.b32.xlu1 %v4104_v42, %s6380_s11 }
0x10ac   :  { %v4146_v48 = vpop.permute.xlu1 %4145 }
0x10ad   :  { %5356 = vmatmul.mubr.msk.bf16.vlgmr.msra.gmra.mrb[52].mxu0 %vm3653_vm1, %v4146_v48  ;;  %5357 = vmatmul.mubr.msk.bf16.vlgmr.msra.gmra.mrb[52].mxu1 %vm3653_vm1, %v4146_v48 }
0x10ae   :  { %5535 = vmatpush3.bf16.msra.mxu0 %v6254_v30  ;;  %5538 = vmatprep.mubr.msk.bf16.mxu0 %vm6378_vm0, %v6377_v34  ;;  %v6288_v30 = vld [vmem:[%s8229_s21] sm:$0xff]  }
0x10af   :  { %5536 = vmatprep.subr.bf16.mxu0 %v6377_v34  ;;  %5429 = vmatpush3.bf16.msra.mxu1 %v6257_v46 }
0x10b0   :  { %5430 = vmatprep.subr.bf16.mxu1 %v6260_v49 }
0x10b2   :  { %5537 = vmatpush3.bf16.msra.mxu0 %v6255_v8 }
0x10b3   :  { %5450 = vmatprep.subr.bf16.mxu0 %v6258_v12  ;;  %5431 = vmatpush3.bf16.msra.mxu1 %v6261_v7  ;;  %v6289_v7 = vld [vmem:[%s8229_s21 + $0x8] sm:$0xff]  }
0x10b4   :  { %5432 = vmatprep.subr.bf16.mxu1 %v6264_v50 }
0x10b5   :  { %5539 = vmatmul.mubr.msk.bf16.vlgmr.msra.gmra.mrb[56].mxu0 %vm3653_vm1, %v4146_v48 }
0x10b6   :  { %5451 = vmatpush3.bf16.msra.mxu0 %v6259_v51  ;;  %v6290_v51 = vld [vmem:[%s8229_s21 + $0x10] sm:$0xff]  }
0x10b7   :  { %5452 = vmatprep.subr.bf16.mxu0 %v6262_v27  ;;  %5433 = vmatpush3.bf16.msra.mxu1 %v6265_v45  ;;  %v6291_v27 = vld [vmem:[%s8229_s21 + $0x18] sm:$0xff]   ;;  %v4137_v45 = vsub.s32 4, %v4120_v22 }
0x10b8   :  { %5434 = vmatprep.subr.bf16.mxu1 %v6268_v1  ;;  %v6292_v1 = vld [vmem:[%s8229_s21 + $0x20] sm:$0xff]  }
0x10ba   :  { %5453 = vmatpush3.bf16.msra.mxu0 %v6263_v52  ;;  %v4138_v52 = vrot.slane %v4117_v23, %v4137_v45 }
0x10bb   :  { %5454 = vmatprep.subr.bf16.mxu0 %v6266_v53  ;;  %5435 = vmatpush3.bf16.msra.mxu1 %v6269_v55  ;;  %v6293_v53 = vld [vmem:[%s8229_s21 + $0x28] sm:$0xff]  }
0x10bc   :  { %5436 = vmatprep.subr.bf16.mxu1 %v6272_v40  ;;  %v6294_v40 = vld [vmem:[%s8229_s21 + $0x30] sm:$0xff]  }
0x10be   :  { %5455 = vmatpush3.bf16.msra.mxu0 %v6267_v44 }
0x10bf   :  { %5456 = vmatprep.subr.bf16.mxu0 %v6270_v54  ;;  %5437 = vmatpush3.bf16.msra.mxu1 %v6273_v56  ;;  %v6295_v54 = vld [vmem:[%s8229_s21 + $0x38] sm:$0xff]  }
0x10c0   :  { %5438 = vmatprep.subr.bf16.mxu1 %v6276_v57 }
0x10c2   :  { %5457 = vmatpush3.bf16.msra.mxu0 %v6271_v59  ;;  %v6296_v59 = vld [vmem:[%s8231_s23] sm:$0xff]  }
0x10c3   :  { %5458 = vmatprep.subr.bf16.mxu0 %v6274_v61  ;;  %5439 = vmatpush3.bf16.msra.mxu1 %v6277_v63  ;;  %v6297_v61 = vld [vmem:[%s8231_s23 + $0x8] sm:$0xff]   ;;  %v6298_v63 = vld [vmem:[%s8231_s23 + $0x10] sm:$0xff]  }
0x10c4   :  { %5440 = vmatprep.subr.bf16.mxu1 %v6280_v5  ;;  %v5359_v5 = vld [vmem:[%s8228_s20] ss:$0 sm:$0xff] }
0x10c6   :  { %5459 = vmatpush3.bf16.msra.mxu0 %v6275_v28  ;;  %v6299_v28 = vld [vmem:[%s8231_s23 + $0x18] sm:$0xff]  }
0x10c7   :  { %5460 = vmatprep.subr.bf16.mxu0 %v6278_v2  ;;  %5441 = vmatpush3.bf16.msra.mxu1 %v6281_v10 }
0x10c8   :  { %5442 = vmatprep.subr.bf16.mxu1 %v6284_v15 }
0x10ca   :  { %5461 = vmatpush3.bf16.msra.mxu0 %v6279_v4 }
0x10cb   :  { %5462 = vmatprep.subr.bf16.mxu0 %v6282_v13  ;;  %5443 = vmatpush3.bf16.msra.mxu1 %v6285_v16 }
0x10cc   :  { %5542 = vmatprep.subr.bf16.mxu1 %v6377_v34 }
0x10ce   :  { %5463 = vmatpush3.bf16.msra.mxu0 %v6283_v14 }
0x10cf   :  { %5464 = vmatprep.subr.bf16.mxu0 %v6286_v3 }
0x10d2   :  { %5465 = vmatpush3.bf16.msra.mxu0 %v6287_v17 }
0x10d3   :  { %5562 = vmatprep.subr.bf16.mxu0 %v6377_v34 }
0x1180   :  { %v4236_v26 = vpop.f32.mrb[52].mxu0  ;;  %v4277_v32 = vpop.f32.mrb[52].mxu1 }
0x1181   :  { %v4237_v43 = vadd.f32 %v4236_v26, %v4122_v31  ;;  %v4278_v47 = vadd.f32 %v4277_v32, %v4130_v18  ;;  %v4238_v58 = vpop.f32.mrb[53].mxu0  ;;  %v4279_v33 = vpop.f32.mrb[53].mxu1  ;;  %v5401_v26 = vld [vmem:[%s8232_s24] ss:$0 sm:$0xff]  ;;  %s4901_s24 = sshll.u32 %s6381_s22, 4  ;;  %s4902_s24 = int_to_ptr.vmem [resolvable:$true] %s4901_s24 }
0x1182   :  { %v4239_v35 = vadd.f32 %v4238_v58, %v4126_v6  ;;  %v4280_v36 = vadd.f32 %v4279_v33, %v4134_v21  ;;  %v4240_v29 = vpop.f32.mrb[54].mxu0  ;;  %v4281_v19 = vpop.f32.mrb[54].mxu1  ;;  %s6328_s16 = scalar_lea.vmem %s4902_s24, 32  ;;  %p6333_p1 = scmp.lt.s32.totalorder %s4902_s24, %s4902_s24 }
0x1183   :  { %v4324_v37 = vmax.f32 %v4237_v43, 0.0  ;;  %v4326_v38 = vmax.f32 %v4278_v47, 0.0  ;;  %v4241_v39 = vpop.f32.mrb[55].mxu0  ;;  %v4282_v41 = vpop.f32.mrb[55].mxu1  ;;  %p6329_p0 = scmp.ne.s32.totalorder %s4902_s24, %s6328_s16  ;;  %p6334_p2 = scmp.lt.s32.totalorder %s6328_s16, %s6328_s16 }
0x1184   :  { %v4325_v60 = vmax.f32 %v4239_v35, 0.0  ;;  %v4327_v62 = vmax.f32 %v4280_v36, 0.0 }
0x1185   :  { %v4328_v46 = vpack.c.bf16 %v4324_v37, %v4324_v37  ;;  %v4330_v48 = vpack.c.bf16 %v4326_v38, %v4326_v38  ;;  %p6335_p3 = por %p6334_p2, %p6333_p1 }
0x1186   :  { %v4329_v0 = vpack.c.bf16 %v4325_v60, %v4325_v60  ;;  %v4331_v42 = vpack.c.bf16 %v4327_v62, %v4327_v62 }
0x1187   :  { %p6336_p4 = pnand %p6335_p3, %p6329_p0 }
0x1188   :  { %v4318_v49 = vpop.f32.mrb[56].mxu0  ;;  %4627 = vmatprep.mubr.bf16.mxu1 %v4329_v0  ;;  %4667 = vmatprep.mubr.bf16.mxu0 %v4331_v42 }
0x1189   :  { %v5540_v8 = vpop.f32.mrb[57].mxu0  ;;  %4628 = vmatmul.mubr.bf16.vlgmr.msra.gmra.mrb[56].mxu1 %v4328_v46  ;;  %4668 = vmatmul.mubr.bf16.vlgmr.msra.gmra.mrb[60].mxu0 %v4330_v48  ;;  %v4319_v55 = vadd.f32 %v4318_v49, %v4138_v52 }
0x118a   :  { %5543 = vmatpush3.bf16.msra.mxu1 %v6288_v30  ;;  %v4321_v12 = vpop.f32.mrb[58].mxu0  ;;  %5558 = vmatprep.mubr.msk.bf16.mxu1 %vm6378_vm0, %v6377_v34 }
0x118b   :  { %v5541_v50 = vpop.f32.mrb[59].mxu0  ;;  %5544 = vmatprep.subr.bf16.mxu1 %v6377_v34  ;;  %5570 = vmatprep.mubr.msk.bf16.mxu0 %vm6378_vm0, %v6377_v34  ;;  %v4678_v44 = vmul.f32 0.01, %v4319_v55  ;;  %vm4677_vm3 = vcmp.ge.f32.partialorder %v4319_v55, 0.0 }
0x118c   :  { %5563 = vmatpush3.bf16.msra.mxu0 %v6296_v59 }
0x118d   :  { %v4679_v56 = vsel %vm4677_vm3, %v4319_v55, %v4678_v44  ;;  %5564 = vmatprep.subr.bf16.mxu0 %v6377_v34 }
0x118e   :  { %5545 = vmatpush3.bf16.msra.mxu1 %v6289_v7  ;;  %v4680_v57 = vpack.c.bf16 %v4679_v56, %v4679_v56 }
0x118f   :  { %5546 = vmatprep.subr.bf16.mxu1 %v6377_v34 }
0x1190   :  { %5565 = vmatpush3.bf16.msra.mxu0 %v6297_v61 }
0x1191   :  { %5566 = vmatprep.subr.bf16.mxu0 %v6377_v34 }
0x1192   :  { %5547 = vmatpush3.bf16.msra.mxu1 %v6290_v51 }
0x1193   :  { %5548 = vmatprep.subr.bf16.mxu1 %v6377_v34 }
0x1194   :  { %5567 = vmatpush3.bf16.msra.mxu0 %v6298_v63 }
0x1195   :  { %5568 = vmatprep.subr.bf16.mxu0 %v6377_v34 }
0x1196   :  { %5549 = vmatpush3.bf16.msra.mxu1 %v6291_v27 }
0x1197   :  { %5550 = vmatprep.subr.bf16.mxu1 %v6377_v34 }
0x1198   :  { %5569 = vmatpush3.bf16.msra.mxu0 %v6299_v28 }
0x119a   :  { %5551 = vmatpush3.bf16.msra.mxu1 %v6292_v1 }
0x119b   :  { %5552 = vmatprep.subr.bf16.mxu1 %v6377_v34 }
0x119e   :  { %5553 = vmatpush3.bf16.msra.mxu1 %v6293_v53 }
0x119f   :  { %5554 = vmatprep.subr.bf16.mxu1 %v6377_v34 }
0x11a2   :  { %5555 = vmatpush3.bf16.msra.mxu1 %v6294_v40 }
0x11a3   :  { %5556 = vmatprep.subr.bf16.mxu1 %v6377_v34 }
0x11a6   :  { %5557 = vmatpush3.bf16.msra.mxu1 %v6295_v54 }
0x11a9   :  { %5559 = vmatmul.mubr.bf16.vlgmr.msra.gmra.mrb[60].mxu1 %v4680_v57 }
0x125c   :  { %v5444_v2 = vpop.f32.mrb[56].mxu1  ;;  %v5466_v4 = vpop.f32.mrb[60].mxu0 }
0x125d   :  { %v5445_v10 = vpop.f32.mrb[57].mxu1  ;;  %v5467_v13 = vpop.f32.mrb[61].mxu0 }
0x125e   :  { %v5446_v14 = vadd.f32 %v5445_v10, %v5444_v2  ;;  %v5468_v15 = vadd.f32 %v5467_v13, %v5466_v4  ;;  %v5447_v16 = vpop.f32.mrb[58].mxu1  ;;  %v5469_v3 = vpop.f32.mrb[62].mxu0 }
0x125f   :  { %v5448_v17 = vpop.f32.mrb[59].mxu1  ;;  %v5470_v20 = vpop.f32.mrb[63].mxu0 }
0x1260   :  { %v4630_v34 = vadd.f32 %v5446_v14, %v5359_v5 }
0x1262   :  { %v4670_v22 = vadd.f32 %v5468_v15, %v4630_v34 }
0x1264   :  { %4676 = vst.msk [vmem:[#allocation3] sm:$0x3] %vm4675_vm4, %v4670_v22 }
0x127c   :  { %v4786_v11 = vpop.f32.mrb[60].mxu1 }
0x127d   :  { %v4787_v23 = vadd.f32 %v5392_v9, %v4786_v11  ;;  %v5560_v24 = vpop.f32.mrb[61].mxu1 }
0x127e   :  { %v4789_v25 = vpop.f32.mrb[62].mxu1 }
0x127f   :  { %vm4792_vm5 = vcmp.ge.f32.partialorder %v4787_v23, 0.0  ;;  %v4793_v31 = vmul.f32 0.01, %v4787_v23  ;;  %v5561_v18 = vpop.f32.mrb[63].mxu1 }
0x1281   :  { %v4794_v6 = vsel %vm4792_vm5, %v4787_v23, %v4793_v31 }
0x1282   :  { %v4795_v21 = vpack.c.bf16 %v4794_v6, %v4794_v6 }
0x1284   :  { %5571 = vmatmul.mubr.msk.bf16.vlgmr.msra.gmra.mrb[64].mxu0 %vm4835_vm6, %v4795_v21 }
0x1357   :  { %v4873_v32 = vpop.f32.mrb[64].mxu0 }
0x1358   :  { %v4874_v43 = vadd.f32 %v5401_v26, %v4873_v32  ;;  %v5572_v47 = vpop.f32.mrb[65].mxu0 }
0x1359   :  { %v4876_v58 = vpop.f32.mrb[66].mxu0 }
0x135a   :  { %v4880_v33 = vmul.f32 0.01, %v4874_v43  ;;  %v5573_v35 = vpop.f32.mrb[67].mxu0  ;;  %vm4879_vm7 = vcmp.ge.f32.partialorder %v4874_v43, 0.0 }
0x135c   :  { %v4881_v36 = vsel %vm4879_vm7, %v4874_v43, %v4880_v33 }
0x135d   :  { %v4883_v29 = vsel %vm4882_vm8, %v4881_v36, -inf }
0x135e   :  { %4884 = vmax.xlane.f32.xlu0 %v4883_v29 }
0x13eb   :  { %v4885_v19 = vpop.xlane.xlu0 %4884 }
0x13ec   :  { %v4886_v37 = vsub.f32 %v4881_v36, %v4885_v19 }
0x13ee   :  { %v4887_v38 = vmul.f32 1.442695, %v4886_v37 }
0x13f0   :  { %6324 = vpow2.f32 %v4887_v38 }
0x13fa   :  { %v6325_v39 = vpop.eup %6324 }
0x13fb   :  { %v4889_v41 = vsel %vm4882_vm8, %v6325_v39, 0.0 }
0x13fc   :  { %4890 = vadd.xlane.f32.xlu1 %v4889_v41 }
0x13fd   :  { %6339 = shalt.err (!%p6336_p4)
}
0x13fe   :  { %s6340_s3 = scalar_lea.hbm %s8233_s25, 32 }
0x13ff   :  { %p6341_p5 = scmp.ne.s32.totalorder %s8233_s25, %s6340_s3  ;;  %p6344_p6 = scmp.lt.u32.totalorder %s6340_s3, %s8233_s25 }
0x1401   :  { %p6346_p7 = pnand %p6344_p6, %p6341_p5 }
0x1403   :  { %6349 = shalt.err (!%p6346_p7)
}
0x1404   :  { %4904 = dma.vmem_to_hbm [thread:$0]  %s4902_s24, 32, %s8233_s25, [#allocation4]  }
0x1405   :  { %s6382_s0 = smov [#allocation5]  }
0x1406   :  { %s4911_s17 = sshll.u32 %s6382_s0, 4  ;;  %s4912_s17 = int_to_ptr.vmem [resolvable:$true] %s4911_s17 }
0x1407   :  { %s6350_s9 = scalar_lea.vmem %s4912_s17, 32  ;;  %p6355_p9 = scmp.lt.s32.totalorder %s4912_s17, %s4912_s17 }
0x1408   :  { %p6351_p8 = scmp.ne.s32.totalorder %s4912_s17, %s6350_s9  ;;  %p6356_p10 = scmp.lt.s32.totalorder %s6350_s9, %s6350_s9 }
0x140a   :  { %p6357_p11 = por %p6356_p10, %p6355_p9 }
0x140c   :  { %p6358_p12 = pnand %p6357_p11, %p6351_p8 }
0x1489   :  { %v4891_v60 = vpop.xlane.xlu1 %4890 }
0x148a   :  { %6326 = vrcp.f32 %v4891_v60 }
0x1494   :  { %v6327_v62 = vpop.eup %6326 }
0x1495   :  { %v4893_v0 = vmul.f32 %v6327_v62, %v6325_v39 }
0x1497   :  { %4894 = vst.msk [vmem:[#allocation5] sm:$0x3] %vm4882_vm8, %v4893_v0 }
0x1498   :  { %6361 = shalt.err (!%p6358_p12)
}
0x1499   :  { %s6362_s25 = scalar_lea.hbm %s8234_s26, 32 }
0x149a   :  { %p6363_p13 = scmp.ne.s32.totalorder %s8234_s26, %s6362_s25  ;;  %p6366_p0 = scmp.lt.u32.totalorder %s6362_s25, %s8234_s26 }
0x149c   :  { %p6368_p1 = pnand %p6366_p0, %p6363_p13 }
0x149e   :  { %6371 = shalt.err (!%p6368_p1)
}
0x149f   :  { %4914 = dma.vmem_to_hbm [thread:$0]  %s4912_s17, 32, %s8234_s26, [#allocation6]  }
0x14a0   :  { %6372 = dma.done.wait [#allocation4], 32  }
0x14a1   :  { %6373 = vsyncadd [#allocation4], 4294967264 }
0x14a2   :  { %6374 = dma.done.wait [#allocation6], 32  }
0x14a3   :  { %6375 = vsyncadd [#allocation6], 4294967264 }
0x14a4   :  { %4921 = vsyncpa [#allocation4], 1 }
0x14a5   :  { %4922 = vsyncpa [#allocation6], 1 }

</bundles_post_ra>
